<compile_context>
chip_gen: v7x
topology: tpu7x:2x2x1
jax: 0.10.0
libtpu: 0.0.40
codegen_flags: <defaults>
</compile_context>

<pallas_src>
import functools

import jax
import jax.numpy as jnp
from jax import lax
from jax.experimental import pallas as pl
from jax.experimental.pallas import tpu as pltpu


def _recurrent_conv_kernel(t, pad_top, sep, h, b_blk, fuse_n,
                           x_ref, w_ref, b_ref, out_ref, spad_ref):
    """Processes B_blk batch elements per grid step.

    x_ref   : (B_blk, H, WC)  f32   inputs, lane-dense (W*C on lanes)
    w_ref   : (WC, 3*WC)      bf16  banded conv weights (BN folded), ky-concat
    b_ref   : (1, WC)         f32   folded bias (conv bias + BN), W-tiled
    out_ref : (B_blk, H, WC)  f32   output; doubles as the recurrent `result`
    spad_ref: (PAD_TOP + B_blk*(H+SEP), WC) bf16 stacked, H-padded sum buffer
    """
    wc = out_ref.shape[-1]
    period = h + sep
    m_eff = b_blk * period - sep        # rows covering interiors + inner seps

    # Zero the pad / separator rows once per grid step (interiors are fully
    # overwritten every pass).  Scratch is per-core and uninitialised, and
    # with a megacore-split grid "first step on this core" is NOT
    # program_id()==0, so zero unconditionally -- it's only
    # PAD_TOP + B_blk*SEP rows of bf16 per step.
    spad_ref[0:pad_top, :] = jnp.zeros((pad_top, wc), jnp.bfloat16)
    for b in range(b_blk):
        r0 = pad_top + b * period + h
        spad_ref[r0:r0 + sep, :] = jnp.zeros((sep, wc), jnp.bfloat16)

    # Hoist the (1, WC) -> (H, WC) bias broadcast out of the recurrence loop
    # (JAX does not CSE broadcast_in_dim).
    bias = jnp.broadcast_to(b_ref[...], (h, wc))

    def write_sum(get_sample):
        # f32 sum cast to bf16 exactly once, at the 16-row-aligned store.
        for b in range(b_blk):
            r0 = pad_top + b * period
            spad_ref[r0:r0 + h, :] = get_sample(b).astype(jnp.bfloat16)

    def conv_pass():
        # 3x3 conv over every stacked sample.  kx taps + input-channel
        # contraction are fused into the K = WC contraction of the banded
        # weight; W zero-padding is implicit in the band, H zero-padding
        # comes from the zero separator rows.
        if fuse_n:
            # One wide matmul (N = 3*WC): fills the 256-wide MXU columns on
            # v6e/v7x and loads the LHS rows once; ky selection happens in
            # the two row-shifted adds below.
            lhs = spad_ref[pad_top - 1:pad_top - 1 + m_eff + 2, :]
            y = jnp.dot(lhs, w_ref[...], preferred_element_type=jnp.float32)
            acc = (y[0:m_eff, 0:wc]
                   + y[1:m_eff + 1, wc:2 * wc]
                   + y[2:m_eff + 2, 2 * wc:3 * wc])
        else:
            # v5e (4x128 MXU): three native 128-wide matmuls, one per ky.
            acc = None
            for ky in range(3):
                lhs = spad_ref[pad_top - 1 + ky:pad_top - 1 + ky + m_eff, :]
                d = jnp.dot(lhs, w_ref[:, ky * wc:(ky + 1) * wc],
                            preferred_element_type=jnp.float32)
                acc = d if acc is None else acc + d
        # Epilogue in f32 (v5e has no bf16 VPU): bias add + ReLU, per sample.
        for b in range(b_blk):
            rows = acc[b * period:b * period + h, :]
            out_ref[b] = jnp.maximum(rows + bias, 0.0)

    # Peeled first pass: result = conv_block(x)   (result == 0, so no add).
    write_sum(lambda b: x_ref[b])
    conv_pass()

    # t recurrence passes: result = conv_block(x + result).
    def step(_, carry):
        write_sum(lambda b: x_ref[b] + out_ref[b])
        conv_pass()
        return carry

    lax.fori_loop(0, t, step, 0, unroll=True if t <= 4 else 2)


def _mxu_columns_wide():
    """True on chips with a 256-wide MXU (v6e / v7x); False on v2..v5."""
    try:
        kind = jax.devices()[0].device_kind.lower()
    except Exception:
        return True
    for old in ("v2", "v3", "v4", "v5"):
        if old in kind:
            return False
    return True


def recurrent_conv_block(x_nchw, w_oihw, conv_b, gamma, beta,
                         run_mean, run_var, t=2, eps=1e-5,
                         block_batch=None, fuse_n=None):
    """Wrapper: NCHW in, NCHW out (matches the PyTorch forward semantics)."""
    N, C, H, W = x_nchw.shape
    WC = W * C

    # bf16 (16,128) sublane packing -> 16-row alignment for the stacked
    # interiors; SEP >= 1 zero rows also provide the H zero-padding between
    # neighbouring samples (and below the last one).
    PAD_TOP = 16
    SEP = (-H) % 16 or 16

    # Batch block: largest divisor of N that keeps the grid length >= 2
    # (v7x megacore split) and <= 8 samples per step.
    if block_batch is None:
        cap = max(1, min(8, N // 2))
        block_batch = 1
        for d in range(cap, 0, -1):
            if N % d == 0:
                block_batch = d
                break
    assert N % block_batch == 0
    if fuse_n is None:
        fuse_n = _mxu_columns_wide()

    # Fold eval-mode BatchNorm (+ conv bias) into weights / a single bias:
    #   BN(conv(x) + b) = conv_{w*scale}(x) + (beta + (b - mean)*scale)
    scale = gamma / jnp.sqrt(run_var + eps)                       # (C,)
    bias_eff = beta + (conv_b - run_mean) * scale                 # (C,)
    w_scaled = w_oihw.astype(jnp.float32) * scale[:, None, None, None]

    # Banded ("conv as dense matmul") weights: for each ky a (W*C_in, W*C_out)
    # block-Toeplitz matrix.  Entry [wi*C + i, wo*C + o] = w_scaled[o,i,ky,kx]
    # with kx = wi - wo + 1 when 0 <= kx <= 2, else 0 (implicit W zero-pad).
    w_taps = jnp.transpose(w_scaled, (2, 3, 1, 0))                # (ky,kx,I,O)
    wi = jnp.arange(W)[:, None]
    wo = jnp.arange(W)[None, :]
    kx = wi - wo + 1                                              # (W, W)
    valid = ((kx >= 0) & (kx <= 2)).astype(jnp.float32)
    banded = w_taps[:, jnp.clip(kx, 0, 2)]                        # (3,W,W,I,O)
    banded = banded * valid[None, :, :, None, None]
    w_banded = jnp.transpose(banded, (0, 1, 3, 2, 4)).reshape(3, WC, WC)
    # Concatenate the three ky blocks along N -> (WC, 3*WC).  The kernel either
    # consumes the whole thing in one wide matmul (v6e/v7x) or slices 128-wide
    # ky blocks out of it (v5e).
    w_pack = jnp.concatenate([w_banded[0], w_banded[1], w_banded[2]],
                             axis=1).astype(jnp.bfloat16)

    bias_wide = jnp.tile(bias_eff, W).reshape(1, WC).astype(jnp.float32)

    # NHWC with (W, C) flattened onto the 128-lane axis.
    x_lanes = jnp.transpose(x_nchw, (0, 2, 3, 1)).reshape(N, H, WC)
    x_lanes = x_lanes.astype(jnp.float32)

    spad_rows = PAD_TOP + block_batch * (H + SEP)
    kernel = functools.partial(_recurrent_conv_kernel, t, PAD_TOP, SEP, H,
                               block_batch, fuse_n)

    def _call(single_buffer_weight):
        w_kwargs = ({"pipeline_mode": pl.Buffered(1)}
                    if single_buffer_weight else {})
        return pl.pallas_call(
            kernel,
            out_shape=jax.ShapeDtypeStruct((N, H, WC), jnp.float32),
            grid=(N // block_batch,),
            in_specs=[
                pl.BlockSpec((block_batch, H, WC), lambda n: (n, 0, 0)),
                pl.BlockSpec((WC, 3 * WC), lambda n: (0, 0), **w_kwargs),
                pl.BlockSpec((1, WC), lambda n: (0, 0)),
            ],
            out_specs=pl.BlockSpec((block_batch, H, WC), lambda n: (n, 0, 0)),
            scratch_shapes=[pltpu.VMEM((spad_rows, WC), jnp.bfloat16)],
            # No vmem_limit_bytes request: real footprint is a few hundred
            # KiB, well under the default scoped limit on every generation.
            compiler_params=pltpu.CompilerParams(
                dimension_semantics=("parallel",)),
        )(x_lanes, w_pack, bias_wide)

    try:
        # Grid-invariant weight: single-buffered (no wasted double buffer).
        out = _call(True)
    except Exception:
        # Compatibility guard if pipeline_mode=Buffered(1) is unsupported.
        out = _call(False)

    # Back to NCHW.
    return jnp.transpose(out.reshape(N, H, W, C), (0, 3, 1, 2))


def _ref_forward(x_nchw, w_oihw, scale, bias_eff, t):
    """Pure-JAX f32 reference of the same folded ConvBlock recurrence."""
    def conv_block(z):
        y = lax.conv_general_dilated(
            z, w_oihw, window_strides=(1, 1), padding='SAME',
            dimension_numbers=('NCHW', 'OIHW', 'NCHW'))
        y = y * scale[None, :, None, None] + bias_eff[None, :, None, None]
        return jnp.maximum(y, 0.0)

    result = conv_block(x_nchw)
    for _ in range(t):
        result = conv_block(x_nchw + result)
    return result


if __name__ == "__main__":
    # W*C = 128 -> fully lane-dense; N=8 -> B_blk=4 samples per grid step and
    # a grid of 2 (one step per TensorCore on v7x).
    N, C, H, W = 8, 8, 16, 16
    t = 2
    eps = 1e-5

    key = jax.random.PRNGKey(0)
    kx_, kw_, kb_, kg_, kbe_, km_, kv_ = jax.random.split(key, 7)

    x = jax.random.normal(kx_, (N, C, H, W), dtype=jnp.float32)

    # Deterministic synthetic parameters (ConvBlock: Conv2d 3x3 + BN + ReLU).
    w_oihw = 0.1 * jax.random.normal(kw_, (C, C, 3, 3), dtype=jnp.float32)
    conv_b = 0.1 * jax.random.normal(kb_, (C,), dtype=jnp.float32)
    gamma = 1.0 + 0.1 * jax.random.normal(kg_, (C,), dtype=jnp.float32)
    beta = 0.1 * jax.random.normal(kbe_, (C,), dtype=jnp.float32)
    run_mean = 0.1 * jax.random.normal(km_, (C,), dtype=jnp.float32)
    run_var = 0.5 + jnp.abs(jax.random.normal(kv_, (C,), dtype=jnp.float32))

    out = recurrent_conv_block(x, w_oihw, conv_b, gamma, beta,
                               run_mean, run_var, t=t, eps=eps)
    out = jax.block_until_ready(out)

    # Correctness check against the pure-JAX f32 reference.  Tolerance is
    # loosened vs an all-f32 kernel because the sum is re-quantised to bf16
    # before each of the 3 chained MXU convolutions (f32 accumulation).
    scale = gamma / jnp.sqrt(run_var + eps)
    bias_eff = beta + (conv_b - run_mean) * scale
    ref = _ref_forward(x, w_oihw, scale, bias_eff, t)

    assert out.shape == (N, C, H, W), out.shape
    max_err = float(jnp.max(jnp.abs(out - ref)))
    assert max_err < 1e-1, max_err

    # Also validate the non-default MXU variant (fused vs per-ky matmuls) so
    # both code paths are exercised regardless of which chip we run on.
    out2 = recurrent_conv_block(x, w_oihw, conv_b, gamma, beta,
                                run_mean, run_var, t=t, eps=eps,
                                fuse_n=not _mxu_columns_wide())
    out2 = jax.block_until_ready(out2)
    max_err2 = float(jnp.max(jnp.abs(out2 - ref)))
    assert max_err2 < 1e-1, max_err2

    print("KERNEL_OK")
</pallas_src>

<mosaic_0001>
module attributes {stable_mosaic.version = 11 : i64} {
  func.func @_recurrent_conv_kernel(%arg0: i32, %arg1: memref<4x16x128xf32, #tpu.memory_space<vmem>>, %arg2: memref<128x384xbf16, #tpu.memory_space<vmem>>, %arg3: memref<1x128xf32, #tpu.memory_space<vmem>>, %arg4: memref<4x16x128xf32, #tpu.memory_space<vmem>>, %arg5: memref<144x128xbf16, #tpu.memory_space<vmem>>) attributes {dimension_semantics = [#tpu.dimension_semantics<parallel>], iteration_bounds = array<i64: 2>, scalar_prefetch = 0 : i64, scratch_operands = 1 : i64, tpu.core_type = #tpu.core_type<tc>, window_params = [{transform_indices = @transform_0, window_bounds = array<i64: 4, 16, 128>}, {pipeline_mode = #tpu.pipeline_mode<synchronous>, transform_indices = @transform_1, window_bounds = array<i64: 128, 384>}, {pipeline_mode = #tpu.pipeline_mode<synchronous>, transform_indices = @transform_2, window_bounds = array<i64: 1, 128>}, {transform_indices = @transform_3, window_bounds = array<i64: 4, 16, 128>}]} {
    %cst = arith.constant 0.000000e+00 : bf16
    %0 = vector.broadcast %cst : bf16 to vector<16x128xbf16>
    %c0 = arith.constant 0 : index
    %c0_0 = arith.constant 0 : index
    %1 = vector.load %arg5[%c0, %c0_0] : memref<144x128xbf16, #tpu.memory_space<vmem>>, vector<16x128xbf16>
    tpu.vector_store %arg5[%c0, %c0_0], %0 {strides = array<i32>} : memref<144x128xbf16, #tpu.memory_space<vmem>>, vector<16x128xbf16>,
    %cst_1 = arith.constant 0.000000e+00 : bf16
    %2 = vector.broadcast %cst_1 : bf16 to vector<16x128xbf16>
    %c32 = arith.constant 32 : index
    %c0_2 = arith.constant 0 : index
    %3 = vector.load %arg5[%c32, %c0_2] : memref<144x128xbf16, #tpu.memory_space<vmem>>, vector<16x128xbf16>
    tpu.vector_store %arg5[%c32, %c0_2], %2 {strides = array<i32>} : memref<144x128xbf16, #tpu.memory_space<vmem>>, vector<16x128xbf16>,
    %cst_3 = arith.constant 0.000000e+00 : bf16
    %4 = vector.broadcast %cst_3 : bf16 to vector<16x128xbf16>
    %c64 = arith.constant 64 : index
    %c0_4 = arith.constant 0 : index
    %5 = vector.load %arg5[%c64, %c0_4] : memref<144x128xbf16, #tpu.memory_space<vmem>>, vector<16x128xbf16>
    tpu.vector_store %arg5[%c64, %c0_4], %4 {strides = array<i32>} : memref<144x128xbf16, #tpu.memory_space<vmem>>, vector<16x128xbf16>,
    %cst_5 = arith.constant 0.000000e+00 : bf16
    %6 = vector.broadcast %cst_5 : bf16 to vector<16x128xbf16>
    %c96 = arith.constant 96 : index
    %c0_6 = arith.constant 0 : index
    %7 = vector.load %arg5[%c96, %c0_6] : memref<144x128xbf16, #tpu.memory_space<vmem>>, vector<16x128xbf16>
    tpu.vector_store %arg5[%c96, %c0_6], %6 {strides = array<i32>} : memref<144x128xbf16, #tpu.memory_space<vmem>>, vector<16x128xbf16>,
    %cst_7 = arith.constant 0.000000e+00 : bf16
    %8 = vector.broadcast %cst_7 : bf16 to vector<16x128xbf16>
    %c128 = arith.constant 128 : index
    %c0_8 = arith.constant 0 : index
    %9 = vector.load %arg5[%c128, %c0_8] : memref<144x128xbf16, #tpu.memory_space<vmem>>, vector<16x128xbf16>
    tpu.vector_store %arg5[%c128, %c0_8], %8 {strides = array<i32>} : memref<144x128xbf16, #tpu.memory_space<vmem>>, vector<16x128xbf16>,
    %c0_9 = arith.constant 0 : index
    %c0_10 = arith.constant 0 : index
    %10 = vector.load %arg3[%c0_9, %c0_10] : memref<1x128xf32, #tpu.memory_space<vmem>>, vector<1x128xf32>
    %11 = vector.shape_cast %10 : vector<1x128xf32> to vector<1x128xf32>
    %12 = vector.broadcast %11 : vector<1x128xf32> to vector<16x128xf32>
    %c0_11 = arith.constant 0 : index
    %c0_12 = arith.constant 0 : index
    %c0_13 = arith.constant 0 : index
    %13 = vector.load %arg1[%c0_11, %c0_12, %c0_13] : memref<4x16x128xf32, #tpu.memory_space<vmem>>, vector<1x16x128xf32>
    %14 = vector.shape_cast %13 : vector<1x16x128xf32> to vector<16x128xf32>
    %15 = arith.truncf %14 : vector<16x128xf32> to vector<16x128xbf16>
    %c16 = arith.constant 16 : index
    %c0_14 = arith.constant 0 : index
    %16 = vector.load %arg5[%c16, %c0_14] : memref<144x128xbf16, #tpu.memory_space<vmem>>, vector<16x128xbf16>
    tpu.vector_store %arg5[%c16, %c0_14], %15 {strides = array<i32>} : memref<144x128xbf16, #tpu.memory_space<vmem>>, vector<16x128xbf16>,
    %c1 = arith.constant 1 : index
    %c0_15 = arith.constant 0 : index
    %c0_16 = arith.constant 0 : index
    %17 = vector.load %arg1[%c1, %c0_15, %c0_16] : memref<4x16x128xf32, #tpu.memory_space<vmem>>, vector<1x16x128xf32>
    %18 = vector.shape_cast %17 : vector<1x16x128xf32> to vector<16x128xf32>
    %19 = arith.truncf %18 : vector<16x128xf32> to vector<16x128xbf16>
    %c48 = arith.constant 48 : index
    %c0_17 = arith.constant 0 : index
    %20 = vector.load %arg5[%c48, %c0_17] : memref<144x128xbf16, #tpu.memory_space<vmem>>, vector<16x128xbf16>
    tpu.vector_store %arg5[%c48, %c0_17], %19 {strides = array<i32>} : memref<144x128xbf16, #tpu.memory_space<vmem>>, vector<16x128xbf16>,
    %c2 = arith.constant 2 : index
    %c0_18 = arith.constant 0 : index
    %c0_19 = arith.constant 0 : index
    %21 = vector.load %arg1[%c2, %c0_18, %c0_19] : memref<4x16x128xf32, #tpu.memory_space<vmem>>, vector<1x16x128xf32>
    %22 = vector.shape_cast %21 : vector<1x16x128xf32> to vector<16x128xf32>
    %23 = arith.truncf %22 : vector<16x128xf32> to vector<16x128xbf16>
    %c80 = arith.constant 80 : index
    %c0_20 = arith.constant 0 : index
    %24 = vector.load %arg5[%c80, %c0_20] : memref<144x128xbf16, #tpu.memory_space<vmem>>, vector<16x128xbf16>
    tpu.vector_store %arg5[%c80, %c0_20], %23 {strides = array<i32>} : memref<144x128xbf16, #tpu.memory_space<vmem>>, vector<16x128xbf16>,
    %c3 = arith.constant 3 : index
    %c0_21 = arith.constant 0 : index
    %c0_22 = arith.constant 0 : index
    %25 = vector.load %arg1[%c3, %c0_21, %c0_22] : memref<4x16x128xf32, #tpu.memory_space<vmem>>, vector<1x16x128xf32>
    %26 = vector.shape_cast %25 : vector<1x16x128xf32> to vector<16x128xf32>
    %27 = arith.truncf %26 : vector<16x128xf32> to vector<16x128xbf16>
    %c112 = arith.constant 112 : index
    %c0_23 = arith.constant 0 : index
    %28 = vector.load %arg5[%c112, %c0_23] : memref<144x128xbf16, #tpu.memory_space<vmem>>, vector<16x128xbf16>
    tpu.vector_store %arg5[%c112, %c0_23], %27 {strides = array<i32>} : memref<144x128xbf16, #tpu.memory_space<vmem>>, vector<16x128xbf16>,
    %c15 = arith.constant 15 : index
    %c0_24 = arith.constant 0 : index
    %29 = vector.load %arg5[%c15, %c0_24] : memref<144x128xbf16, #tpu.memory_space<vmem>>, vector<114x128xbf16>
    %c0_25 = arith.constant 0 : index
    %c0_26 = arith.constant 0 : index
    %30 = vector.load %arg2[%c0_25, %c0_26] : memref<128x384xbf16, #tpu.memory_space<vmem>>, vector<128x384xbf16>
    %cst_27 = arith.constant dense<0.000000e+00> : vector<114x384xf32>
    %31 = tpu.matmul %29, %30, %cst_27 {dimension_numbers = #tpu.dot_dimension_numbers<[1], [0], [0], [1], [0, 0, 1, 1], [], []>} : vector<114x128xbf16>, vector<128x384xbf16>, vector<114x384xf32> -> vector<114x384xf32>
    %32 = vector.extract_strided_slice %31 {offsets = [0, 0], sizes = [112, 128], strides = [1, 1]} : vector<114x384xf32> to vector<112x128xf32>
    %33 = vector.extract_strided_slice %31 {offsets = [1, 128], sizes = [112, 128], strides = [1, 1]} : vector<114x384xf32> to vector<112x128xf32>
    %34 = arith.addf %32, %33 : vector<112x128xf32>
    %35 = vector.extract_strided_slice %31 {offsets = [2, 256], sizes = [112, 128], strides = [1, 1]} : vector<114x384xf32> to vector<112x128xf32>
    %36 = arith.addf %34, %35 : vector<112x128xf32>
    %37 = vector.extract_strided_slice %36 {offsets = [0, 0], sizes = [16, 128], strides = [1, 1]} : vector<112x128xf32> to vector<16x128xf32>
    %38 = arith.addf %37, %12 : vector<16x128xf32>
    %cst_28 = arith.constant 0.000000e+00 : f32
    %39 = vector.broadcast %cst_28 : f32 to vector<16x128xf32>
    %40 = arith.maximumf %38, %39 : vector<16x128xf32>
    %c0_29 = arith.constant 0 : index
    %c0_30 = arith.constant 0 : index
    %c0_31 = arith.constant 0 : index
    %41 = vector.load %arg4[%c0_29, %c0_30, %c0_31] : memref<4x16x128xf32, #tpu.memory_space<vmem>>, vector<1x16x128xf32>
    %42 = vector.shape_cast %41 : vector<1x16x128xf32> to vector<16x128xf32>
    %43 = vector.shape_cast %40 : vector<16x128xf32> to vector<1x16x128xf32>
    tpu.vector_store %arg4[%c0_29, %c0_30, %c0_31], %43 {strides = array<i32>} : memref<4x16x128xf32, #tpu.memory_space<vmem>>, vector<1x16x128xf32>,
    %44 = vector.extract_strided_slice %36 {offsets = [32, 0], sizes = [16, 128], strides = [1, 1]} : vector<112x128xf32> to vector<16x128xf32>
    %45 = arith.addf %44, %12 : vector<16x128xf32>
    %cst_32 = arith.constant 0.000000e+00 : f32
    %46 = vector.broadcast %cst_32 : f32 to vector<16x128xf32>
    %47 = arith.maximumf %45, %46 : vector<16x128xf32>
    %c1_33 = arith.constant 1 : index
    %c0_34 = arith.constant 0 : index
    %c0_35 = arith.constant 0 : index
    %48 = vector.load %arg4[%c1_33, %c0_34, %c0_35] : memref<4x16x128xf32, #tpu.memory_space<vmem>>, vector<1x16x128xf32>
    %49 = vector.shape_cast %48 : vector<1x16x128xf32> to vector<16x128xf32>
    %50 = vector.shape_cast %47 : vector<16x128xf32> to vector<1x16x128xf32>
    tpu.vector_store %arg4[%c1_33, %c0_34, %c0_35], %50 {strides = array<i32>} : memref<4x16x128xf32, #tpu.memory_space<vmem>>, vector<1x16x128xf32>,
    %51 = vector.extract_strided_slice %36 {offsets = [64, 0], sizes = [16, 128], strides = [1, 1]} : vector<112x128xf32> to vector<16x128xf32>
    %52 = arith.addf %51, %12 : vector<16x128xf32>
    %cst_36 = arith.constant 0.000000e+00 : f32
    %53 = vector.broadcast %cst_36 : f32 to vector<16x128xf32>
    %54 = arith.maximumf %52, %53 : vector<16x128xf32>
    %c2_37 = arith.constant 2 : index
    %c0_38 = arith.constant 0 : index
    %c0_39 = arith.constant 0 : index
    %55 = vector.load %arg4[%c2_37, %c0_38, %c0_39] : memref<4x16x128xf32, #tpu.memory_space<vmem>>, vector<1x16x128xf32>
    %56 = vector.shape_cast %55 : vector<1x16x128xf32> to vector<16x128xf32>
    %57 = vector.shape_cast %54 : vector<16x128xf32> to vector<1x16x128xf32>
    tpu.vector_store %arg4[%c2_37, %c0_38, %c0_39], %57 {strides = array<i32>} : memref<4x16x128xf32, #tpu.memory_space<vmem>>, vector<1x16x128xf32>,
    %58 = vector.extract_strided_slice %36 {offsets = [96, 0], sizes = [16, 128], strides = [1, 1]} : vector<112x128xf32> to vector<16x128xf32>
    %59 = arith.addf %58, %12 : vector<16x128xf32>
    %cst_40 = arith.constant 0.000000e+00 : f32
    %60 = vector.broadcast %cst_40 : f32 to vector<16x128xf32>
    %61 = arith.maximumf %59, %60 : vector<16x128xf32>
    %c3_41 = arith.constant 3 : index
    %c0_42 = arith.constant 0 : index
    %c0_43 = arith.constant 0 : index
    %62 = vector.load %arg4[%c3_41, %c0_42, %c0_43] : memref<4x16x128xf32, #tpu.memory_space<vmem>>, vector<1x16x128xf32>
    %63 = vector.shape_cast %62 : vector<1x16x128xf32> to vector<16x128xf32>
    %64 = vector.shape_cast %61 : vector<16x128xf32> to vector<1x16x128xf32>
    tpu.vector_store %arg4[%c3_41, %c0_42, %c0_43], %64 {strides = array<i32>} : memref<4x16x128xf32, #tpu.memory_space<vmem>>, vector<1x16x128xf32>,
    %c0_i32 = arith.constant 0 : i32
    %c0_44 = arith.constant 0 : index
    %c0_45 = arith.constant 0 : index
    %c0_46 = arith.constant 0 : index
    %65 = vector.load %arg1[%c0_44, %c0_45, %c0_46] : memref<4x16x128xf32, #tpu.memory_space<vmem>>, vector<1x16x128xf32>
    %66 = vector.shape_cast %65 : vector<1x16x128xf32> to vector<16x128xf32>
    %c0_47 = arith.constant 0 : index
    %c0_48 = arith.constant 0 : index
    %c0_49 = arith.constant 0 : index
    %67 = vector.load %arg4[%c0_47, %c0_48, %c0_49] : memref<4x16x128xf32, #tpu.memory_space<vmem>>, vector<1x16x128xf32>
    %68 = vector.shape_cast %67 : vector<1x16x128xf32> to vector<16x128xf32>
    %69 = arith.addf %66, %68 : vector<16x128xf32>
    %70 = arith.truncf %69 : vector<16x128xf32> to vector<16x128xbf16>
    %c16_50 = arith.constant 16 : index
    %c0_51 = arith.constant 0 : index
    %71 = vector.load %arg5[%c16_50, %c0_51] : memref<144x128xbf16, #tpu.memory_space<vmem>>, vector<16x128xbf16>
    tpu.vector_store %arg5[%c16_50, %c0_51], %70 {strides = array<i32>} : memref<144x128xbf16, #tpu.memory_space<vmem>>, vector<16x128xbf16>,
    %c1_52 = arith.constant 1 : index
    %c0_53 = arith.constant 0 : index
    %c0_54 = arith.constant 0 : index
    %72 = vector.load %arg1[%c1_52, %c0_53, %c0_54] : memref<4x16x128xf32, #tpu.memory_space<vmem>>, vector<1x16x128xf32>
    %73 = vector.shape_cast %72 : vector<1x16x128xf32> to vector<16x128xf32>
    %c1_55 = arith.constant 1 : index
    %c0_56 = arith.constant 0 : index
    %c0_57 = arith.constant 0 : index
    %74 = vector.load %arg4[%c1_55, %c0_56, %c0_57] : memref<4x16x128xf32, #tpu.memory_space<vmem>>, vector<1x16x128xf32>
    %75 = vector.shape_cast %74 : vector<1x16x128xf32> to vector<16x128xf32>
    %76 = arith.addf %73, %75 : vector<16x128xf32>
    %77 = arith.truncf %76 : vector<16x128xf32> to vector<16x128xbf16>
    %c48_58 = arith.constant 48 : index
    %c0_59 = arith.constant 0 : index
    %78 = vector.load %arg5[%c48_58, %c0_59] : memref<144x128xbf16, #tpu.memory_space<vmem>>, vector<16x128xbf16>
    tpu.vector_store %arg5[%c48_58, %c0_59], %77 {strides = array<i32>} : memref<144x128xbf16, #tpu.memory_space<vmem>>, vector<16x128xbf16>,
    %c2_60 = arith.constant 2 : index
    %c0_61 = arith.constant 0 : index
    %c0_62 = arith.constant 0 : index
    %79 = vector.load %arg1[%c2_60, %c0_61, %c0_62] : memref<4x16x128xf32, #tpu.memory_space<vmem>>, vector<1x16x128xf32>
    %80 = vector.shape_cast %79 : vector<1x16x128xf32> to vector<16x128xf32>
    %c2_63 = arith.constant 2 : index
    %c0_64 = arith.constant 0 : index
    %c0_65 = arith.constant 0 : index
    %81 = vector.load %arg4[%c2_63, %c0_64, %c0_65] : memref<4x16x128xf32, #tpu.memory_space<vmem>>, vector<1x16x128xf32>
    %82 = vector.shape_cast %81 : vector<1x16x128xf32> to vector<16x128xf32>
    %83 = arith.addf %80, %82 : vector<16x128xf32>
    %84 = arith.truncf %83 : vector<16x128xf32> to vector<16x128xbf16>
    %c80_66 = arith.constant 80 : index
    %c0_67 = arith.constant 0 : index
    %85 = vector.load %arg5[%c80_66, %c0_67] : memref<144x128xbf16, #tpu.memory_space<vmem>>, vector<16x128xbf16>
    tpu.vector_store %arg5[%c80_66, %c0_67], %84 {strides = array<i32>} : memref<144x128xbf16, #tpu.memory_space<vmem>>, vector<16x128xbf16>,
    %c3_68 = arith.constant 3 : index
    %c0_69 = arith.constant 0 : index
    %c0_70 = arith.constant 0 : index
    %86 = vector.load %arg1[%c3_68, %c0_69, %c0_70] : memref<4x16x128xf32, #tpu.memory_space<vmem>>, vector<1x16x128xf32>
    %87 = vector.shape_cast %86 : vector<1x16x128xf32> to vector<16x128xf32>
    %c3_71 = arith.constant 3 : index
    %c0_72 = arith.constant 0 : index
    %c0_73 = arith.constant 0 : index
    %88 = vector.load %arg4[%c3_71, %c0_72, %c0_73] : memref<4x16x128xf32, #tpu.memory_space<vmem>>, vector<1x16x128xf32>
    %89 = vector.shape_cast %88 : vector<1x16x128xf32> to vector<16x128xf32>
    %90 = arith.addf %87, %89 : vector<16x128xf32>
    %91 = arith.truncf %90 : vector<16x128xf32> to vector<16x128xbf16>
    %c112_74 = arith.constant 112 : index
    %c0_75 = arith.constant 0 : index
    %92 = vector.load %arg5[%c112_74, %c0_75] : memref<144x128xbf16, #tpu.memory_space<vmem>>, vector<16x128xbf16>
    tpu.vector_store %arg5[%c112_74, %c0_75], %91 {strides = array<i32>} : memref<144x128xbf16, #tpu.memory_space<vmem>>, vector<16x128xbf16>,
    %c15_76 = arith.constant 15 : index
    %c0_77 = arith.constant 0 : index
    %93 = vector.load %arg5[%c15_76, %c0_77] : memref<144x128xbf16, #tpu.memory_space<vmem>>, vector<114x128xbf16>
    %c0_78 = arith.constant 0 : index
    %c0_79 = arith.constant 0 : index
    %94 = vector.load %arg2[%c0_78, %c0_79] : memref<128x384xbf16, #tpu.memory_space<vmem>>, vector<128x384xbf16>
    %cst_80 = arith.constant dense<0.000000e+00> : vector<114x384xf32>
    %95 = tpu.matmul %93, %94, %cst_80 {dimension_numbers = #tpu.dot_dimension_numbers<[1], [0], [0], [1], [0, 0, 1, 1], [], []>} : vector<114x128xbf16>, vector<128x384xbf16>, vector<114x384xf32> -> vector<114x384xf32>
    %96 = vector.extract_strided_slice %95 {offsets = [0, 0], sizes = [112, 128], strides = [1, 1]} : vector<114x384xf32> to vector<112x128xf32>
    %97 = vector.extract_strided_slice %95 {offsets = [1, 128], sizes = [112, 128], strides = [1, 1]} : vector<114x384xf32> to vector<112x128xf32>
    %98 = arith.addf %96, %97 : vector<112x128xf32>
    %99 = vector.extract_strided_slice %95 {offsets = [2, 256], sizes = [112, 128], strides = [1, 1]} : vector<114x384xf32> to vector<112x128xf32>
    %100 = arith.addf %98, %99 : vector<112x128xf32>
    %101 = vector.extract_strided_slice %100 {offsets = [0, 0], sizes = [16, 128], strides = [1, 1]} : vector<112x128xf32> to vector<16x128xf32>
    %102 = arith.addf %101, %12 : vector<16x128xf32>
    %cst_81 = arith.constant 0.000000e+00 : f32
    %103 = vector.broadcast %cst_81 : f32 to vector<16x128xf32>
    %104 = arith.maximumf %102, %103 : vector<16x128xf32>
    %c0_82 = arith.constant 0 : index
    %c0_83 = arith.constant 0 : index
    %c0_84 = arith.constant 0 : index
    %105 = vector.load %arg4[%c0_82, %c0_83, %c0_84] : memref<4x16x128xf32, #tpu.memory_space<vmem>>, vector<1x16x128xf32>
    %106 = vector.shape_cast %105 : vector<1x16x128xf32> to vector<16x128xf32>
    %107 = vector.shape_cast %104 : vector<16x128xf32> to vector<1x16x128xf32>
    tpu.vector_store %arg4[%c0_82, %c0_83, %c0_84], %107 {strides = array<i32>} : memref<4x16x128xf32, #tpu.memory_space<vmem>>, vector<1x16x128xf32>,
    %108 = vector.extract_strided_slice %100 {offsets = [32, 0], sizes = [16, 128], strides = [1, 1]} : vector<112x128xf32> to vector<16x128xf32>
    %109 = arith.addf %108, %12 : vector<16x128xf32>
    %cst_85 = arith.constant 0.000000e+00 : f32
    %110 = vector.broadcast %cst_85 : f32 to vector<16x128xf32>
    %111 = arith.maximumf %109, %110 : vector<16x128xf32>
    %c1_86 = arith.constant 1 : index
    %c0_87 = arith.constant 0 : index
    %c0_88 = arith.constant 0 : index
    %112 = vector.load %arg4[%c1_86, %c0_87, %c0_88] : memref<4x16x128xf32, #tpu.memory_space<vmem>>, vector<1x16x128xf32>
    %113 = vector.shape_cast %112 : vector<1x16x128xf32> to vector<16x128xf32>
    %114 = vector.shape_cast %111 : vector<16x128xf32> to vector<1x16x128xf32>
    tpu.vector_store %arg4[%c1_86, %c0_87, %c0_88], %114 {strides = array<i32>} : memref<4x16x128xf32, #tpu.memory_space<vmem>>, vector<1x16x128xf32>,
    %115 = vector.extract_strided_slice %100 {offsets = [64, 0], sizes = [16, 128], strides = [1, 1]} : vector<112x128xf32> to vector<16x128xf32>
    %116 = arith.addf %115, %12 : vector<16x128xf32>
    %cst_89 = arith.constant 0.000000e+00 : f32
    %117 = vector.broadcast %cst_89 : f32 to vector<16x128xf32>
    %118 = arith.maximumf %116, %117 : vector<16x128xf32>
    %c2_90 = arith.constant 2 : index
    %c0_91 = arith.constant 0 : index
    %c0_92 = arith.constant 0 : index
    %119 = vector.load %arg4[%c2_90, %c0_91, %c0_92] : memref<4x16x128xf32, #tpu.memory_space<vmem>>, vector<1x16x128xf32>
    %120 = vector.shape_cast %119 : vector<1x16x128xf32> to vector<16x128xf32>
    %121 = vector.shape_cast %118 : vector<16x128xf32> to vector<1x16x128xf32>
    tpu.vector_store %arg4[%c2_90, %c0_91, %c0_92], %121 {strides = array<i32>} : memref<4x16x128xf32, #tpu.memory_space<vmem>>, vector<1x16x128xf32>,
    %122 = vector.extract_strided_slice %100 {offsets = [96, 0], sizes = [16, 128], strides = [1, 1]} : vector<112x128xf32> to vector<16x128xf32>
    %123 = arith.addf %122, %12 : vector<16x128xf32>
    %cst_93 = arith.constant 0.000000e+00 : f32
    %124 = vector.broadcast %cst_93 : f32 to vector<16x128xf32>
    %125 = arith.maximumf %123, %124 : vector<16x128xf32>
    %c3_94 = arith.constant 3 : index
    %c0_95 = arith.constant 0 : index
    %c0_96 = arith.constant 0 : index
    %126 = vector.load %arg4[%c3_94, %c0_95, %c0_96] : memref<4x16x128xf32, #tpu.memory_space<vmem>>, vector<1x16x128xf32>
    %127 = vector.shape_cast %126 : vector<1x16x128xf32> to vector<16x128xf32>
    %128 = vector.shape_cast %125 : vector<16x128xf32> to vector<1x16x128xf32>
    tpu.vector_store %arg4[%c3_94, %c0_95, %c0_96], %128 {strides = array<i32>} : memref<4x16x128xf32, #tpu.memory_space<vmem>>, vector<1x16x128xf32>,
    %c1_i32 = arith.constant 1 : i32
    %c0_97 = arith.constant 0 : index
    %c0_98 = arith.constant 0 : index
    %c0_99 = arith.constant 0 : index
    %129 = vector.load %arg1[%c0_97, %c0_98, %c0_99] : memref<4x16x128xf32, #tpu.memory_space<vmem>>, vector<1x16x128xf32>
    %130 = vector.shape_cast %129 : vector<1x16x128xf32> to vector<16x128xf32>
    %c0_100 = arith.constant 0 : index
    %c0_101 = arith.constant 0 : index
    %c0_102 = arith.constant 0 : index
    %131 = vector.load %arg4[%c0_100, %c0_101, %c0_102] : memref<4x16x128xf32, #tpu.memory_space<vmem>>, vector<1x16x128xf32>
    %132 = vector.shape_cast %131 : vector<1x16x128xf32> to vector<16x128xf32>
    %133 = arith.addf %130, %132 : vector<16x128xf32>
    %134 = arith.truncf %133 : vector<16x128xf32> to vector<16x128xbf16>
    %c16_103 = arith.constant 16 : index
    %c0_104 = arith.constant 0 : index
    %135 = vector.load %arg5[%c16_103, %c0_104] : memref<144x128xbf16, #tpu.memory_space<vmem>>, vector<16x128xbf16>
    tpu.vector_store %arg5[%c16_103, %c0_104], %134 {strides = array<i32>} : memref<144x128xbf16, #tpu.memory_space<vmem>>, vector<16x128xbf16>,
    %c1_105 = arith.constant 1 : index
    %c0_106 = arith.constant 0 : index
    %c0_107 = arith.constant 0 : index
    %136 = vector.load %arg1[%c1_105, %c0_106, %c0_107] : memref<4x16x128xf32, #tpu.memory_space<vmem>>, vector<1x16x128xf32>
    %137 = vector.shape_cast %136 : vector<1x16x128xf32> to vector<16x128xf32>
    %c1_108 = arith.constant 1 : index
    %c0_109 = arith.constant 0 : index
    %c0_110 = arith.constant 0 : index
    %138 = vector.load %arg4[%c1_108, %c0_109, %c0_110] : memref<4x16x128xf32, #tpu.memory_space<vmem>>, vector<1x16x128xf32>
    %139 = vector.shape_cast %138 : vector<1x16x128xf32> to vector<16x128xf32>
    %140 = arith.addf %137, %139 : vector<16x128xf32>
    %141 = arith.truncf %140 : vector<16x128xf32> to vector<16x128xbf16>
    %c48_111 = arith.constant 48 : index
    %c0_112 = arith.constant 0 : index
    %142 = vector.load %arg5[%c48_111, %c0_112] : memref<144x128xbf16, #tpu.memory_space<vmem>>, vector<16x128xbf16>
    tpu.vector_store %arg5[%c48_111, %c0_112], %141 {strides = array<i32>} : memref<144x128xbf16, #tpu.memory_space<vmem>>, vector<16x128xbf16>,
    %c2_113 = arith.constant 2 : index
    %c0_114 = arith.constant 0 : index
    %c0_115 = arith.constant 0 : index
    %143 = vector.load %arg1[%c2_113, %c0_114, %c0_115] : memref<4x16x128xf32, #tpu.memory_space<vmem>>, vector<1x16x128xf32>
    %144 = vector.shape_cast %143 : vector<1x16x128xf32> to vector<16x128xf32>
    %c2_116 = arith.constant 2 : index
    %c0_117 = arith.constant 0 : index
    %c0_118 = arith.constant 0 : index
    %145 = vector.load %arg4[%c2_116, %c0_117, %c0_118] : memref<4x16x128xf32, #tpu.memory_space<vmem>>, vector<1x16x128xf32>
    %146 = vector.shape_cast %145 : vector<1x16x128xf32> to vector<16x128xf32>
    %147 = arith.addf %144, %146 : vector<16x128xf32>
    %148 = arith.truncf %147 : vector<16x128xf32> to vector<16x128xbf16>
    %c80_119 = arith.constant 80 : index
    %c0_120 = arith.constant 0 : index
    %149 = vector.load %arg5[%c80_119, %c0_120] : memref<144x128xbf16, #tpu.memory_space<vmem>>, vector<16x128xbf16>
    tpu.vector_store %arg5[%c80_119, %c0_120], %148 {strides = array<i32>} : memref<144x128xbf16, #tpu.memory_space<vmem>>, vector<16x128xbf16>,
    %c3_121 = arith.constant 3 : index
    %c0_122 = arith.constant 0 : index
    %c0_123 = arith.constant 0 : index
    %150 = vector.load %arg1[%c3_121, %c0_122, %c0_123] : memref<4x16x128xf32, #tpu.memory_space<vmem>>, vector<1x16x128xf32>
    %151 = vector.shape_cast %150 : vector<1x16x128xf32> to vector<16x128xf32>
    %c3_124 = arith.constant 3 : index
    %c0_125 = arith.constant 0 : index
    %c0_126 = arith.constant 0 : index
    %152 = vector.load %arg4[%c3_124, %c0_125, %c0_126] : memref<4x16x128xf32, #tpu.memory_space<vmem>>, vector<1x16x128xf32>
    %153 = vector.shape_cast %152 : vector<1x16x128xf32> to vector<16x128xf32>
    %154 = arith.addf %151, %153 : vector<16x128xf32>
    %155 = arith.truncf %154 : vector<16x128xf32> to vector<16x128xbf16>
    %c112_127 = arith.constant 112 : index
    %c0_128 = arith.constant 0 : index
    %156 = vector.load %arg5[%c112_127, %c0_128] : memref<144x128xbf16, #tpu.memory_space<vmem>>, vector<16x128xbf16>
    tpu.vector_store %arg5[%c112_127, %c0_128], %155 {strides = array<i32>} : memref<144x128xbf16, #tpu.memory_space<vmem>>, vector<16x128xbf16>,
    %c15_129 = arith.constant 15 : index
    %c0_130 = arith.constant 0 : index
    %157 = vector.load %arg5[%c15_129, %c0_130] : memref<144x128xbf16, #tpu.memory_space<vmem>>, vector<114x128xbf16>
    %c0_131 = arith.constant 0 : index
    %c0_132 = arith.constant 0 : index
    %158 = vector.load %arg2[%c0_131, %c0_132] : memref<128x384xbf16, #tpu.memory_space<vmem>>, vector<128x384xbf16>
    %cst_133 = arith.constant dense<0.000000e+00> : vector<114x384xf32>
    %159 = tpu.matmul %157, %158, %cst_133 {dimension_numbers = #tpu.dot_dimension_numbers<[1], [0], [0], [1], [0, 0, 1, 1], [], []>} : vector<114x128xbf16>, vector<128x384xbf16>, vector<114x384xf32> -> vector<114x384xf32>
    %160 = vector.extract_strided_slice %159 {offsets = [0, 0], sizes = [112, 128], strides = [1, 1]} : vector<114x384xf32> to vector<112x128xf32>
    %161 = vector.extract_strided_slice %159 {offsets = [1, 128], sizes = [112, 128], strides = [1, 1]} : vector<114x384xf32> to vector<112x128xf32>
    %162 = arith.addf %160, %161 : vector<112x128xf32>
    %163 = vector.extract_strided_slice %159 {offsets = [2, 256], sizes = [112, 128], strides = [1, 1]} : vector<114x384xf32> to vector<112x128xf32>
    %164 = arith.addf %162, %163 : vector<112x128xf32>
    %165 = vector.extract_strided_slice %164 {offsets = [0, 0], sizes = [16, 128], strides = [1, 1]} : vector<112x128xf32> to vector<16x128xf32>
    %166 = arith.addf %165, %12 : vector<16x128xf32>
    %cst_134 = arith.constant 0.000000e+00 : f32
    %167 = vector.broadcast %cst_134 : f32 to vector<16x128xf32>
    %168 = arith.maximumf %166, %167 : vector<16x128xf32>
    %c0_135 = arith.constant 0 : index
    %c0_136 = arith.constant 0 : index
    %c0_137 = arith.constant 0 : index
    %169 = vector.load %arg4[%c0_135, %c0_136, %c0_137] : memref<4x16x128xf32, #tpu.memory_space<vmem>>, vector<1x16x128xf32>
    %170 = vector.shape_cast %169 : vector<1x16x128xf32> to vector<16x128xf32>
    %171 = vector.shape_cast %168 : vector<16x128xf32> to vector<1x16x128xf32>
    tpu.vector_store %arg4[%c0_135, %c0_136, %c0_137], %171 {strides = array<i32>} : memref<4x16x128xf32, #tpu.memory_space<vmem>>, vector<1x16x128xf32>,
    %172 = vector.extract_strided_slice %164 {offsets = [32, 0], sizes = [16, 128], strides = [1, 1]} : vector<112x128xf32> to vector<16x128xf32>
    %173 = arith.addf %172, %12 : vector<16x128xf32>
    %cst_138 = arith.constant 0.000000e+00 : f32
    %174 = vector.broadcast %cst_138 : f32 to vector<16x128xf32>
    %175 = arith.maximumf %173, %174 : vector<16x128xf32>
    %c1_139 = arith.constant 1 : index
    %c0_140 = arith.constant 0 : index
    %c0_141 = arith.constant 0 : index
    %176 = vector.load %arg4[%c1_139, %c0_140, %c0_141] : memref<4x16x128xf32, #tpu.memory_space<vmem>>, vector<1x16x128xf32>
    %177 = vector.shape_cast %176 : vector<1x16x128xf32> to vector<16x128xf32>
    %178 = vector.shape_cast %175 : vector<16x128xf32> to vector<1x16x128xf32>
    tpu.vector_store %arg4[%c1_139, %c0_140, %c0_141], %178 {strides = array<i32>} : memref<4x16x128xf32, #tpu.memory_space<vmem>>, vector<1x16x128xf32>,
    %179 = vector.extract_strided_slice %164 {offsets = [64, 0], sizes = [16, 128], strides = [1, 1]} : vector<112x128xf32> to vector<16x128xf32>
    %180 = arith.addf %179, %12 : vector<16x128xf32>
    %cst_142 = arith.constant 0.000000e+00 : f32
    %181 = vector.broadcast %cst_142 : f32 to vector<16x128xf32>
    %182 = arith.maximumf %180, %181 : vector<16x128xf32>
    %c2_143 = arith.constant 2 : index
    %c0_144 = arith.constant 0 : index
    %c0_145 = arith.constant 0 : index
    %183 = vector.load %arg4[%c2_143, %c0_144, %c0_145] : memref<4x16x128xf32, #tpu.memory_space<vmem>>, vector<1x16x128xf32>
    %184 = vector.shape_cast %183 : vector<1x16x128xf32> to vector<16x128xf32>
    %185 = vector.shape_cast %182 : vector<16x128xf32> to vector<1x16x128xf32>
    tpu.vector_store %arg4[%c2_143, %c0_144, %c0_145], %185 {strides = array<i32>} : memref<4x16x128xf32, #tpu.memory_space<vmem>>, vector<1x16x128xf32>,
    %186 = vector.extract_strided_slice %164 {offsets = [96, 0], sizes = [16, 128], strides = [1, 1]} : vector<112x128xf32> to vector<16x128xf32>
    %187 = arith.addf %186, %12 : vector<16x128xf32>
    %cst_146 = arith.constant 0.000000e+00 : f32
    %188 = vector.broadcast %cst_146 : f32 to vector<16x128xf32>
    %189 = arith.maximumf %187, %188 : vector<16x128xf32>
    %c3_147 = arith.constant 3 : index
    %c0_148 = arith.constant 0 : index
    %c0_149 = arith.constant 0 : index
    %190 = vector.load %arg4[%c3_147, %c0_148, %c0_149] : memref<4x16x128xf32, #tpu.memory_space<vmem>>, vector<1x16x128xf32>
    %191 = vector.shape_cast %190 : vector<1x16x128xf32> to vector<16x128xf32>
    %192 = vector.shape_cast %189 : vector<16x128xf32> to vector<1x16x128xf32>
    tpu.vector_store %arg4[%c3_147, %c0_148, %c0_149], %192 {strides = array<i32>} : memref<4x16x128xf32, #tpu.memory_space<vmem>>, vector<1x16x128xf32>,
    return
  }
  func.func @transform_0(%arg0: i32) -> (i32, i32, i32) {
    %c0_i32 = arith.constant 0 : i32
    %c0_i32_0 = arith.constant 0 : i32
    %c0_i32_1 = arith.constant 0 : i32
    return %arg0, %c0_i32, %c0_i32_0 : i32, i32, i32
  }
  func.func @transform_1(%arg0: i32) -> (i32, i32) {
    %c0_i32 = arith.constant 0 : i32
    %c0_i32_0 = arith.constant 0 : i32
    %c0_i32_1 = arith.constant 0 : i32
    return %c0_i32, %c0_i32_0 : i32, i32
  }
  func.func @transform_2(%arg0: i32) -> (i32, i32) {
    %c0_i32 = arith.constant 0 : i32
    %c0_i32_0 = arith.constant 0 : i32
    %c0_i32_1 = arith.constant 0 : i32
    return %c0_i32, %c0_i32_0 : i32, i32
  }
  func.func @transform_3(%arg0: i32) -> (i32, i32, i32) {
    %c0_i32 = arith.constant 0 : i32
    %c0_i32_0 = arith.constant 0 : i32
    %c0_i32_1 = arith.constant 0 : i32
    return %arg0, %c0_i32, %c0_i32_0 : i32, i32, i32
  }
}

module attributes {stable_mosaic.version = 11 : i64} {
  func.func @_recurrent_conv_kernel(%arg0: i32, %arg1: memref<4x16x128xf32, #tpu.memory_space<vmem>>, %arg2: memref<128x384xbf16, #tpu.memory_space<vmem>>, %arg3: memref<1x128xf32, #tpu.memory_space<vmem>>, %arg4: memref<4x16x128xf32, #tpu.memory_space<vmem>>, %arg5: memref<144x128xbf16, #tpu.memory_space<vmem>>) attributes {dimension_semantics = [#tpu.dimension_semantics<parallel>], iteration_bounds = array<i64: 2>, scalar_prefetch = 0 : i64, scratch_operands = 1 : i64, tpu.core_type = #tpu.core_type<tc>, window_params = [{transform_indices = @transform_0, window_bounds = array<i64: 4, 16, 128>}, {pipeline_mode = #tpu.pipeline_mode<synchronous>, transform_indices = @transform_1, window_bounds = array<i64: 128, 384>}, {pipeline_mode = #tpu.pipeline_mode<synchronous>, transform_indices = @transform_2, window_bounds = array<i64: 1, 128>}, {transform_indices = @transform_3, window_bounds = array<i64: 4, 16, 128>}]} {
    %cst = arith.constant 0.000000e+00 : bf16
    %0 = vector.broadcast %cst : bf16 to vector<16x128xbf16>
    %c0 = arith.constant 0 : index
    %c0_0 = arith.constant 0 : index
    %1 = vector.load %arg5[%c0, %c0_0] : memref<144x128xbf16, #tpu.memory_space<vmem>>, vector<16x128xbf16>
    tpu.vector_store %arg5[%c0, %c0_0], %0 {strides = array<i32>} : memref<144x128xbf16, #tpu.memory_space<vmem>>, vector<16x128xbf16>,
    %cst_1 = arith.constant 0.000000e+00 : bf16
    %2 = vector.broadcast %cst_1 : bf16 to vector<16x128xbf16>
    %c32 = arith.constant 32 : index
    %c0_2 = arith.constant 0 : index
    %3 = vector.load %arg5[%c32, %c0_2] : memref<144x128xbf16, #tpu.memory_space<vmem>>, vector<16x128xbf16>
    tpu.vector_store %arg5[%c32, %c0_2], %2 {strides = array<i32>} : memref<144x128xbf16, #tpu.memory_space<vmem>>, vector<16x128xbf16>,
    %cst_3 = arith.constant 0.000000e+00 : bf16
    %4 = vector.broadcast %cst_3 : bf16 to vector<16x128xbf16>
    %c64 = arith.constant 64 : index
    %c0_4 = arith.constant 0 : index
    %5 = vector.load %arg5[%c64, %c0_4] : memref<144x128xbf16, #tpu.memory_space<vmem>>, vector<16x128xbf16>
    tpu.vector_store %arg5[%c64, %c0_4], %4 {strides = array<i32>} : memref<144x128xbf16, #tpu.memory_space<vmem>>, vector<16x128xbf16>,
    %cst_5 = arith.constant 0.000000e+00 : bf16
    %6 = vector.broadcast %cst_5 : bf16 to vector<16x128xbf16>
    %c96 = arith.constant 96 : index
    %c0_6 = arith.constant 0 : index
    %7 = vector.load %arg5[%c96, %c0_6] : memref<144x128xbf16, #tpu.memory_space<vmem>>, vector<16x128xbf16>
    tpu.vector_store %arg5[%c96, %c0_6], %6 {strides = array<i32>} : memref<144x128xbf16, #tpu.memory_space<vmem>>, vector<16x128xbf16>,
    %cst_7 = arith.constant 0.000000e+00 : bf16
    %8 = vector.broadcast %cst_7 : bf16 to vector<16x128xbf16>
    %c128 = arith.constant 128 : index
    %c0_8 = arith.constant 0 : index
    %9 = vector.load %arg5[%c128, %c0_8] : memref<144x128xbf16, #tpu.memory_space<vmem>>, vector<16x128xbf16>
    tpu.vector_store %arg5[%c128, %c0_8], %8 {strides = array<i32>} : memref<144x128xbf16, #tpu.memory_space<vmem>>, vector<16x128xbf16>,
    %c0_9 = arith.constant 0 : index
    %c0_10 = arith.constant 0 : index
    %10 = vector.load %arg3[%c0_9, %c0_10] : memref<1x128xf32, #tpu.memory_space<vmem>>, vector<1x128xf32>
    %11 = vector.shape_cast %10 : vector<1x128xf32> to vector<1x128xf32>
    %12 = vector.broadcast %11 : vector<1x128xf32> to vector<16x128xf32>
    %c0_11 = arith.constant 0 : index
    %c0_12 = arith.constant 0 : index
    %c0_13 = arith.constant 0 : index
    %13 = vector.load %arg1[%c0_11, %c0_12, %c0_13] : memref<4x16x128xf32, #tpu.memory_space<vmem>>, vector<1x16x128xf32>
    %14 = vector.shape_cast %13 : vector<1x16x128xf32> to vector<16x128xf32>
    %15 = arith.truncf %14 : vector<16x128xf32> to vector<16x128xbf16>
    %c16 = arith.constant 16 : index
    %c0_14 = arith.constant 0 : index
    %16 = vector.load %arg5[%c16, %c0_14] : memref<144x128xbf16, #tpu.memory_space<vmem>>, vector<16x128xbf16>
    tpu.vector_store %arg5[%c16, %c0_14], %15 {strides = array<i32>} : memref<144x128xbf16, #tpu.memory_space<vmem>>, vector<16x128xbf16>,
    %c1 = arith.constant 1 : index
    %c0_15 = arith.constant 0 : index
    %c0_16 = arith.constant 0 : index
    %17 = vector.load %arg1[%c1, %c0_15, %c0_16] : memref<4x16x128xf32, #tpu.memory_space<vmem>>, vector<1x16x128xf32>
    %18 = vector.shape_cast %17 : vector<1x16x128xf32> to vector<16x128xf32>
    %19 = arith.truncf %18 : vector<16x128xf32> to vector<16x128xbf16>
    %c48 = arith.constant 48 : index
    %c0_17 = arith.constant 0 : index
    %20 = vector.load %arg5[%c48, %c0_17] : memref<144x128xbf16, #tpu.memory_space<vmem>>, vector<16x128xbf16>
    tpu.vector_store %arg5[%c48, %c0_17], %19 {strides = array<i32>} : memref<144x128xbf16, #tpu.memory_space<vmem>>, vector<16x128xbf16>,
    %c2 = arith.constant 2 : index
    %c0_18 = arith.constant 0 : index
    %c0_19 = arith.constant 0 : index
    %21 = vector.load %arg1[%c2, %c0_18, %c0_19] : memref<4x16x128xf32, #tpu.memory_space<vmem>>, vector<1x16x128xf32>
    %22 = vector.shape_cast %21 : vector<1x16x128xf32> to vector<16x128xf32>
    %23 = arith.truncf %22 : vector<16x128xf32> to vector<16x128xbf16>
    %c80 = arith.constant 80 : index
    %c0_20 = arith.constant 0 : index
    %24 = vector.load %arg5[%c80, %c0_20] : memref<144x128xbf16, #tpu.memory_space<vmem>>, vector<16x128xbf16>
    tpu.vector_store %arg5[%c80, %c0_20], %23 {strides = array<i32>} : memref<144x128xbf16, #tpu.memory_space<vmem>>, vector<16x128xbf16>,
    %c3 = arith.constant 3 : index
    %c0_21 = arith.constant 0 : index
    %c0_22 = arith.constant 0 : index
    %25 = vector.load %arg1[%c3, %c0_21, %c0_22] : memref<4x16x128xf32, #tpu.memory_space<vmem>>, vector<1x16x128xf32>
    %26 = vector.shape_cast %25 : vector<1x16x128xf32> to vector<16x128xf32>
    %27 = arith.truncf %26 : vector<16x128xf32> to vector<16x128xbf16>
    %c112 = arith.constant 112 : index
    %c0_23 = arith.constant 0 : index
    %28 = vector.load %arg5[%c112, %c0_23] : memref<144x128xbf16, #tpu.memory_space<vmem>>, vector<16x128xbf16>
    tpu.vector_store %arg5[%c112, %c0_23], %27 {strides = array<i32>} : memref<144x128xbf16, #tpu.memory_space<vmem>>, vector<16x128xbf16>,
    %c15 = arith.constant 15 : index
    %c0_24 = arith.constant 0 : index
    %29 = vector.load %arg5[%c15, %c0_24] : memref<144x128xbf16, #tpu.memory_space<vmem>>, vector<114x128xbf16>
    %c0_25 = arith.constant 0 : index
    %c0_26 = arith.constant 0 : index
    %30 = vector.load %arg2[%c0_25, %c0_26] : memref<128x384xbf16, #tpu.memory_space<vmem>>, vector<128x384xbf16>
    %cst_27 = arith.constant dense<0.000000e+00> : vector<114x384xf32>
    %31 = tpu.matmul %29, %30, %cst_27 {dimension_numbers = #tpu.dot_dimension_numbers<[1], [0], [0], [1], [0, 0, 1, 1], [], []>} : vector<114x128xbf16>, vector<128x384xbf16>, vector<114x384xf32> -> vector<114x384xf32>
    %32 = vector.extract_strided_slice %31 {offsets = [0, 0], sizes = [112, 128], strides = [1, 1]} : vector<114x384xf32> to vector<112x128xf32>
    %33 = vector.extract_strided_slice %31 {offsets = [1, 128], sizes = [112, 128], strides = [1, 1]} : vector<114x384xf32> to vector<112x128xf32>
    %34 = arith.addf %32, %33 : vector<112x128xf32>
    %35 = vector.extract_strided_slice %31 {offsets = [2, 256], sizes = [112, 128], strides = [1, 1]} : vector<114x384xf32> to vector<112x128xf32>
    %36 = arith.addf %34, %35 : vector<112x128xf32>
    %37 = vector.extract_strided_slice %36 {offsets = [0, 0], sizes = [16, 128], strides = [1, 1]} : vector<112x128xf32> to vector<16x128xf32>
    %38 = arith.addf %37, %12 : vector<16x128xf32>
    %cst_28 = arith.constant 0.000000e+00 : f32
    %39 = vector.broadcast %cst_28 : f32 to vector<16x128xf32>
    %40 = arith.maximumf %38, %39 : vector<16x128xf32>
    %c0_29 = arith.constant 0 : index
    %c0_30 = arith.constant 0 : index
    %c0_31 = arith.constant 0 : index
    %41 = vector.load %arg4[%c0_29, %c0_30, %c0_31] : memref<4x16x128xf32, #tpu.memory_space<vmem>>, vector<1x16x128xf32>
    %42 = vector.shape_cast %41 : vector<1x16x128xf32> to vector<16x128xf32>
    %43 = vector.shape_cast %40 : vector<16x128xf32> to vector<1x16x128xf32>
    tpu.vector_store %arg4[%c0_29, %c0_30, %c0_31], %43 {strides = array<i32>} : memref<4x16x128xf32, #tpu.memory_space<vmem>>, vector<1x16x128xf32>,
    %44 = vector.extract_strided_slice %36 {offsets = [32, 0], sizes = [16, 128], strides = [1, 1]} : vector<112x128xf32> to vector<16x128xf32>
    %45 = arith.addf %44, %12 : vector<16x128xf32>
    %cst_32 = arith.constant 0.000000e+00 : f32
    %46 = vector.broadcast %cst_32 : f32 to vector<16x128xf32>
    %47 = arith.maximumf %45, %46 : vector<16x128xf32>
    %c1_33 = arith.constant 1 : index
    %c0_34 = arith.constant 0 : index
    %c0_35 = arith.constant 0 : index
    %48 = vector.load %arg4[%c1_33, %c0_34, %c0_35] : memref<4x16x128xf32, #tpu.memory_space<vmem>>, vector<1x16x128xf32>
    %49 = vector.shape_cast %48 : vector<1x16x128xf32> to vector<16x128xf32>
    %50 = vector.shape_cast %47 : vector<16x128xf32> to vector<1x16x128xf32>
    tpu.vector_store %arg4[%c1_33, %c0_34, %c0_35], %50 {strides = array<i32>} : memref<4x16x128xf32, #tpu.memory_space<vmem>>, vector<1x16x128xf32>,
    %51 = vector.extract_strided_slice %36 {offsets = [64, 0], sizes = [16, 128], strides = [1, 1]} : vector<112x128xf32> to vector<16x128xf32>
    %52 = arith.addf %51, %12 : vector<16x128xf32>
    %cst_36 = arith.constant 0.000000e+00 : f32
    %53 = vector.broadcast %cst_36 : f32 to vector<16x128xf32>
    %54 = arith.maximumf %52, %53 : vector<16x128xf32>
    %c2_37 = arith.constant 2 : index
    %c0_38 = arith.constant 0 : index
    %c0_39 = arith.constant 0 : index
    %55 = vector.load %arg4[%c2_37, %c0_38, %c0_39] : memref<4x16x128xf32, #tpu.memory_space<vmem>>, vector<1x16x128xf32>
    %56 = vector.shape_cast %55 : vector<1x16x128xf32> to vector<16x128xf32>
    %57 = vector.shape_cast %54 : vector<16x128xf32> to vector<1x16x128xf32>
    tpu.vector_store %arg4[%c2_37, %c0_38, %c0_39], %57 {strides = array<i32>} : memref<4x16x128xf32, #tpu.memory_space<vmem>>, vector<1x16x128xf32>,
    %58 = vector.extract_strided_slice %36 {offsets = [96, 0], sizes = [16, 128], strides = [1, 1]} : vector<112x128xf32> to vector<16x128xf32>
    %59 = arith.addf %58, %12 : vector<16x128xf32>
    %cst_40 = arith.constant 0.000000e+00 : f32
    %60 = vector.broadcast %cst_40 : f32 to vector<16x128xf32>
    %61 = arith.maximumf %59, %60 : vector<16x128xf32>
    %c3_41 = arith.constant 3 : index
    %c0_42 = arith.constant 0 : index
    %c0_43 = arith.constant 0 : index
    %62 = vector.load %arg4[%c3_41, %c0_42, %c0_43] : memref<4x16x128xf32, #tpu.memory_space<vmem>>, vector<1x16x128xf32>
    %63 = vector.shape_cast %62 : vector<1x16x128xf32> to vector<16x128xf32>
    %64 = vector.shape_cast %61 : vector<16x128xf32> to vector<1x16x128xf32>
    tpu.vector_store %arg4[%c3_41, %c0_42, %c0_43], %64 {strides = array<i32>} : memref<4x16x128xf32, #tpu.memory_space<vmem>>, vector<1x16x128xf32>,
    %c0_i32 = arith.constant 0 : i32
    %c0_44 = arith.constant 0 : index
    %c0_45 = arith.constant 0 : index
    %c0_46 = arith.constant 0 : index
    %65 = vector.load %arg1[%c0_44, %c0_45, %c0_46] : memref<4x16x128xf32, #tpu.memory_space<vmem>>, vector<1x16x128xf32>
    %66 = vector.shape_cast %65 : vector<1x16x128xf32> to vector<16x128xf32>
    %c0_47 = arith.constant 0 : index
    %c0_48 = arith.constant 0 : index
    %c0_49 = arith.constant 0 : index
    %67 = vector.load %arg4[%c0_47, %c0_48, %c0_49] : memref<4x16x128xf32, #tpu.memory_space<vmem>>, vector<1x16x128xf32>
    %68 = vector.shape_cast %67 : vector<1x16x128xf32> to vector<16x128xf32>
    %69 = arith.addf %66, %68 : vector<16x128xf32>
    %70 = arith.truncf %69 : vector<16x128xf32> to vector<16x128xbf16>
    %c16_50 = arith.constant 16 : index
    %c0_51 = arith.constant 0 : index
    %71 = vector.load %arg5[%c16_50, %c0_51] : memref<144x128xbf16, #tpu.memory_space<vmem>>, vector<16x128xbf16>
    tpu.vector_store %arg5[%c16_50, %c0_51], %70 {strides = array<i32>} : memref<144x128xbf16, #tpu.memory_space<vmem>>, vector<16x128xbf16>,
    %c1_52 = arith.constant 1 : index
    %c0_53 = arith.constant 0 : index
    %c0_54 = arith.constant 0 : index
    %72 = vector.load %arg1[%c1_52, %c0_53, %c0_54] : memref<4x16x128xf32, #tpu.memory_space<vmem>>, vector<1x16x128xf32>
    %73 = vector.shape_cast %72 : vector<1x16x128xf32> to vector<16x128xf32>
    %c1_55 = arith.constant 1 : index
    %c0_56 = arith.constant 0 : index
    %c0_57 = arith.constant 0 : index
    %74 = vector.load %arg4[%c1_55, %c0_56, %c0_57] : memref<4x16x128xf32, #tpu.memory_space<vmem>>, vector<1x16x128xf32>
    %75 = vector.shape_cast %74 : vector<1x16x128xf32> to vector<16x128xf32>
    %76 = arith.addf %73, %75 : vector<16x128xf32>
    %77 = arith.truncf %76 : vector<16x128xf32> to vector<16x128xbf16>
    %c48_58 = arith.constant 48 : index
    %c0_59 = arith.constant 0 : index
    %78 = vector.load %arg5[%c48_58, %c0_59] : memref<144x128xbf16, #tpu.memory_space<vmem>>, vector<16x128xbf16>
    tpu.vector_store %arg5[%c48_58, %c0_59], %77 {strides = array<i32>} : memref<144x128xbf16, #tpu.memory_space<vmem>>, vector<16x128xbf16>,
    %c2_60 = arith.constant 2 : index
    %c0_61 = arith.constant 0 : index
    %c0_62 = arith.constant 0 : index
    %79 = vector.load %arg1[%c2_60, %c0_61, %c0_62] : memref<4x16x128xf32, #tpu.memory_space<vmem>>, vector<1x16x128xf32>
    %80 = vector.shape_cast %79 : vector<1x16x128xf32> to vector<16x128xf32>
    %c2_63 = arith.constant 2 : index
    %c0_64 = arith.constant 0 : index
    %c0_65 = arith.constant 0 : index
    %81 = vector.load %arg4[%c2_63, %c0_64, %c0_65] : memref<4x16x128xf32, #tpu.memory_space<vmem>>, vector<1x16x128xf32>
    %82 = vector.shape_cast %81 : vector<1x16x128xf32> to vector<16x128xf32>
    %83 = arith.addf %80, %82 : vector<16x128xf32>
    %84 = arith.truncf %83 : vector<16x128xf32> to vector<16x128xbf16>
    %c80_66 = arith.constant 80 : index
    %c0_67 = arith.constant 0 : index
    %85 = vector.load %arg5[%c80_66, %c0_67] : memref<144x128xbf16, #tpu.memory_space<vmem>>, vector<16x128xbf16>
    tpu.vector_store %arg5[%c80_66, %c0_67], %84 {strides = array<i32>} : memref<144x128xbf16, #tpu.memory_space<vmem>>, vector<16x128xbf16>,
    %c3_68 = arith.constant 3 : index
    %c0_69 = arith.constant 0 : index
    %c0_70 = arith.constant 0 : index
    %86 = vector.load %arg1[%c3_68, %c0_69, %c0_70] : memref<4x16x128xf32, #tpu.memory_space<vmem>>, vector<1x16x128xf32>
    %87 = vector.shape_cast %86 : vector<1x16x128xf32> to vector<16x128xf32>
    %c3_71 = arith.constant 3 : index
    %c0_72 = arith.constant 0 : index
    %c0_73 = arith.constant 0 : index
    %88 = vector.load %arg4[%c3_71, %c0_72, %c0_73] : memref<4x16x128xf32, #tpu.memory_space<vmem>>, vector<1x16x128xf32>
    %89 = vector.shape_cast %88 : vector<1x16x128xf32> to vector<16x128xf32>
    %90 = arith.addf %87, %89 : vector<16x128xf32>
    %91 = arith.truncf %90 : vector<16x128xf32> to vector<16x128xbf16>
    %c112_74 = arith.constant 112 : index
    %c0_75 = arith.constant 0 : index
    %92 = vector.load %arg5[%c112_74, %c0_75] : memref<144x128xbf16, #tpu.memory_space<vmem>>, vector<16x128xbf16>
    tpu.vector_store %arg5[%c112_74, %c0_75], %91 {strides = array<i32>} : memref<144x128xbf16, #tpu.memory_space<vmem>>, vector<16x128xbf16>,
    %c15_76 = arith.constant 15 : index
    %c0_77 = arith.constant 0 : index
    %93 = vector.load %arg5[%c15_76, %c0_77] : memref<144x128xbf16, #tpu.memory_space<vmem>>, vector<114x128xbf16>
    %c0_78 = arith.constant 0 : index
    %c0_79 = arith.constant 0 : index
    %94 = vector.load %arg2[%c0_78, %c0_79] : memref<128x384xbf16, #tpu.memory_space<vmem>>, vector<128x384xbf16>
    %cst_80 = arith.constant dense<0.000000e+00> : vector<114x384xf32>
    %95 = tpu.matmul %93, %94, %cst_80 {dimension_numbers = #tpu.dot_dimension_numbers<[1], [0], [0], [1], [0, 0, 1, 1], [], []>} : vector<114x128xbf16>, vector<128x384xbf16>, vector<114x384xf32> -> vector<114x384xf32>
    %96 = vector.extract_strided_slice %95 {offsets = [0, 0], sizes = [112, 128], strides = [1, 1]} : vector<114x384xf32> to vector<112x128xf32>
    %97 = vector.extract_strided_slice %95 {offsets = [1, 128], sizes = [112, 128], strides = [1, 1]} : vector<114x384xf32> to vector<112x128xf32>
    %98 = arith.addf %96, %97 : vector<112x128xf32>
    %99 = vector.extract_strided_slice %95 {offsets = [2, 256], sizes = [112, 128], strides = [1, 1]} : vector<114x384xf32> to vector<112x128xf32>
    %100 = arith.addf %98, %99 : vector<112x128xf32>
    %101 = vector.extract_strided_slice %100 {offsets = [0, 0], sizes = [16, 128], strides = [1, 1]} : vector<112x128xf32> to vector<16x128xf32>
    %102 = arith.addf %101, %12 : vector<16x128xf32>
    %cst_81 = arith.constant 0.000000e+00 : f32
    %103 = vector.broadcast %cst_81 : f32 to vector<16x128xf32>
    %104 = arith.maximumf %102, %103 : vector<16x128xf32>
    %c0_82 = arith.constant 0 : index
    %c0_83 = arith.constant 0 : index
    %c0_84 = arith.constant 0 : index
    %105 = vector.load %arg4[%c0_82, %c0_83, %c0_84] : memref<4x16x128xf32, #tpu.memory_space<vmem>>, vector<1x16x128xf32>
    %106 = vector.shape_cast %105 : vector<1x16x128xf32> to vector<16x128xf32>
    %107 = vector.shape_cast %104 : vector<16x128xf32> to vector<1x16x128xf32>
    tpu.vector_store %arg4[%c0_82, %c0_83, %c0_84], %107 {strides = array<i32>} : memref<4x16x128xf32, #tpu.memory_space<vmem>>, vector<1x16x128xf32>,
    %108 = vector.extract_strided_slice %100 {offsets = [32, 0], sizes = [16, 128], strides = [1, 1]} : vector<112x128xf32> to vector<16x128xf32>
    %109 = arith.addf %108, %12 : vector<16x128xf32>
    %cst_85 = arith.constant 0.000000e+00 : f32
    %110 = vector.broadcast %cst_85 : f32 to vector<16x128xf32>
    %111 = arith.maximumf %109, %110 : vector<16x128xf32>
    %c1_86 = arith.constant 1 : index
    %c0_87 = arith.constant 0 : index
    %c0_88 = arith.constant 0 : index
    %112 = vector.load %arg4[%c1_86, %c0_87, %c0_88] : memref<4x16x128xf32, #tpu.memory_space<vmem>>, vector<1x16x128xf32>
    %113 = vector.shape_cast %112 : vector<1x16x128xf32> to vector<16x128xf32>
    %114 = vector.shape_cast %111 : vector<16x128xf32> to vector<1x16x128xf32>
    tpu.vector_store %arg4[%c1_86, %c0_87, %c0_88], %114 {strides = array<i32>} : memref<4x16x128xf32, #tpu.memory_space<vmem>>, vector<1x16x128xf32>,
    %115 = vector.extract_strided_slice %100 {offsets = [64, 0], sizes = [16, 128], strides = [1, 1]} : vector<112x128xf32> to vector<16x128xf32>
    %116 = arith.addf %115, %12 : vector<16x128xf32>
    %cst_89 = arith.constant 0.000000e+00 : f32
    %117 = vector.broadcast %cst_89 : f32 to vector<16x128xf32>
    %118 = arith.maximumf %116, %117 : vector<16x128xf32>
    %c2_90 = arith.constant 2 : index
    %c0_91 = arith.constant 0 : index
    %c0_92 = arith.constant 0 : index
    %119 = vector.load %arg4[%c2_90, %c0_91, %c0_92] : memref<4x16x128xf32, #tpu.memory_space<vmem>>, vector<1x16x128xf32>
    %120 = vector.shape_cast %119 : vector<1x16x128xf32> to vector<16x128xf32>
    %121 = vector.shape_cast %118 : vector<16x128xf32> to vector<1x16x128xf32>
    tpu.vector_store %arg4[%c2_90, %c0_91, %c0_92], %121 {strides = array<i32>} : memref<4x16x128xf32, #tpu.memory_space<vmem>>, vector<1x16x128xf32>,
    %122 = vector.extract_strided_slice %100 {offsets = [96, 0], sizes = [16, 128], strides = [1, 1]} : vector<112x128xf32> to vector<16x128xf32>
    %123 = arith.addf %122, %12 : vector<16x128xf32>
    %cst_93 = arith.constant 0.000000e+00 : f32
    %124 = vector.broadcast %cst_93 : f32 to vector<16x128xf32>
    %125 = arith.maximumf %123, %124 : vector<16x128xf32>
    %c3_94 = arith.constant 3 : index
    %c0_95 = arith.constant 0 : index
    %c0_96 = arith.constant 0 : index
    %126 = vector.load %arg4[%c3_94, %c0_95, %c0_96] : memref<4x16x128xf32, #tpu.memory_space<vmem>>, vector<1x16x128xf32>
    %127 = vector.shape_cast %126 : vector<1x16x128xf32> to vector<16x128xf32>
    %128 = vector.shape_cast %125 : vector<16x128xf32> to vector<1x16x128xf32>
    tpu.vector_store %arg4[%c3_94, %c0_95, %c0_96], %128 {strides = array<i32>} : memref<4x16x128xf32, #tpu.memory_space<vmem>>, vector<1x16x128xf32>,
    %c1_i32 = arith.constant 1 : i32
    %c0_97 = arith.constant 0 : index
    %c0_98 = arith.constant 0 : index
    %c0_99 = arith.constant 0 : index
    %129 = vector.load %arg1[%c0_97, %c0_98, %c0_99] : memref<4x16x128xf32, #tpu.memory_space<vmem>>, vector<1x16x128xf32>
    %130 = vector.shape_cast %129 : vector<1x16x128xf32> to vector<16x128xf32>
    %c0_100 = arith.constant 0 : index
    %c0_101 = arith.constant 0 : index
    %c0_102 = arith.constant 0 : index
    %131 = vector.load %arg4[%c0_100, %c0_101, %c0_102] : memref<4x16x128xf32, #tpu.memory_space<vmem>>, vector<1x16x128xf32>
    %132 = vector.shape_cast %131 : vector<1x16x128xf32> to vector<16x128xf32>
    %133 = arith.addf %130, %132 : vector<16x128xf32>
    %134 = arith.truncf %133 : vector<16x128xf32> to vector<16x128xbf16>
    %c16_103 = arith.constant 16 : index
    %c0_104 = arith.constant 0 : index
    %135 = vector.load %arg5[%c16_103, %c0_104] : memref<144x128xbf16, #tpu.memory_space<vmem>>, vector<16x128xbf16>
    tpu.vector_store %arg5[%c16_103, %c0_104], %134 {strides = array<i32>} : memref<144x128xbf16, #tpu.memory_space<vmem>>, vector<16x128xbf16>,
    %c1_105 = arith.constant 1 : index
    %c0_106 = arith.constant 0 : index
    %c0_107 = arith.constant 0 : index
    %136 = vector.load %arg1[%c1_105, %c0_106, %c0_107] : memref<4x16x128xf32, #tpu.memory_space<vmem>>, vector<1x16x128xf32>
    %137 = vector.shape_cast %136 : vector<1x16x128xf32> to vector<16x128xf32>
    %c1_108 = arith.constant 1 : index
    %c0_109 = arith.constant 0 : index
    %c0_110 = arith.constant 0 : index
    %138 = vector.load %arg4[%c1_108, %c0_109, %c0_110] : memref<4x16x128xf32, #tpu.memory_space<vmem>>, vector<1x16x128xf32>
    %139 = vector.shape_cast %138 : vector<1x16x128xf32> to vector<16x128xf32>
    %140 = arith.addf %137, %139 : vector<16x128xf32>
    %141 = arith.truncf %140 : vector<16x128xf32> to vector<16x128xbf16>
    %c48_111 = arith.constant 48 : index
    %c0_112 = arith.constant 0 : index
    %142 = vector.load %arg5[%c48_111, %c0_112] : memref<144x128xbf16, #tpu.memory_space<vmem>>, vector<16x128xbf16>
    tpu.vector_store %arg5[%c48_111, %c0_112], %141 {strides = array<i32>} : memref<144x128xbf16, #tpu.memory_space<vmem>>, vector<16x128xbf16>,
    %c2_113 = arith.constant 2 : index
    %c0_114 = arith.constant 0 : index
    %c0_115 = arith.constant 0 : index
    %143 = vector.load %arg1[%c2_113, %c0_114, %c0_115] : memref<4x16x128xf32, #tpu.memory_space<vmem>>, vector<1x16x128xf32>
    %144 = vector.shape_cast %143 : vector<1x16x128xf32> to vector<16x128xf32>
    %c2_116 = arith.constant 2 : index
    %c0_117 = arith.constant 0 : index
    %c0_118 = arith.constant 0 : index
    %145 = vector.load %arg4[%c2_116, %c0_117, %c0_118] : memref<4x16x128xf32, #tpu.memory_space<vmem>>, vector<1x16x128xf32>
    %146 = vector.shape_cast %145 : vector<1x16x128xf32> to vector<16x128xf32>
    %147 = arith.addf %144, %146 : vector<16x128xf32>
    %148 = arith.truncf %147 : vector<16x128xf32> to vector<16x128xbf16>
    %c80_119 = arith.constant 80 : index
    %c0_120 = arith.constant 0 : index
    %149 = vector.load %arg5[%c80_119, %c0_120] : memref<144x128xbf16, #tpu.memory_space<vmem>>, vector<16x128xbf16>
    tpu.vector_store %arg5[%c80_119, %c0_120], %148 {strides = array<i32>} : memref<144x128xbf16, #tpu.memory_space<vmem>>, vector<16x128xbf16>,
    %c3_121 = arith.constant 3 : index
    %c0_122 = arith.constant 0 : index
    %c0_123 = arith.constant 0 : index
    %150 = vector.load %arg1[%c3_121, %c0_122, %c0_123] : memref<4x16x128xf32, #tpu.memory_space<vmem>>, vector<1x16x128xf32>
    %151 = vector.shape_cast %150 : vector<1x16x128xf32> to vector<16x128xf32>
    %c3_124 = arith.constant 3 : index
    %c0_125 = arith.constant 0 : index
    %c0_126 = arith.constant 0 : index
    %152 = vector.load %arg4[%c3_124, %c0_125, %c0_126] : memref<4x16x128xf32, #tpu.memory_space<vmem>>, vector<1x16x128xf32>
    %153 = vector.shape_cast %152 : vector<1x16x128xf32> to vector<16x128xf32>
    %154 = arith.addf %151, %153 : vector<16x128xf32>
    %155 = arith.truncf %154 : vector<16x128xf32> to vector<16x128xbf16>
    %c112_127 = arith.constant 112 : index
    %c0_128 = arith.constant 0 : index
    %156 = vector.load %arg5[%c112_127, %c0_128] : memref<144x128xbf16, #tpu.memory_space<vmem>>, vector<16x128xbf16>
    tpu.vector_store %arg5[%c112_127, %c0_128], %155 {strides = array<i32>} : memref<144x128xbf16, #tpu.memory_space<vmem>>, vector<16x128xbf16>,
    %c15_129 = arith.constant 15 : index
    %c0_130 = arith.constant 0 : index
    %157 = vector.load %arg5[%c15_129, %c0_130] : memref<144x128xbf16, #tpu.memory_space<vmem>>, vector<114x128xbf16>
    %c0_131 = arith.constant 0 : index
    %c0_132 = arith.constant 0 : index
    %158 = vector.load %arg2[%c0_131, %c0_132] : memref<128x384xbf16, #tpu.memory_space<vmem>>, vector<128x384xbf16>
    %cst_133 = arith.constant dense<0.000000e+00> : vector<114x384xf32>
    %159 = tpu.matmul %157, %158, %cst_133 {dimension_numbers = #tpu.dot_dimension_numbers<[1], [0], [0], [1], [0, 0, 1, 1], [], []>} : vector<114x128xbf16>, vector<128x384xbf16>, vector<114x384xf32> -> vector<114x384xf32>
    %160 = vector.extract_strided_slice %159 {offsets = [0, 0], sizes = [112, 128], strides = [1, 1]} : vector<114x384xf32> to vector<112x128xf32>
    %161 = vector.extract_strided_slice %159 {offsets = [1, 128], sizes = [112, 128], strides = [1, 1]} : vector<114x384xf32> to vector<112x128xf32>
    %162 = arith.addf %160, %161 : vector<112x128xf32>
    %163 = vector.extract_strided_slice %159 {offsets = [2, 256], sizes = [112, 128], strides = [1, 1]} : vector<114x384xf32> to vector<112x128xf32>
    %164 = arith.addf %162, %163 : vector<112x128xf32>
    %165 = vector.extract_strided_slice %164 {offsets = [0, 0], sizes = [16, 128], strides = [1, 1]} : vector<112x128xf32> to vector<16x128xf32>
    %166 = arith.addf %165, %12 : vector<16x128xf32>
    %cst_134 = arith.constant 0.000000e+00 : f32
    %167 = vector.broadcast %cst_134 : f32 to vector<16x128xf32>
    %168 = arith.maximumf %166, %167 : vector<16x128xf32>
    %c0_135 = arith.constant 0 : index
    %c0_136 = arith.constant 0 : index
    %c0_137 = arith.constant 0 : index
    %169 = vector.load %arg4[%c0_135, %c0_136, %c0_137] : memref<4x16x128xf32, #tpu.memory_space<vmem>>, vector<1x16x128xf32>
    %170 = vector.shape_cast %169 : vector<1x16x128xf32> to vector<16x128xf32>
    %171 = vector.shape_cast %168 : vector<16x128xf32> to vector<1x16x128xf32>
    tpu.vector_store %arg4[%c0_135, %c0_136, %c0_137], %171 {strides = array<i32>} : memref<4x16x128xf32, #tpu.memory_space<vmem>>, vector<1x16x128xf32>,
    %172 = vector.extract_strided_slice %164 {offsets = [32, 0], sizes = [16, 128], strides = [1, 1]} : vector<112x128xf32> to vector<16x128xf32>
    %173 = arith.addf %172, %12 : vector<16x128xf32>
    %cst_138 = arith.constant 0.000000e+00 : f32
    %174 = vector.broadcast %cst_138 : f32 to vector<16x128xf32>
    %175 = arith.maximumf %173, %174 : vector<16x128xf32>
    %c1_139 = arith.constant 1 : index
    %c0_140 = arith.constant 0 : index
    %c0_141 = arith.constant 0 : index
    %176 = vector.load %arg4[%c1_139, %c0_140, %c0_141] : memref<4x16x128xf32, #tpu.memory_space<vmem>>, vector<1x16x128xf32>
    %177 = vector.shape_cast %176 : vector<1x16x128xf32> to vector<16x128xf32>
    %178 = vector.shape_cast %175 : vector<16x128xf32> to vector<1x16x128xf32>
    tpu.vector_store %arg4[%c1_139, %c0_140, %c0_141], %178 {strides = array<i32>} : memref<4x16x128xf32, #tpu.memory_space<vmem>>, vector<1x16x128xf32>,
    %179 = vector.extract_strided_slice %164 {offsets = [64, 0], sizes = [16, 128], strides = [1, 1]} : vector<112x128xf32> to vector<16x128xf32>
    %180 = arith.addf %179, %12 : vector<16x128xf32>
    %cst_142 = arith.constant 0.000000e+00 : f32
    %181 = vector.broadcast %cst_142 : f32 to vector<16x128xf32>
    %182 = arith.maximumf %180, %181 : vector<16x128xf32>
    %c2_143 = arith.constant 2 : index
    %c0_144 = arith.constant 0 : index
    %c0_145 = arith.constant 0 : index
    %183 = vector.load %arg4[%c2_143, %c0_144, %c0_145] : memref<4x16x128xf32, #tpu.memory_space<vmem>>, vector<1x16x128xf32>
    %184 = vector.shape_cast %183 : vector<1x16x128xf32> to vector<16x128xf32>
    %185 = vector.shape_cast %182 : vector<16x128xf32> to vector<1x16x128xf32>
    tpu.vector_store %arg4[%c2_143, %c0_144, %c0_145], %185 {strides = array<i32>} : memref<4x16x128xf32, #tpu.memory_space<vmem>>, vector<1x16x128xf32>,
    %186 = vector.extract_strided_slice %164 {offsets = [96, 0], sizes = [16, 128], strides = [1, 1]} : vector<112x128xf32> to vector<16x128xf32>
    %187 = arith.addf %186, %12 : vector<16x128xf32>
    %cst_146 = arith.constant 0.000000e+00 : f32
    %188 = vector.broadcast %cst_146 : f32 to vector<16x128xf32>
    %189 = arith.maximumf %187, %188 : vector<16x128xf32>
    %c3_147 = arith.constant 3 : index
    %c0_148 = arith.constant 0 : index
    %c0_149 = arith.constant 0 : index
    %190 = vector.load %arg4[%c3_147, %c0_148, %c0_149] : memref<4x16x128xf32, #tpu.memory_space<vmem>>, vector<1x16x128xf32>
    %191 = vector.shape_cast %190 : vector<1x16x128xf32> to vector<16x128xf32>
    %192 = vector.shape_cast %189 : vector<16x128xf32> to vector<1x16x128xf32>
    tpu.vector_store %arg4[%c3_147, %c0_148, %c0_149], %192 {strides = array<i32>} : memref<4x16x128xf32, #tpu.memory_space<vmem>>, vector<1x16x128xf32>,
    return
  }
  func.func @transform_0(%arg0: i32) -> (i32, i32, i32) {
    %c0_i32 = arith.constant 0 : i32
    %c0_i32_0 = arith.constant 0 : i32
    %c0_i32_1 = arith.constant 0 : i32
    return %arg0, %c0_i32, %c0_i32_0 : i32, i32, i32
  }
  func.func @transform_1(%arg0: i32) -> (i32, i32) {
    %c0_i32 = arith.constant 0 : i32
    %c0_i32_0 = arith.constant 0 : i32
    %c0_i32_1 = arith.constant 0 : i32
    return %c0_i32, %c0_i32_0 : i32, i32
  }
  func.func @transform_2(%arg0: i32) -> (i32, i32) {
    %c0_i32 = arith.constant 0 : i32
    %c0_i32_0 = arith.constant 0 : i32
    %c0_i32_1 = arith.constant 0 : i32
    return %c0_i32, %c0_i32_0 : i32, i32
  }
  func.func @transform_3(%arg0: i32) -> (i32, i32, i32) {
    %c0_i32 = arith.constant 0 : i32
    %c0_i32_0 = arith.constant 0 : i32
    %c0_i32_1 = arith.constant 0 : i32
    return %arg0, %c0_i32, %c0_i32_0 : i32, i32, i32
  }
}

</mosaic_0001>

<bundles_post_ra>
// kernel: tpu_custom_call.1
= control target key start
LH: loop header
LB: loop body
LE: loop exit
PB: predicated region body
PF: predicated region fallthrough
CT: control target
= control target key end

     0   :  { %8 = vsyncpa [#allocation4], 0  ;;  %s3147_s0 = inlined_call_operand.hbm [shape: f32[8,16,128], index: 0, kind: input, shape index: {}]   ;;  %s3148_s1 = inlined_call_operand.hbm [shape: bf16[128,384], index: 1, kind: input, shape index: {}]   ;;  %s3149_s2 = inlined_call_operand.vmem [shape: f32[1,128], index: 2, kind: input, shape index: {}]   ;;  %s3150_s3 = inlined_call_operand.hbm [shape: f32[8,16,128], index: 3, kind: output, shape index: {}]  }
   0x1   :  { %10 = vsyncpa [#allocation4 + $0x1], 0 }
   0x2   :  { %11 = vsyncpa [#allocation7], 0 }
   0x3   :  { %12 = vsyncpa [#allocation5], 0 }
   0x4   :  { %14 = vsyncpa [#allocation5 + $0x1], 0  ;;  %s2657_s12 = smov 0   ;;  %s2659_s13 = smov 0  }
   0x5   :  { %s2661_s14 = smov 0   ;;  %s2663_s15 = smov 0  }
   0x6 LB: > { %s2678_s16 = sadd.s32 4294967295, %s2625_s15   ;;  %s2072_s17 = sadd.s32 4294967294, %s2625_s15   ;;  %s2625_s15 = sphi %s2663_s15, %s3170_s15   ;;  %s2621_s14 = sphi %s2661_s14, %s3169_s14   ;;  %s2617_s13 = sphi %s2659_s13, %s3168_s13   ;;  %s2613_s12 = sphi %s2657_s12, %s3167_s12  }
   0x7   : > { %p40_p0 = scmp.ne.s32.totalorder %s2617_s13, %s2613_s12  ;;  %p3151_p1 = scmp.eq.s32.totalorder %s2678_s16, 0 }
   0x8   : > { %p112_p3 = scmp.eq.s32.totalorder %s2072_s17, 1  ;;  %p2073_p5 = scmp.ge.s32.totalorder %s2625_s15, 1 }
   0x9   : > { %p2687_p4 = por %p3151_p1, %p40_p0  ;;  %p119_p7 = scmp.lt.s32.totalorder %s2625_s15, 3 }
   0xa   : > { %p2692_p6 = por %p112_p3, %p40_p0  ;;  %s2627_s21 = smov [#allocation6]  }
   0xb   : > { %s3154_s18 = scalar_select %p2687_p4, 1, 0 }
   0xc   : > { %s3155_s19 = scalar_select %p2692_p6, 1, 0 }
   0xd   : > { %p2697_p8 = pnand %p2073_p5, %p119_p7  ;;  %s131_s22 = sshll.u32 %s2627_s21, 4  ;;  %s2701_s22 = int_to_ptr.vmem [resolvable:$true] %s131_s22 }
   0xe   : > { %s2713_s24 = sadd.s32 1, %s2625_s15   ;;  %s27_s25 = sadd.s32 1, %s2621_s14 }
   0xf   : > { %s3156_s20 = scalar_select %p2697_p8, 1, 0 }
  0x10   : > { %p2367_p9 = pneg %p2697_p8  ;;  %s24_s26 = ssub.s32 %s2625_s15, %s2713_s24 }
  0x11   : > { %s2497_s29 = scalar_lea.hbm %s3148_s1, 3072 }
  0x12   : > { %p2708_p11 = pnand %p2367_p9, %p3151_p1  ;;  %p2498_p12 = scmp.ne.s32.totalorder %s3148_s1, %s2497_s29 }
  0x13   : > { %p2504_p5 = scmp.lt.u32.totalorder %s2497_s29, %s3148_s1 }
  0x14   : > { %p2499_p13 = pneg %p2708_p11 }
  0x16   : > { %p2500_p0 = pnand %p2499_p13, %p2498_p12 }
  0x18   : > { %p2501_p3 = pneg %p2500_p0 }
  0x1a   : > { %p2506_p7 = pnand %p2504_p5, %p2501_p3 }
  0x1c   : > { %2509 = shalt.err (!%p2506_p7)
}
  0x1d   : > { %s2510_s7 = scalar_lea.vmem %s2701_s22, 3072  ;;  %p2518_p2 = scmp.lt.s32.totalorder %s2701_s22, %s2701_s22 }
  0x1e   : > { %p2511_p9 = scmp.ne.s32.totalorder %s2701_s22, %s2510_s7  ;;  %p2519_p6 = scmp.lt.s32.totalorder %s2510_s7, %s2510_s7 }
  0x20   : > { %p2513_p10 = pnand %p2511_p9, %p2499_p13  ;;  %p2520_p4 = por %p2519_p6, %p2518_p2 }
  0x22   : > { %p2514_p1 = pneg %p2513_p10 }
  0x24   : > { %p2521_p8 = pnand %p2520_p4, %p2514_p1 }
  0x26   : > { %2524 = shalt.err (!%p2521_p8)
}
  0x27   : > { %s2628_s8 = smov 192   ;;  %s2629_s9 = smov 12  }
  0x28   : > { %2370 = dma.hbm_to_vmem [thread:$0]  (!%p2708_p11), %s3148_s1, 3072, %s2701_s22, [#allocation7], %s2628_s8, %s2628_s8, %s2629_s9  }
  0x29   : > { %p25_p2 = scmp.eq.s32.totalorder %s24_s26, 0  ;;  %p34_p1 = scmp.ne.s32.totalorder %s2621_s14, %s2617_s13 }
  0x2a   : > { %p35_p4 = scmp.eq.s32.totalorder %s2625_s15, 0  ;;  %p2380_p6 = scmp.lt.s32.totalorder %s2625_s15, 2 }
  0x2b   : > { %s2744_s17 = scalar_select %p25_p2, %s2621_s14, %s27_s25  }
  0x2c   : > { %p36_p8 = por %p35_p4, %p34_p1  ;;  %p3158_p10 = scmp.eq.s32.totalorder %s2678_s16, 1 }
  0x2d   : > { %s148_s27 = sand.u32 1, %s2621_s14   ;;  %s2212_s28 = sshll.u32 %s2625_s15, 10 }
  0x2e   : > { %p2748_p12 = por %p3158_p10, %p34_p1  ;;  %s2076_s29 = sshll.u32 %s148_s27, 6 }
  0x2f   : > { %s2757_s4 = scalar_lea.hbm %s3147_s0, %s2212_s28  ;;  %s152_s22 = scalar_lea.vmem [#allocation3], %s2076_s29 }
  0x30   : > { %s160_s25 = sshll.u32 %s152_s22, 4  ;;  %p2759_p11 = pnand %p2380_p6, %p36_p8  ;;  %s2763_s25 = int_to_ptr.vmem [resolvable:$true] %s160_s25 }
  0x31   : > { %s2765_s5 = scalar_lea.sflag [#allocation4], %s148_s27  ;;  %s2525_s6 = scalar_lea.hbm %s2757_s4, 1024 }
  0x32   : > { %p2526_p13 = scmp.ne.s32.totalorder %s2757_s4, %s2525_s6  ;;  %p2527_p0 = pneg %p2759_p11 }
  0x33   : > { %s2530_s9 = scalar_lea.hbm %s3147_s0, 2048  ;;  %p2531_p7 = scmp.lt.u32.totalorder %s2757_s4, %s3147_s0 }
  0x34   : > { %p2528_p3 = pnand %p2527_p0, %p2526_p13  ;;  %p2532_p9 = scmp.lt.u32.totalorder %s2530_s9, %s2525_s6 }
  0x35   : > { %p2534_p1 = scmp.lt.u32.totalorder %s2525_s6, %s2757_s4 }
  0x36   : > { %p2529_p5 = pneg %p2528_p3  ;;  %p2533_p2 = por %p2532_p9, %p2531_p7 }
  0x38   : > { %p2535_p4 = por %p2534_p1, %p2533_p2 }
  0x3a   : > { %p2536_p6 = pnand %p2535_p4, %p2529_p5 }
  0x3c   : > { %2539 = shalt.err (!%p2536_p6)
}
  0x3d   : > { %s2540_s27 = scalar_lea.vmem %s2763_s25, 1024  ;;  %s2630_s28 = smov [#allocation3]  }
  0x3e   : > { %p2541_p8 = scmp.ne.s32.totalorder %s2763_s25, %s2540_s27  ;;  %s2545_s29 = sshll.u32 %s2630_s28, 4  ;;  %s2546_s29 = int_to_ptr.vmem [resolvable:$false] %s2545_s29 }
  0x3f   : > { %s2547_s23 = scalar_lea.vmem %s2546_s29, 2048  ;;  %p2548_p3 = scmp.lt.s32.totalorder %s2763_s25, %s2546_s29 }
  0x40   : > { %p2543_p10 = pnand %p2541_p8, %p2527_p0  ;;  %p2549_p7 = scmp.lt.s32.totalorder %s2547_s23, %s2540_s27 }
  0x42   : > { %p2544_p13 = pneg %p2543_p10  ;;  %p2550_p9 = por %p2549_p7, %p2548_p3 }
  0x44   : > { %p2551_p2 = pnand %p2550_p9, %p2544_p13 }
  0x46   : > { %2554 = shalt.err (!%p2551_p2)
}
  0x47   : > { %s2631_s30 = smov 128   ;;  %s2632_s22 = smov 8  }
  0x48   : > { %2374 = dma.hbm_to_vmem [thread:$0]  (!%p2759_p11), %s2757_s4, 1024, %s2763_s25, %s2765_s5, %s2631_s30, %s2631_s30, %s2632_s22  }
  0x49   : > { %p3161_p0 = scmp.ne.s32.totalorder %s3156_s20, 0 }
  0x4a   : > { %s2796_s6 = sand.u32 (!%p3161_p0), 1, %s2617_s13   ;;  %p3162_p5 = scmp.ne.s32.totalorder (!%p3161_p0), %s3154_s18, 0 }
  0x4b   : > { %172 = sbr.rel (%p3161_p0) target bundleno = 900 (0x384), region = 32  ;;  %s2081_s7 = sshll.u32 (!%p3161_p0), %s2796_s6, 6 }
  0x4c   : > { %s175_s8 = scalar_lea.sflag (!%p3161_p0), [#allocation4], %s2796_s6  ;;  %s2802_s9 = scalar_lea.vmem (!%p3161_p0), [#allocation3], %s2081_s7 }
  0x52   : > { %2600 = dma.done.wait (%p3162_p5), %s175_s8, 1024  }
  0x53   : > { %2602 = vsyncadd (%p3162_p5), %s175_s8, 4294966272  ;;  %p3163_p11 = scmp.eq.s32.totalorder %s2678_s16, 0 }
  0x55   : > { %2604 = dma.done.wait (%p3163_p11), [#allocation7], 3072   ;;  %p3164_p1 = pmov %p3163_p11 }
  0x56   : > { %v2633_v0 = vmov 0   ;;  %v2815_v1 = vld [vmem:[#allocation6 + $0x4] ss:$12 sps:$4 sm:$0xff]   ;;  %v2817_v2 = vld [vmem:[#allocation6] ss:$12 sps:$4 sm:$0xff]   ;;  %v2864_v26 = vld [vmem:[%s2802_s9 + $0x18] sm:$0xff] }
  0x57   : > { %2606 = vsyncadd (%p3164_p1), [#allocation7], 4294964224  ;;  %513 = vmatprep.mubr.bf16.mxu0 %v2633_v0  ;;  %208 = vst [vmem:[#allocation2] sm:$0xff] %v2633_v0  ;;  %481 = vmatprep.subr.bf16.mxu0 %v2815_v1  ;;  %v2426_v3 = vld [vmem:[#allocation6 + $0x8] ss:$12 sps:$4 sm:$0xff]   ;;  %v2851_v20 = vld [vmem:[%s2802_s9] sm:$0xff] }
  0x58   : > { %212 = vst [vmem:[#allocation2 + $0x40] sm:$0xff] %v2633_v0  ;;  %482 = vmatpush1.bf16.msra.mxu0 %v2817_v2  ;;  %v2821_v4 = vld [vmem:[#allocation6 + $0x1c] ss:$12 sps:$4 sm:$0xff]   ;;  %v2823_v5 = vld [vmem:[#allocation6 + $0x18] ss:$12 sps:$4 sm:$0xff]   ;;  %2263 = vmatprep.subr.bf16.mxu1 %v2426_v3  ;;  %v2858_v23 = vld [vmem:[%s2802_s9 + $0x10] sm:$0xff] }
  0x59   : > { %v2430_v6 = vld [vmem:[#allocation6 + $0x20] ss:$12 sps:$4 sm:$0xff]   ;;  %2264 = vmatpush3.bf16.msra.mxu1 %v2426_v3  ;;  %483 = vmatprep.subr.bf16.mxu0 %v2821_v4  ;;  %v2434_v8 = vld [vmem:[#allocation6 + $0x38] ss:$12 sps:$4 sm:$0xff]   ;;  %v2829_v9 = vld [vmem:[#allocation6 + $0x30] ss:$12 sps:$4 sm:$0xff]   ;;  %v227_v30 = vpack.c.bf16 %v2864_v26, %v2858_v23 }
  0x5a   : > { %v2826_v7 = vld [vmem:[#allocation6 + $0x34] ss:$12 sps:$4 sm:$0xff]   ;;  %2265 = vmatprep.subr.bf16.mxu1 %v2430_v6  ;;  %v2832_v10 = vld [vmem:[#allocation6 + $0x4c] ss:$12 sps:$4 sm:$0xff]   ;;  %v2438_v11 = vld [vmem:[#allocation6 + $0x50] ss:$12 sps:$4 sm:$0xff]  }
  0x5b   : > { %v2835_v12 = vld [vmem:[#allocation6 + $0x48] ss:$12 sps:$4 sm:$0xff]   ;;  %v2838_v13 = vld [vmem:[#allocation6 + $0x64] ss:$12 sps:$4 sm:$0xff]   ;;  %v2841_v15 = vld [vmem:[#allocation6 + $0x60] ss:$12 sps:$4 sm:$0xff]  }
  0x5c   : > { %484 = vmatpush1.bf16.msra.mxu0 %v2823_v5  ;;  %v2442_v14 = vld [vmem:[#allocation6 + $0x68] ss:$12 sps:$4 sm:$0xff]   ;;  %v2846_v17 = vld [vmem:[#allocation6 + $0x78] ss:$12 sps:$4 sm:$0xff]   ;;  %v2446_v18 = vld [vmem:[#allocation6 + $0x80] ss:$12 sps:$4 sm:$0xff]  }
  0x5d   : > { %485 = vmatprep.subr.bf16.mxu0 %v2826_v7  ;;  %2266 = vmatpush3.bf16.msra.mxu1 %v2430_v6  ;;  %v2844_v16 = vld [vmem:[#allocation6 + $0x7c] ss:$12 sps:$4 sm:$0xff]   ;;  %v2848_v19 = vld [vmem:[#allocation6 + $0x94] ss:$12 sps:$4 sm:$0xff]   ;;  %v2450_v29 = vld [vmem:[#allocation6 + $0x98] ss:$12 sps:$4 sm:$0xff]  }
  0x5e   : > { %2267 = vmatprep.subr.bf16.mxu1 %v2434_v8  ;;  %v2855_v21 = vld [vmem:[%s2802_s9 + $0x8] sm:$0xff]  ;;  %v239_v22 = vld [vmem:[#allocation2] sm:$0x80]  ;;  %v2867_v27 = vld [vmem:[%s2802_s9 + $0x20] sm:$0xff]  ;;  %vm280_vm0 = vsmask.f32 256 }
  0x5f   : > { %v222_v24 = vpack.c.bf16 %v2855_v21, %v2851_v20  ;;  %v282_v25 = vshrl.u32 %v239_v22, 16  ;;  %v2870_v28 = vld [vmem:[%s2802_s9 + $0x28] sm:$0xff]  ;;  %v2877_v34 = vld [vmem:[#allocation6 + $0x90] ss:$12 sps:$4 sm:$0xff]   ;;  %v2880_v35 = vrot.slane %v2633_v0, 7  ;;  %v302_v36 = vshrl.u32 %v227_v30, 16 }
  0x60   : > { %486 = vmatpush1.bf16.msra.mxu0 %v2829_v9  ;;  %v232_v31 = vpack.c.bf16 %v2870_v28, %v2867_v27  ;;  %v2883_v37 = vld [vmem:[#allocation6 + $0xac] ss:$12 sps:$4 sm:$0xff]   ;;  %v2454_v38 = vld [vmem:[#allocation6 + $0xb0] ss:$12 sps:$4 sm:$0xff]   ;;  %v2885_v41 = vld [vmem:[#allocation6 + $0xa8] ss:$12 sps:$4 sm:$0xff]  }
  0x61   : > { %487 = vmatprep.subr.bf16.mxu0 %v2832_v10  ;;  %2268 = vmatpush3.bf16.msra.mxu1 %v2434_v8  ;;  %v286_v32 = vshrl.u32 %v222_v24, 16  ;;  %v289_v33 = vshll.u32 %v222_v24, 16  ;;  %v284_v39 = vrot.slane %v282_v25, 7  ;;  %v305_v42 = vshll.u32 %v227_v30, 16  ;;  %v2455_v46 = vld [vmem:[#allocation6 + $0x8] ss:$12 sps:$4 sm:$0xff]  }
  0x62   : > { %2269 = vmatprep.subr.bf16.mxu1 %v2438_v11  ;;  %v318_v43 = vshrl.u32 %v232_v31, 16  ;;  %v304_v45 = vrot.slane %v302_v36, 7  ;;  %v2891_v48 = vld [vmem:[%s2802_s9 + $0x30] sm:$0xff]  ;;  %v2894_v49 = vld [vmem:[%s2802_s9 + $0x38] sm:$0xff]  ;;  %v2456_v51 = vld [vmem:[#allocation6 + $0x20] ss:$12 sps:$4 sm:$0xff]  }
  0x63   : > { %v288_v40 = vrot.slane %v286_v32, 7  ;;  %v321_v55 = vshll.u32 %v232_v31, 16  ;;  %v237_v56 = vpack.c.bf16 %v2894_v49, %v2891_v48  ;;  %v247_v3 = vld [vmem:[#allocation2 + $0x40] sm:$0x1]  ;;  %v2459_v8 = vld [vmem:[#allocation6 + $0x68] ss:$12 sps:$4 sm:$0xff]  }
  0x64   : > { %488 = vmatpush1.bf16.msra.mxu0 %v2835_v12  ;;  %v307_v50 = vor.u32 %v305_v42, %v304_v45  ;;  %v320_v54 = vrot.slane %v318_v43, 7  ;;  %v316_v59 = vsel %vm280_vm0, %v304_v45, %v2880_v35  ;;  %v2457_v6 = vld [vmem:[#allocation6 + $0x38] ss:$12 sps:$4 sm:$0xff]   ;;  %vm687_vm1 = vcmask 1046528   ;;  %s3067_s4 = scalar_lea.vmem [#allocation8], %s2081_s7  ;;  %s2214_s5 = sshll.u32 %s2678_s16, 10 }
  0x65   : > { %489 = vmatprep.subr.bf16.mxu0 %v2838_v13  ;;  %2270 = vmatpush3.bf16.msra.mxu1 %v2438_v11  ;;  %v291_v44 = vor.u32 %v289_v33, %v288_v40  ;;  %v300_v52 = vsel %vm280_vm0, %v288_v40, %v2880_v35  ;;  %v334_v58 = vshrl.u32 %v237_v56, 16  ;;  %v337_v62 = vshll.u32 %v237_v56, 16  ;;  %v2462_v11 = vld [vmem:[#allocation6 + $0xb0] ss:$12 sps:$4 sm:$0xff]   ;;  %s1989_s10 = sshll.u32 %s3067_s4, 4  ;;  %s3100_s28 = scalar_lea.hbm %s3150_s3, %s2214_s5  ;;  %s3102_s10 = int_to_ptr.vmem [resolvable:$true] %s1989_s10 }
  0x66   : > { %2271 = vmatprep.subr.bf16.mxu1 %v2442_v14  ;;  %v308_v53 = vsel %vm280_vm0, %v2880_v35, %v307_v50  ;;  %v323_v57 = vor.u32 %v321_v55, %v320_v54  ;;  %vm736_vm2 = vcmask 1045504   ;;  %s1975_s29 = scalar_lea.sflag [#allocation5], %s2796_s6  ;;  %s2555_s23 = scalar_lea.vmem %s3102_s10, 1024 }
  0x67   : > { %v292_v47 = vsel %vm280_vm0, %v284_v39, %v291_v44  ;;  %v336_v61 = vrot.slane %v334_v58, 7  ;;  %v2942_v39 = vld [vmem:[%s3149_s2] ss:$0 sm:$0xff]  ;;  %p2556_p4 = scmp.ne.s32.totalorder %s3102_s10, %s2555_s23  ;;  %s2634_s16 = smov [#allocation8]  }
  0x68   : > { %490 = vmatpush1.bf16.msra.mxu0 %v2841_v15  ;;  %2279 = vmatprep.mubr.bf16.mxu1 %v292_v47  ;;  %v324_v60 = vsel %vm280_vm0, %v2880_v35, %v323_v57  ;;  %s2559_s30 = sshll.u32 %s2634_s16, 4  ;;  %s2560_s30 = int_to_ptr.vmem [resolvable:$false] %s2559_s30 }
  0x69   : > { %491 = vmatprep.subr.bf16.mxu0 %v2844_v16  ;;  %2272 = vmatpush3.bf16.msra.mxu1 %v2442_v14  ;;  %v339_v63 = vor.u32 %v337_v62, %v336_v61  ;;  %p2557_p6 = pnand %p2556_p4, %p2748_p12  ;;  %s2561_s22 = scalar_lea.vmem %s2560_s30, 2048 }
  0x6a   : > { %2273 = vmatprep.subr.bf16.mxu1 %v2446_v18  ;;  %p2562_p10 = scmp.lt.s32.totalorder %s3102_s10, %s2560_s30  ;;  %p2563_p13 = scmp.lt.s32.totalorder %s2561_s22, %s2555_s23 }
  0x6b   : > { %p2558_p8 = pneg %p2557_p6 }
  0x6c   : > { %492 = vmatpush1.bf16.msra.mxu0 %v2846_v17  ;;  %p2564_p3 = por %p2563_p13, %p2562_p10 }
  0x6d   : > { %493 = vmatprep.subr.bf16.mxu0 %v2848_v19  ;;  %2274 = vmatpush3.bf16.msra.mxu1 %v2446_v18 }
  0x6e   : > { %2275 = vmatprep.subr.bf16.mxu1 %v2450_v29  ;;  %p2565_p7 = pnand %p2564_p3, %p2558_p8 }
  0x70   : > { %494 = vmatpush1.bf16.msra.mxu0 %v2877_v34 }
  0x71   : > { %495 = vmatprep.subr.bf16.mxu0 %v2883_v37  ;;  %2276 = vmatpush3.bf16.msra.mxu1 %v2450_v29 }
  0x72   : > { %2277 = vmatprep.subr.bf16.mxu1 %v2454_v38 }
  0x74   : > { %496 = vmatpush1.bf16.msra.mxu0 %v2885_v41 }
  0x75   : > { %2295 = vmatprep.subr.bf16.mxu0 %v2455_v46  ;;  %2278 = vmatpush3.bf16.msra.mxu1 %v2454_v38 }
  0x76   : > { %1073 = vmatprep.subr.bf16.mxu1 %v2815_v1  ;;  %v332_v1 = vsel %vm280_vm0, %v320_v54, %v2880_v35 }
  0x77   : > { %514 = vmatmul.mubr.bf16.vlgmr.msra.gmra.mrb[0].mxu0 %v292_v47 }
  0x78   : > { %523 = vmatprep.mubr.bf16.mxu0 %v2633_v0  ;;  %2296 = vmatpush3.bf16.msra.mxu0 %v2455_v46 }
  0x79   : > { %2280 = vmatmul.mubr.bf16.vlgmr.msra.gmra.mrb[0].mxu1 %v300_v52  ;;  %2297 = vmatprep.subr.bf16.mxu0 %v2456_v51 }
  0x7a   : > { %2283 = vmatprep.mubr.bf16.mxu1 %v308_v53  ;;  %1074 = vmatpush1.bf16.msra.mxu1 %v2817_v2  ;;  %v340_v2 = vsel %vm280_vm0, %v2880_v35, %v339_v63 }
  0x7b   : > { %1075 = vmatprep.subr.bf16.mxu1 %v2821_v4  ;;  %v342_v4 = vshll.u32 %v247_v3, 16 }
  0x7c   : > { %2298 = vmatpush3.bf16.msra.mxu0 %v2456_v51 }
  0x7d   : > { %2299 = vmatprep.subr.bf16.mxu0 %v2457_v6 }
  0x7e   : > { %1076 = vmatpush1.bf16.msra.mxu1 %v2823_v5  ;;  %v344_v5 = vsel %vm280_vm0, %v336_v61, %v342_v4  ;;  %v832_v4 = vld [vmem:[#allocation2] sm:$0x80] }
  0x7f   : > { %524 = vmatmul.mubr.bf16.gmra.mrb[4].mxu0 %v300_v52  ;;  %1077 = vmatprep.subr.bf16.mxu1 %v2826_v7  ;;  %v2458_v7 = vld [vmem:[#allocation6 + $0x50] ss:$12 sps:$4 sm:$0xff]  }
  0x80   : > { %530 = vmatprep.mubr.bf16.mxu0 %v2633_v0  ;;  %2300 = vmatpush3.bf16.msra.mxu0 %v2457_v6 }
  0x81   : > { %2284 = vmatmul.mubr.bf16.gmra.mrb[4].mxu1 %v316_v59  ;;  %2301 = vmatprep.subr.bf16.mxu0 %v2458_v7 }
  0x82   : > { %2287 = vmatprep.mubr.bf16.mxu1 %v324_v60  ;;  %1078 = vmatpush1.bf16.msra.mxu1 %v2829_v9  ;;  %v2460_v9 = vld [vmem:[#allocation6 + $0x80] ss:$12 sps:$4 sm:$0xff]  }
  0x83   : > { %1079 = vmatprep.subr.bf16.mxu1 %v2832_v10  ;;  %v2461_v10 = vld [vmem:[#allocation6 + $0x98] ss:$12 sps:$4 sm:$0xff]  }
  0x84   : > { %2302 = vmatpush3.bf16.msra.mxu0 %v2458_v7 }
  0x85   : > { %2303 = vmatprep.subr.bf16.mxu0 %v2459_v8 }
  0x86   : > { %1080 = vmatpush1.bf16.msra.mxu1 %v2835_v12 }
  0x87   : > { %531 = vmatmul.mubr.bf16.gmra.mrb[8].mxu0 %v308_v53  ;;  %1081 = vmatprep.subr.bf16.mxu1 %v2838_v13 }
  0x88   : > { %540 = vmatprep.mubr.bf16.mxu0 %v2633_v0  ;;  %2304 = vmatpush3.bf16.msra.mxu0 %v2459_v8 }
  0x89   : > { %2288 = vmatmul.mubr.bf16.gmra.mrb[8].mxu1 %v332_v1  ;;  %2305 = vmatprep.subr.bf16.mxu0 %v2460_v9 }
  0x8a   : > { %2291 = vmatprep.mubr.bf16.mxu1 %v340_v2  ;;  %1082 = vmatpush1.bf16.msra.mxu1 %v2841_v15 }
  0x8b   : > { %1083 = vmatprep.subr.bf16.mxu1 %v2844_v16 }
  0x8c   : > { %2306 = vmatpush3.bf16.msra.mxu0 %v2460_v9 }
  0x8d   : > { %2307 = vmatprep.subr.bf16.mxu0 %v2461_v10 }
  0x8e   : > { %1084 = vmatpush1.bf16.msra.mxu1 %v2846_v17 }
  0x8f   : > { %541 = vmatmul.mubr.bf16.gmra.mrb[12].mxu0 %v316_v59  ;;  %1085 = vmatprep.subr.bf16.mxu1 %v2848_v19 }
  0x90   : > { %547 = vmatprep.mubr.bf16.mxu0 %v2633_v0  ;;  %2308 = vmatpush3.bf16.msra.mxu0 %v2461_v10 }
  0x91   : > { %2292 = vmatmul.mubr.bf16.gmra.mrb[12].mxu1 %v344_v5  ;;  %2309 = vmatprep.subr.bf16.mxu0 %v2462_v11 }
  0x92   : > { %1086 = vmatpush1.bf16.msra.mxu1 %v2877_v34  ;;  %1105 = vmatprep.mubr.bf16.mxu1 %v2633_v0 }
  0x93   : > { %1087 = vmatprep.subr.bf16.mxu1 %v2883_v37 }
  0x94   : > { %2310 = vmatpush3.bf16.msra.mxu0 %v2462_v11 }
  0x96   : > { %1088 = vmatpush1.bf16.msra.mxu1 %v2885_v41 }
  0x97   : > { %548 = vmatmul.mubr.bf16.gmra.mrb[16].mxu0 %v324_v60 }
  0x98   : > { %557 = vmatprep.mubr.bf16.mxu0 %v2633_v0 }
  0x9f   : > { %558 = vmatmul.mubr.bf16.gmra.mrb[20].mxu0 %v332_v1 }
  0xa0   : > { %564 = vmatprep.mubr.bf16.mxu0 %v2633_v0 }
  0xa7   : > { %565 = vmatmul.mubr.bf16.gmra.mrb[24].mxu0 %v340_v2 }
  0xa8   : > { %574 = vmatprep.mubr.bf16.mxu0 %v2633_v0 }
  0xaf   : > { %575 = vmatmul.mubr.bf16.gmra.mrb[28].mxu0 %v344_v5 }
 0x14a   : > { %v515_v12 = vpop.f32.mrb[0].mxu0 }
 0x14b   : > { %v517_v13 = vpop.f32.mrb[1].mxu0 }
 0x14c   : > { %v519_v14 = vpop.f32.mrb[2].mxu0  ;;  %v2281_v15 = vpop.f32.mrb[0].mxu1  ;;  %v688_v18 = vrot.slane %v517_v13, 1 }
 0x14d   : > { %v521_v16 = vpop.f32.mrb[3].mxu0  ;;  %v616_v17 = vpop.f32.mrb[1].mxu1  ;;  %v740_v19 = vrot.slane %v2281_v15, 2 }
 0x14e   : > { %v689_v22 = vrot.slane %v521_v16, 1  ;;  %v737_v24 = vrot.slane %v616_v17, 2  ;;  %v2282_v25 = vpop.f32.mrb[2].mxu1  ;;  %v874_v17 = vshrl.u32 %v832_v4, 16 }
 0x14f   : > { %v619_v29 = vpop.f32.mrb[3].mxu1 }
 0x150   : > { %v690_v30 = vsel %vm687_vm1, %v688_v18, %v689_v22  ;;  %v738_v31 = vrot.slane %v619_v29, 2 }
 0x151   : > { %v716_v32 = vadd.f32 %v690_v30, %v515_v12 }
 0x152   : > { %v739_v33 = vsel %vm736_vm2, %v737_v24, %v738_v31  ;;  %v741_v34 = vsel %vm736_vm2, %v738_v31, %v740_v19  ;;  %v525_v36 = vpop.f32.mrb[4].mxu0 }
 0x153   : > { %v765_v37 = vadd.f32 %v739_v33, %v716_v32  ;;  %v526_v38 = vpop.f32.mrb[5].mxu0 }
 0x154   : > { %v691_v40 = vrot.slane %v526_v38, 1  ;;  %v528_v41 = vpop.f32.mrb[6].mxu0  ;;  %v2285_v42 = vpop.f32.mrb[4].mxu1 }
 0x155   : > { %v529_v43 = vpop.f32.mrb[7].mxu0  ;;  %v631_v44 = vpop.f32.mrb[5].mxu1  ;;  %v745_v46 = vrot.slane %v2285_v42, 2  ;;  %v773_v51 = vadd.f32 %v2942_v39, %v765_v37 }
 0x156   : > { %v692_v45 = vsel %vm687_vm1, %v689_v22, %v691_v40  ;;  %v742_v47 = vrot.slane %v631_v44, 2  ;;  %v2286_v50 = vpop.f32.mrb[6].mxu1 }
 0x157   : > { %v717_v52 = vadd.f32 %v692_v45, %v519_v14  ;;  %v634_v53 = vpop.f32.mrb[7].mxu1  ;;  %v775_v59 = vmax.f32 %v773_v51, 0.0 }
 0x158   : > { %v743_v54 = vrot.slane %v634_v53, 2 }
 0x159   : > { %v766_v55 = vadd.f32 %v741_v34, %v717_v52  ;;  %v804_v10 = vadd.f32 %v775_v59, %v2851_v20 }
 0x15a   : > { %v532_v56 = vpop.f32.mrb[8].mxu0  ;;  %v744_v57 = vsel %vm736_vm2, %v742_v47, %v743_v54  ;;  %v746_v58 = vsel %vm736_vm2, %v743_v54, %v745_v46 }
 0x15b   : > { %v774_v60 = vadd.f32 %v2942_v39, %v766_v55  ;;  %v534_v61 = vpop.f32.mrb[9].mxu0 }
 0x15c   : > { %v536_v62 = vpop.f32.mrb[10].mxu0  ;;  %v2289_v63 = vpop.f32.mrb[8].mxu1  ;;  %v693_v5 = vrot.slane %v534_v61, 1 }
 0x15d   : > { %v776_v1 = vmax.f32 %v774_v60, 0.0  ;;  %v538_v2 = vpop.f32.mrb[11].mxu0  ;;  %v646_v3 = vpop.f32.mrb[9].mxu1  ;;  %v750_v7 = vrot.slane %v2289_v63, 2 }
 0x15e   : > { %v694_v6 = vrot.slane %v538_v2, 1  ;;  %v747_v8 = vrot.slane %v646_v3, 2  ;;  %v2290_v9 = vpop.f32.mrb[10].mxu1 }
 0x15f   : > { %v805_v11 = vadd.f32 %v776_v1, %v2855_v21  ;;  %v649_v12 = vpop.f32.mrb[11].mxu1  ;;  %v876_v21 = vrot.slane %v874_v17, 7 }
 0x160   : > { %v695_v13 = vsel %vm687_vm1, %v693_v5, %v694_v6  ;;  %v748_v14 = vrot.slane %v649_v12, 2 }
 0x161   : > { %v806_v15 = vpack.c.bf16 %v805_v11, %v804_v10  ;;  %v718_v16 = vadd.f32 %v695_v13, %v532_v56 }
 0x162   : > { %v542_v18 = vpop.f32.mrb[12].mxu0  ;;  %v749_v19 = vsel %vm736_vm2, %v747_v8, %v748_v14  ;;  %v751_v22 = vsel %vm736_vm2, %v748_v14, %v750_v7 }
 0x163   : > { %v767_v24 = vadd.f32 %v744_v57, %v718_v16  ;;  %v543_v25 = vpop.f32.mrb[13].mxu0  ;;  %v878_v29 = vshrl.u32 %v806_v15, 16  ;;  %v881_v36 = vshll.u32 %v806_v15, 16 }
 0x164   : > { %v696_v30 = vrot.slane %v543_v25, 1  ;;  %v545_v31 = vpop.f32.mrb[14].mxu0  ;;  %v2293_v32 = vpop.f32.mrb[12].mxu1 }
 0x165   : > { %v546_v33 = vpop.f32.mrb[15].mxu0  ;;  %v880_v34 = vrot.slane %v878_v29, 7  ;;  %v661_v37 = vpop.f32.mrb[13].mxu1  ;;  %v755_v40 = vrot.slane %v2293_v32, 2  ;;  %v779_v43 = vadd.f32 %v2942_v39, %v767_v24 }
 0x166   : > { %v697_v38 = vsel %vm687_vm1, %v694_v6, %v696_v30  ;;  %v752_v41 = vrot.slane %v661_v37, 2  ;;  %v2294_v42 = vpop.f32.mrb[14].mxu1 }
 0x167   : > { %v719_v44 = vadd.f32 %v697_v38, %v536_v62  ;;  %v883_v45 = vor.u32 %v881_v36, %v880_v34  ;;  %v664_v46 = vpop.f32.mrb[15].mxu1  ;;  %v892_v53 = vsel %vm280_vm0, %v880_v34, %v2880_v35  ;;  %v781_v56 = vmax.f32 %v779_v43, 0.0 }
 0x168   : > { %v753_v47 = vrot.slane %v664_v46, 2 }
 0x169   : > { %v768_v50 = vadd.f32 %v746_v58, %v719_v44  ;;  %v884_v51 = vsel %vm280_vm0, %v876_v21, %v883_v45  ;;  %v812_v1 = vadd.f32 %v2858_v23, %v781_v56 }
 0x16a   : > { %v549_v52 = vpop.f32.mrb[16].mxu0  ;;  %1106 = vmatmul.mubr.bf16.vlgmr.msra.gmra.mrb[16].mxu1 %v884_v51  ;;  %2311 = vmatprep.mubr.bf16.mxu0 %v884_v51  ;;  %v754_v54 = vsel %vm736_vm2, %v752_v41, %v753_v47  ;;  %v2961_v55 = vsel %vm736_vm2, %v753_v47, %v755_v40 }
 0x16b   : > { %v780_v57 = vadd.f32 %v2942_v39, %v768_v50  ;;  %v551_v59 = vpop.f32.mrb[17].mxu0  ;;  %2312 = vmatmul.mubr.bf16.vlgmr.msra.gmra.mrb[32].mxu0 %v892_v53  ;;  %1115 = vmatprep.mubr.bf16.mxu1 %v2633_v0 }
 0x16c   : > { %v553_v58 = vpop.f32.mrb[18].mxu0  ;;  %v698_v62 = vrot.slane %v551_v59, 1 }
 0x16d   : > { %v782_v60 = vmax.f32 %v780_v57, 0.0  ;;  %v555_v61 = vpop.f32.mrb[19].mxu0 }
 0x16e   : > { %v699_v63 = vrot.slane %v555_v61, 1 }
 0x16f   : > { %v813_v2 = vadd.f32 %v2864_v26, %v782_v60 }
 0x170   : > { %v700_v3 = vsel %vm687_vm1, %v698_v62, %v699_v63 }
 0x171   : > { %v814_v4 = vpack.c.bf16 %v813_v2, %v812_v1  ;;  %v720_v5 = vadd.f32 %v700_v3, %v549_v52  ;;  %v840_v1 = vld [vmem:[#allocation2 + $0x40] sm:$0x1] }
 0x172   : > { %v559_v6 = vpop.f32.mrb[20].mxu0  ;;  %1116 = vmatmul.mubr.bf16.gmra.mrb[20].mxu1 %v892_v53 }
 0x173   : > { %v769_v7 = vadd.f32 %v749_v19, %v720_v5  ;;  %v560_v8 = vpop.f32.mrb[21].mxu0  ;;  %1122 = vmatprep.mubr.bf16.mxu1 %v2633_v0  ;;  %v894_v9 = vshrl.u32 %v814_v4, 16  ;;  %v897_v14 = vshll.u32 %v814_v4, 16  ;;  %v934_v4 = vshll.u32 %v840_v1, 16 }
 0x174   : > { %v701_v10 = vrot.slane %v560_v8, 1  ;;  %v562_v11 = vpop.f32.mrb[22].mxu0  ;;  %v2466_v8 = vld [vmem:[#allocation6 + $0x8] ss:$12 sps:$4 sm:$0xff]  }
 0x175   : > { %v563_v12 = vpop.f32.mrb[23].mxu0  ;;  %v896_v13 = vrot.slane %v894_v9, 7  ;;  %v786_v26 = vadd.f32 %v2942_v39, %v769_v7  ;;  %2327 = vmatprep.subr.bf16.mxu1 %v2466_v8  ;;  %v2469_v9 = vld [vmem:[#allocation6 + $0x1c] ss:$12 sps:$4 sm:$0xff]   ;;  %v2473_v11 = vld [vmem:[#allocation6 + $0x34] ss:$12 sps:$4 sm:$0xff]  }
 0x176   : > { %v702_v23 = vsel %vm687_vm1, %v699_v63, %v701_v10  ;;  %2328 = vmatpush3.bf16.msra.mxu1 %v2466_v8  ;;  %v2467_v10 = vld [vmem:[#allocation6 + $0x18] ss:$12 sps:$4 sm:$0xff]   ;;  %v2471_v12 = vld [vmem:[#allocation6 + $0x30] ss:$12 sps:$4 sm:$0xff]  }
 0x177   : > { %v721_v15 = vadd.f32 %v702_v23, %v553_v58  ;;  %v899_v16 = vor.u32 %v897_v14, %v896_v13  ;;  %v908_v24 = vsel %vm280_vm0, %v896_v13, %v2880_v35  ;;  %v788_v25 = vmax.f32 %v786_v26, 0.0  ;;  %v2474_v13 = vld [vmem:[#allocation6 + $0x38] ss:$12 sps:$4 sm:$0xff]   ;;  %v2475_v14 = vld [vmem:[#allocation6 + $0x48] ss:$12 sps:$4 sm:$0xff]  }
 0x178   : > { %v2478_v23 = vld [vmem:[#allocation6 + $0x50] ss:$12 sps:$4 sm:$0xff]  }
 0x179   : > { %v770_v17 = vadd.f32 %v751_v22, %v721_v15  ;;  %v900_v18 = vsel %vm280_vm0, %v2880_v35, %v899_v16  ;;  %v820_v34 = vadd.f32 %v2867_v27, %v788_v25  ;;  %v2481_v26 = vld [vmem:[#allocation6 + $0x64] ss:$12 sps:$4 sm:$0xff]   ;;  %v2479_v15 = vld [vmem:[#allocation6 + $0x60] ss:$12 sps:$4 sm:$0xff]   ;;  %v2482_v16 = vld [vmem:[#allocation6 + $0x68] ss:$12 sps:$4 sm:$0xff]  }
 0x17a   : > { %v566_v19 = vpop.f32.mrb[24].mxu0  ;;  %1123 = vmatmul.mubr.bf16.gmra.mrb[24].mxu1 %v900_v18  ;;  %2315 = vmatprep.mubr.bf16.mxu0 %v900_v18  ;;  %v2483_v18 = vld [vmem:[#allocation6 + $0x78] ss:$12 sps:$4 sm:$0xff]   ;;  %v2487_v25 = vld [vmem:[#allocation6 + $0x90] ss:$12 sps:$4 sm:$0xff]  }
 0x17b   : > { %v787_v29 = vadd.f32 %v2942_v39, %v770_v17  ;;  %v568_v30 = vpop.f32.mrb[25].mxu0  ;;  %2316 = vmatmul.mubr.bf16.gmra.mrb[36].mxu0 %v908_v24  ;;  %1132 = vmatprep.mubr.bf16.mxu1 %v2633_v0  ;;  %v2485_v17 = vld [vmem:[#allocation6 + $0x7c] ss:$12 sps:$4 sm:$0xff]  }
 0x17c   : > { %v570_v31 = vpop.f32.mrb[26].mxu0  ;;  %v703_v22 = vrot.slane %v568_v30, 1  ;;  %v2493_v30 = vld [vmem:[#allocation6 + $0xac] ss:$12 sps:$4 sm:$0xff]  }
 0x17d   : > { %v789_v32 = vmax.f32 %v787_v29, 0.0  ;;  %v572_v33 = vpop.f32.mrb[27].mxu0  ;;  %v2490_v29 = vld [vmem:[#allocation6 + $0x98] ss:$12 sps:$4 sm:$0xff]  }
 0x17e   : > { %v704_v21 = vrot.slane %v572_v33, 1 }
 0x17f   : > { %v821_v36 = vadd.f32 %v2870_v28, %v789_v32  ;;  %v2494_v32 = vld [vmem:[#allocation6 + $0xb0] ss:$12 sps:$4 sm:$0xff]  }
 0x180   : > { %v705_v37 = vsel %vm687_vm1, %v703_v22, %v704_v21 }
 0x181   : > { %v822_v38 = vpack.c.bf16 %v821_v36, %v820_v34  ;;  %v722_v40 = vadd.f32 %v705_v37, %v566_v19  ;;  %v2486_v19 = vld [vmem:[#allocation6 + $0x80] ss:$12 sps:$4 sm:$0xff]  }
 0x182   : > { %v576_v41 = vpop.f32.mrb[28].mxu0  ;;  %1133 = vmatmul.mubr.bf16.gmra.mrb[28].mxu1 %v908_v24  ;;  %v2489_v24 = vld [vmem:[#allocation6 + $0x94] ss:$12 sps:$4 sm:$0xff]  }
 0x183   : > { %v771_v42 = vadd.f32 %v754_v54, %v722_v40  ;;  %v577_v43 = vpop.f32.mrb[29].mxu0  ;;  %1139 = vmatprep.mubr.bf16.mxu1 %v2633_v0  ;;  %v910_v44 = vshrl.u32 %v822_v38, 16  ;;  %v913_v51 = vshll.u32 %v822_v38, 16 }
 0x184   : > { %v706_v45 = vrot.slane %v577_v43, 1  ;;  %v579_v46 = vpop.f32.mrb[30].mxu0 }
 0x185   : > { %v580_v47 = vpop.f32.mrb[31].mxu0  ;;  %v912_v50 = vrot.slane %v910_v44, 7  ;;  %v793_v28 = vadd.f32 %v2942_v39, %v771_v42 }
 0x186   : > { %v707_v27 = vsel %vm687_vm1, %v704_v21, %v706_v45 }
 0x187   : > { %v723_v52 = vadd.f32 %v707_v27, %v570_v31  ;;  %v915_v53 = vor.u32 %v913_v51, %v912_v50  ;;  %v924_v57 = vsel %vm280_vm0, %v912_v50, %v2880_v35  ;;  %v795_v59 = vmax.f32 %v793_v28, 0.0  ;;  %v2491_v31 = vld [vmem:[#allocation6 + $0xa8] ss:$12 sps:$4 sm:$0xff]  }
 0x189   : > { %v772_v56 = vadd.f32 %v2961_v55, %v723_v52  ;;  %v916_v54 = vsel %vm280_vm0, %v2880_v35, %v915_v53  ;;  %v828_v61 = vadd.f32 %v2891_v48, %v795_v59  ;;  %v2465_v48 = vld [vmem:[#allocation6 + $0x4] ss:$12 sps:$4 sm:$0xff]  }
 0x18a   : > { %1140 = vmatmul.mubr.bf16.gmra.mrb[32].mxu1 %v916_v54  ;;  %2319 = vmatprep.mubr.bf16.mxu0 %v916_v54 }
 0x18b   : > { %v794_v58 = vadd.f32 %v2942_v39, %v772_v56  ;;  %2320 = vmatmul.mubr.bf16.gmra.mrb[40].mxu0 %v924_v57  ;;  %1149 = vmatprep.mubr.bf16.mxu1 %v2633_v0 }
 0x18c   : > { %1660 = vmatprep.subr.bf16.mxu0 %v2465_v48  ;;  %v1419_v48 = vld [vmem:[#allocation2] sm:$0x80] }
 0x18d   : > { %v796_v60 = vmax.f32 %v794_v58, 0.0 }
 0x18f   : > { %v829_v62 = vadd.f32 %v2894_v49, %v796_v60  ;;  %v2463_v49 = vld [vmem:[#allocation6] ss:$12 sps:$4 sm:$0xff]  }
 0x190   : > { %1661 = vmatpush1.bf16.msra.mxu0 %v2463_v49 }
 0x191   : > { %v830_v55 = vpack.c.bf16 %v829_v62, %v828_v61  ;;  %1662 = vmatprep.subr.bf16.mxu0 %v2469_v9 }
 0x192   : > { %1150 = vmatmul.mubr.bf16.gmra.mrb[36].mxu1 %v924_v57 }
 0x193   : > { %1156 = vmatprep.mubr.bf16.mxu1 %v2633_v0  ;;  %v926_v63 = vshrl.u32 %v830_v55, 16  ;;  %v929_v3 = vshll.u32 %v830_v55, 16 }
 0x194   : > { %1663 = vmatpush1.bf16.msra.mxu0 %v2467_v10 }
 0x195   : > { %v928_v2 = vrot.slane %v926_v63, 7  ;;  %1664 = vmatprep.subr.bf16.mxu0 %v2473_v11 }
 0x197   : > { %v931_v5 = vor.u32 %v929_v3, %v928_v2  ;;  %v936_v7 = vsel %vm280_vm0, %v928_v2, %v934_v4  ;;  %v1388_v4 = vld [vmem:[%s2802_s9 + $0x8] sm:$0xff] }
 0x198   : > { %1665 = vmatpush1.bf16.msra.mxu0 %v2471_v12 }
 0x199   : > { %v932_v6 = vsel %vm280_vm0, %v2880_v35, %v931_v5  ;;  %v2470_v35 = vld [vmem:[#allocation6 + $0x20] ss:$12 sps:$4 sm:$0xff]  }
 0x19a   : > { %1157 = vmatmul.mubr.bf16.gmra.mrb[40].mxu1 %v932_v6  ;;  %2323 = vmatprep.mubr.bf16.mxu0 %v932_v6 }
 0x19b   : > { %2324 = vmatmul.mubr.bf16.gmra.mrb[44].mxu0 %v936_v7  ;;  %1166 = vmatprep.mubr.bf16.mxu1 %v2633_v0 }
 0x19c   : > { %1692 = vmatprep.mubr.bf16.mxu0 %v2633_v0  ;;  %2329 = vmatprep.subr.bf16.mxu1 %v2470_v35  ;;  %v2477_v0 = vld [vmem:[#allocation6 + $0x4c] ss:$12 sps:$4 sm:$0xff]  }
 0x19d   : > { %2330 = vmatpush3.bf16.msra.mxu1 %v2470_v35  ;;  %1666 = vmatprep.subr.bf16.mxu0 %v2477_v0  ;;  %v3006_v35 = vld [vmem:[#allocation2] sm:$0xff] }
 0x19e   : > { %2331 = vmatprep.subr.bf16.mxu1 %v2474_v13  ;;  %1667 = vmatpush1.bf16.msra.mxu0 %v2475_v14  ;;  %v1473_v11 = vshrl.u32 %v3006_v35, 16 }
 0x19f   : > { %1668 = vmatprep.subr.bf16.mxu0 %v2481_v26  ;;  %v1461_v26 = vshrl.u32 %v1419_v48, 16 }
 0x1a1   : > { %2332 = vmatpush3.bf16.msra.mxu1 %v2474_v13 }
 0x1a2   : > { %1167 = vmatmul.mubr.bf16.gmra.mrb[44].mxu1 %v936_v7  ;;  %2333 = vmatprep.subr.bf16.mxu1 %v2478_v23 }
 0x1a3   : > { %1669 = vmatpush1.bf16.msra.mxu0 %v2479_v15 }
 0x1a4   : > { %1670 = vmatprep.subr.bf16.mxu0 %v2485_v17 }
 0x1a5   : > { %2334 = vmatpush3.bf16.msra.mxu1 %v2478_v23 }
 0x1a6   : > { %2335 = vmatprep.subr.bf16.mxu1 %v2482_v16 }
 0x1a7   : > { %1671 = vmatpush1.bf16.msra.mxu0 %v2483_v18 }
 0x1a8   : > { %1672 = vmatprep.subr.bf16.mxu0 %v2489_v24  ;;  %v1476_v24 = vshll.u32 %v3006_v35, 16 }
 0x1a9   : > { %2336 = vmatpush3.bf16.msra.mxu1 %v2482_v16 }
 0x1aa   : > { %2337 = vmatprep.subr.bf16.mxu1 %v2486_v19 }
 0x1ab   : > { %1673 = vmatpush1.bf16.msra.mxu0 %v2487_v25 }
 0x1ac   : > { %1674 = vmatprep.subr.bf16.mxu0 %v2493_v30 }
 0x1ad   : > { %2338 = vmatpush3.bf16.msra.mxu1 %v2486_v19  ;;  %v3012_v19 = vrot.slane %v1473_v11, 7 }
 0x1ae   : > { %2339 = vmatprep.subr.bf16.mxu1 %v2490_v29 }
 0x1af   : > { %1675 = vmatpush1.bf16.msra.mxu0 %v2491_v31 }
 0x1b1   : > { %2340 = vmatpush3.bf16.msra.mxu1 %v2490_v29 }
 0x1b2   : > { %2341 = vmatprep.subr.bf16.mxu1 %v2494_v32 }
 0x1b5   : > { %2342 = vmatpush3.bf16.msra.mxu1 %v2494_v32 }
 0x23d   : > { %v1107_v33 = vpop.f32.mrb[16].mxu1 }
 0x23e   : > { %v1109_v22 = vpop.f32.mrb[17].mxu1  ;;  %v2313_v21 = vpop.f32.mrb[32].mxu0 }
 0x23f   : > { %v1111_v34 = vpop.f32.mrb[18].mxu1  ;;  %v1208_v36 = vpop.f32.mrb[33].mxu0  ;;  %v1279_v40 = vrot.slane %v1109_v22, 1  ;;  %v1330_v43 = vrot.slane %v2313_v21, 2  ;;  %v1463_v22 = vrot.slane %v1461_v26, 7 }
 0x240   : > { %v1113_v37 = vpop.f32.mrb[19].mxu1  ;;  %v2314_v38 = vpop.f32.mrb[34].mxu0  ;;  %v1327_v44 = vrot.slane %v1208_v36, 2 }
 0x241   : > { %v1280_v41 = vrot.slane %v1113_v37, 1  ;;  %v1211_v42 = vpop.f32.mrb[35].mxu0  ;;  %v3018_v38 = vor.u32 %v1476_v24, %v3012_v19 }
 0x242   : > { %v1328_v45 = vrot.slane %v1211_v42, 2 }
 0x243   : > { %v1281_v46 = vsel %vm687_vm1, %v1279_v40, %v1280_v41 }
 0x244   : > { %v1307_v47 = vadd.f32 %v1281_v46, %v1107_v33  ;;  %v1329_v50 = vsel %vm736_vm2, %v1327_v44, %v1328_v45  ;;  %v1331_v51 = vsel %vm736_vm2, %v1328_v45, %v1330_v43 }
 0x245   : > { %v1117_v27 = vpop.f32.mrb[20].mxu1 }
 0x246   : > { %v1355_v28 = vadd.f32 %v1329_v50, %v1307_v47  ;;  %v1118_v52 = vpop.f32.mrb[21].mxu1  ;;  %v2163_v27 = vld [vmem:[%s2802_s9 + $0x10] sm:$0xff] }
 0x247   : > { %v1282_v53 = vrot.slane %v1118_v52, 1  ;;  %v1120_v56 = vpop.f32.mrb[22].mxu1 }
 0x248   : > { %v1121_v54 = vpop.f32.mrb[23].mxu1  ;;  %v1363_v57 = vadd.f32 %v2942_v39, %v1355_v28 }
 0x249   : > { %v1283_v59 = vsel %vm687_vm1, %v1280_v41, %v1282_v53  ;;  %v2164_v53 = vld [vmem:[%s2802_s9 + $0x18] sm:$0xff] }
 0x24a   : > { %v1308_v58 = vadd.f32 %v1283_v59, %v1111_v34  ;;  %v1365_v61 = vmax.f32 %v1363_v57, 0.0 }
 0x24c   : > { %v1356_v60 = vadd.f32 %v1331_v51, %v1308_v58  ;;  %v1391_v49 = vadd.f32 %v1365_v61, %v2851_v20 }
 0x24d   : > { %v1124_v62 = vpop.f32.mrb[24].mxu1 }
 0x24e   : > { %v1364_v55 = vadd.f32 %v2942_v39, %v1356_v60  ;;  %v1126_v63 = vpop.f32.mrb[25].mxu1  ;;  %v2317_v1 = vpop.f32.mrb[36].mxu0 }
 0x24f   : > { %v1128_v2 = vpop.f32.mrb[26].mxu1  ;;  %v1223_v3 = vpop.f32.mrb[37].mxu0  ;;  %v1284_v8 = vrot.slane %v1126_v63, 1  ;;  %v1335_v12 = vrot.slane %v2317_v1, 2 }
 0x250   : > { %v1366_v5 = vmax.f32 %v1364_v55, 0.0  ;;  %v1130_v6 = vpop.f32.mrb[27].mxu1  ;;  %v2318_v7 = vpop.f32.mrb[38].mxu0  ;;  %v1332_v13 = vrot.slane %v1223_v3, 2 }
 0x251   : > { %v1285_v9 = vrot.slane %v1130_v6, 1  ;;  %v1226_v10 = vpop.f32.mrb[39].mxu0 }
 0x252   : > { %v1333_v0 = vrot.slane %v1226_v10, 2  ;;  %v1392_v14 = vadd.f32 %v1388_v4, %v1366_v5 }
 0x253   : > { %v1286_v23 = vsel %vm687_vm1, %v1284_v8, %v1285_v9 }
 0x254   : > { %v1309_v15 = vadd.f32 %v1286_v23, %v1124_v62  ;;  %v1334_v16 = vsel %vm736_vm2, %v1332_v13, %v1333_v0  ;;  %v1336_v17 = vsel %vm736_vm2, %v1333_v0, %v1335_v12  ;;  %v1393_v20 = vpack.c.bf16 %v1392_v14, %v1391_v49 }
 0x255   : > { %v1134_v18 = vpop.f32.mrb[28].mxu1 }
 0x256   : > { %v1357_v25 = vadd.f32 %v1334_v16, %v1309_v15  ;;  %v1135_v29 = vpop.f32.mrb[29].mxu1  ;;  %v1465_v30 = vshrl.u32 %v1393_v20, 16  ;;  %v1468_v34 = vshll.u32 %v1393_v20, 16 }
 0x257   : > { %v1287_v31 = vrot.slane %v1135_v29, 1  ;;  %v1137_v32 = vpop.f32.mrb[30].mxu1 }
 0x258   : > { %v1138_v33 = vpop.f32.mrb[31].mxu1  ;;  %v1467_v21 = vrot.slane %v1465_v30, 7  ;;  %v1369_v36 = vadd.f32 %v2942_v39, %v1357_v25  ;;  %v2167_v30 = vld [vmem:[%s2802_s9 + $0x20] sm:$0xff] }
 0x259   : > { %v1288_v37 = vsel %vm687_vm1, %v1285_v9, %v1287_v31  ;;  %v2168_v33 = vld [vmem:[%s2802_s9 + $0x28] sm:$0xff] }
 0x25a   : > { %v1310_v40 = vadd.f32 %v1288_v37, %v1128_v2  ;;  %v1470_v41 = vor.u32 %v1468_v34, %v1467_v21  ;;  %v1371_v44 = vmax.f32 %v1369_v36, 0.0  ;;  %v1479_v46 = vsel %vm280_vm0, %v1467_v21, %v3018_v38 }
 0x25c   : > { %v1358_v42 = vadd.f32 %v1336_v17, %v1310_v40  ;;  %v1471_v43 = vsel %vm280_vm0, %v1463_v22, %v1470_v41  ;;  %v1399_v61 = vadd.f32 %v2163_v27, %v1371_v44 }
 0x25d   : > { %v1141_v45 = vpop.f32.mrb[32].mxu1  ;;  %1693 = vmatmul.mubr.bf16.vlgmr.msra.gmra.mrb[48].mxu0 %v1471_v43  ;;  %2343 = vmatprep.mubr.bf16.mxu1 %v1471_v43 }
 0x25e   : > { %v1370_v47 = vadd.f32 %v2942_v39, %v1358_v42  ;;  %v1143_v50 = vpop.f32.mrb[33].mxu1  ;;  %v2321_v51 = vpop.f32.mrb[40].mxu0  ;;  %2344 = vmatmul.mubr.bf16.vlgmr.msra.gmra.mrb[48].mxu1 %v1479_v46  ;;  %1702 = vmatprep.mubr.bf16.mxu0 %v3006_v35 }
 0x25f   : > { %v1145_v28 = vpop.f32.mrb[34].mxu1  ;;  %v1238_v52 = vpop.f32.mrb[41].mxu0  ;;  %v1289_v59 = vrot.slane %v1143_v50, 1  ;;  %v1340_v62 = vrot.slane %v2321_v51, 2 }
 0x260   : > { %v1372_v56 = vmax.f32 %v1370_v47, 0.0  ;;  %v1147_v54 = vpop.f32.mrb[35].mxu1  ;;  %v2322_v57 = vpop.f32.mrb[42].mxu0  ;;  %v1337_v55 = vrot.slane %v1238_v52, 2 }
 0x261   : > { %v1290_v58 = vrot.slane %v1147_v54, 1  ;;  %v1241_v60 = vpop.f32.mrb[43].mxu0 }
 0x262   : > { %v1338_v63 = vrot.slane %v1241_v60, 2  ;;  %v1400_v1 = vadd.f32 %v2164_v53, %v1372_v56 }
 0x263   : > { %v1291_v2 = vsel %vm687_vm1, %v1289_v59, %v1290_v58 }
 0x264   : > { %v1311_v3 = vadd.f32 %v1291_v2, %v1141_v45  ;;  %v1339_v4 = vsel %vm736_vm2, %v1337_v55, %v1338_v63  ;;  %v1341_v5 = vsel %vm736_vm2, %v1338_v63, %v1340_v62  ;;  %v1401_v6 = vpack.c.bf16 %v1400_v1, %v1399_v61 }
 0x265   : > { %v1151_v7 = vpop.f32.mrb[36].mxu1  ;;  %1703 = vmatmul.mubr.bf16.gmra.mrb[52].mxu0 %v1479_v46 }
 0x266   : > { %v1359_v48 = vadd.f32 %v1339_v4, %v1311_v3  ;;  %v1152_v49 = vpop.f32.mrb[37].mxu1  ;;  %1709 = vmatprep.mubr.bf16.mxu0 %v3006_v35  ;;  %v1481_v8 = vshrl.u32 %v1401_v6, 16  ;;  %v1484_v13 = vshll.u32 %v1401_v6, 16  ;;  %v2171_v6 = vld [vmem:[%s2802_s9 + $0x30] sm:$0xff]  ;;  %v2172_v7 = vld [vmem:[%s2802_s9 + $0x38] sm:$0xff] }
 0x267   : > { %v1292_v9 = vrot.slane %v1152_v49, 1  ;;  %v1154_v10 = vpop.f32.mrb[38].mxu1 }
 0x268   : > { %v1155_v11 = vpop.f32.mrb[39].mxu1  ;;  %v1483_v12 = vrot.slane %v1481_v8, 7  ;;  %v1375_v0 = vadd.f32 %v2942_v39, %v1359_v48 }
 0x269   : > { %v1293_v14 = vsel %vm687_vm1, %v1290_v58, %v1292_v9  ;;  %v1427_v11 = vld [vmem:[#allocation2 + $0x40] sm:$0x1] }
 0x26a   : > { %v1312_v23 = vadd.f32 %v1293_v14, %v1145_v28  ;;  %v1486_v26 = vor.u32 %v1484_v13, %v1483_v12  ;;  %v1377_v17 = vmax.f32 %v1375_v0, 0.0  ;;  %v1495_v18 = vsel %vm280_vm0, %v1483_v12, %v3018_v38 }
 0x26c   : > { %v1360_v15 = vadd.f32 %v1341_v5, %v1312_v23  ;;  %v1487_v16 = vsel %vm280_vm0, %v3012_v19, %v1486_v26  ;;  %v1407_v41 = vadd.f32 %v2167_v30, %v1377_v17 }
 0x26d   : > { %v1158_v20 = vpop.f32.mrb[40].mxu1  ;;  %1710 = vmatmul.mubr.bf16.gmra.mrb[56].mxu0 %v1487_v16  ;;  %2347 = vmatprep.mubr.bf16.mxu1 %v1487_v16 }
 0x26e   : > { %v1376_v24 = vadd.f32 %v2942_v39, %v1360_v15  ;;  %v1160_v25 = vpop.f32.mrb[41].mxu1  ;;  %v2325_v29 = vpop.f32.mrb[44].mxu0  ;;  %2348 = vmatmul.mubr.bf16.gmra.mrb[52].mxu1 %v1495_v18  ;;  %1719 = vmatprep.mubr.bf16.mxu0 %v3006_v35 }
 0x26f   : > { %v1162_v31 = vpop.f32.mrb[42].mxu1  ;;  %v1253_v32 = vpop.f32.mrb[45].mxu0  ;;  %v1294_v36 = vrot.slane %v1160_v25, 1  ;;  %v1345_v42 = vrot.slane %v2325_v29, 2 }
 0x270   : > { %v1378_v22 = vmax.f32 %v1376_v24, 0.0  ;;  %v1164_v21 = vpop.f32.mrb[43].mxu1  ;;  %v2326_v34 = vpop.f32.mrb[46].mxu0  ;;  %v1342_v43 = vrot.slane %v1253_v32, 2 }
 0x271   : > { %v1295_v37 = vrot.slane %v1164_v21, 1  ;;  %v1256_v40 = vpop.f32.mrb[47].mxu0 }
 0x272   : > { %v1343_v44 = vrot.slane %v1256_v40, 2  ;;  %v1408_v45 = vadd.f32 %v2168_v33, %v1378_v22 }
 0x273   : > { %v1296_v46 = vsel %vm687_vm1, %v1294_v36, %v1295_v37 }
 0x274   : > { %v1313_v47 = vadd.f32 %v1296_v46, %v1158_v20  ;;  %v1344_v50 = vsel %vm736_vm2, %v1342_v43, %v1343_v44  ;;  %v1346_v51 = vsel %vm736_vm2, %v1343_v44, %v1345_v42  ;;  %v1409_v27 = vpack.c.bf16 %v1408_v45, %v1407_v41 }
 0x275   : > { %v1168_v28 = vpop.f32.mrb[44].mxu1  ;;  %1720 = vmatmul.mubr.bf16.gmra.mrb[60].mxu0 %v1495_v18 }
 0x276   : > { %v1361_v52 = vadd.f32 %v1344_v50, %v1313_v47  ;;  %v1169_v53 = vpop.f32.mrb[45].mxu1  ;;  %1726 = vmatprep.mubr.bf16.mxu0 %v3006_v35  ;;  %v1497_v56 = vshrl.u32 %v1409_v27, 16  ;;  %v1500_v60 = vshll.u32 %v1409_v27, 16 }
 0x277   : > { %v1297_v54 = vrot.slane %v1169_v53, 1  ;;  %v1171_v57 = vpop.f32.mrb[46].mxu1 }
 0x278   : > { %v1172_v59 = vpop.f32.mrb[47].mxu1  ;;  %v1499_v58 = vrot.slane %v1497_v56, 7  ;;  %v1381_v62 = vadd.f32 %v2942_v39, %v1361_v52 }
 0x279   : > { %v1298_v61 = vsel %vm687_vm1, %v1295_v37, %v1297_v54 }
 0x27a   : > { %v1314_v55 = vadd.f32 %v1298_v61, %v1162_v31  ;;  %v1502_v63 = vor.u32 %v1500_v60, %v1499_v58  ;;  %v1511_v3 = vsel %vm280_vm0, %v1499_v58, %v3018_v38  ;;  %v1383_v4 = vmax.f32 %v1381_v62, 0.0 }
 0x27b   : > { %v1521_v38 = vshll.u32 %v1427_v11, 16 }
 0x27c   : > { %v1362_v1 = vadd.f32 %v1346_v51, %v1314_v55  ;;  %v1503_v2 = vsel %vm280_vm0, %v3012_v19, %v1502_v63  ;;  %v1415_v49 = vadd.f32 %v2171_v6, %v1383_v4 }
 0x27d   : > { %1727 = vmatmul.mubr.bf16.gmra.mrb[64].mxu0 %v1503_v2  ;;  %2351 = vmatprep.mubr.bf16.mxu1 %v1503_v2 }
 0x27e   : > { %v1382_v5 = vadd.f32 %v2942_v39, %v1362_v1  ;;  %2352 = vmatmul.mubr.bf16.gmra.mrb[56].mxu1 %v1511_v3  ;;  %1736 = vmatprep.mubr.bf16.mxu0 %v3006_v35 }
 0x280   : > { %v1384_v48 = vmax.f32 %v1382_v5, 0.0 }
 0x282   : > { %v1416_v8 = vadd.f32 %v2172_v7, %v1384_v48 }
 0x284   : > { %v1417_v9 = vpack.c.bf16 %v1416_v8, %v1415_v49 }
 0x285   : > { %1737 = vmatmul.mubr.bf16.gmra.mrb[68].mxu0 %v1511_v3 }
 0x286   : > { %1743 = vmatprep.mubr.bf16.mxu0 %v3006_v35  ;;  %v1513_v10 = vshrl.u32 %v1417_v9, 16  ;;  %v1516_v13 = vshll.u32 %v1417_v9, 16 }
 0x288   : > { %v1515_v12 = vrot.slane %v1513_v10, 7 }
 0x28a   : > { %v1518_v0 = vor.u32 %v1516_v13, %v1515_v12  ;;  %v1523_v23 = vsel %vm280_vm0, %v1515_v12, %v1521_v38 }
 0x28c   : > { %v1519_v14 = vsel %vm280_vm0, %v3012_v19, %v1518_v0 }
 0x28d   : > { %1744 = vmatmul.mubr.bf16.gmra.mrb[72].mxu0 %v1519_v14  ;;  %2355 = vmatprep.mubr.bf16.mxu1 %v1519_v14 }
 0x28e   : > { %2356 = vmatmul.mubr.bf16.gmra.mrb[60].mxu1 %v1523_v23  ;;  %1753 = vmatprep.mubr.bf16.mxu0 %v3006_v35 }
 0x295   : > { %1754 = vmatmul.mubr.bf16.gmra.mrb[76].mxu0 %v1523_v23 }
 0x330   : > { %v1694_v26 = vpop.f32.mrb[48].mxu0 }
 0x331   : > { %v1696_v15 = vpop.f32.mrb[49].mxu0  ;;  %v2345_v16 = vpop.f32.mrb[48].mxu1 }
 0x332   : > { %v1698_v17 = vpop.f32.mrb[50].mxu0  ;;  %v1795_v20 = vpop.f32.mrb[49].mxu1  ;;  %v1866_v25 = vrot.slane %v1696_v15, 1  ;;  %v1917_v31 = vrot.slane %v2345_v16, 2 }
 0x333   : > { %v1700_v18 = vpop.f32.mrb[51].mxu0  ;;  %v2346_v24 = vpop.f32.mrb[50].mxu1  ;;  %v1914_v19 = vrot.slane %v1795_v20, 2 }
 0x334   : > { %v1867_v29 = vrot.slane %v1700_v18, 1  ;;  %v1798_v30 = vpop.f32.mrb[51].mxu1 }
 0x335   : > { %v1915_v32 = vrot.slane %v1798_v30, 2 }
 0x336   : > { %v1868_v33 = vsel %vm687_vm1, %v1866_v25, %v1867_v29 }
 0x337   : > { %v1894_v22 = vadd.f32 %v1868_v33, %v1694_v26  ;;  %v1916_v35 = vsel %vm736_vm2, %v1914_v19, %v1915_v32  ;;  %v1918_v21 = vsel %vm736_vm2, %v1915_v32, %v1917_v31 }
 0x338   : > { %v1704_v34 = vpop.f32.mrb[52].mxu0 }
 0x339   : > { %v1942_v36 = vadd.f32 %v1916_v35, %v1894_v22  ;;  %v1705_v37 = vpop.f32.mrb[53].mxu0 }
 0x33a   : > { %v1869_v40 = vrot.slane %v1705_v37, 1  ;;  %v1707_v41 = vpop.f32.mrb[54].mxu0 }
 0x33b   : > { %v1950_v42 = vadd.f32 %v2942_v39, %v1942_v36  ;;  %v1708_v43 = vpop.f32.mrb[55].mxu0 }
 0x33c   : > { %v1870_v44 = vsel %vm687_vm1, %v1867_v29, %v1869_v40 }
 0x33d   : > { %v1952_v45 = vmax.f32 %v1950_v42, 0.0  ;;  %v1895_v46 = vadd.f32 %v1870_v44, %v1698_v17 }
 0x33f   : > { %1954 = vst [vmem:[%s3067_s4] sm:$0xff] %v1952_v45  ;;  %v1943_v47 = vadd.f32 %v1918_v21, %v1895_v46  ;;  %v2496_v46 = vld [vmem:[%s3149_s2] ss:$0 sm:$0xff] }
 0x340   : > { %v1711_v50 = vpop.f32.mrb[56].mxu0 }
 0x341   : > { %v1951_v51 = vadd.f32 %v2942_v39, %v1943_v47  ;;  %v1713_v27 = vpop.f32.mrb[57].mxu0  ;;  %v2349_v28 = vpop.f32.mrb[52].mxu1 }
 0x342   : > { %v1715_v52 = vpop.f32.mrb[58].mxu0  ;;  %v1810_v53 = vpop.f32.mrb[53].mxu1  ;;  %v1871_v59 = vrot.slane %v1713_v27, 1  ;;  %v1922_v61 = vrot.slane %v2349_v28, 2 }
 0x343   : > { %v1953_v56 = vmax.f32 %v1951_v51, 0.0  ;;  %v1717_v54 = vpop.f32.mrb[59].mxu0  ;;  %v2350_v57 = vpop.f32.mrb[54].mxu1  ;;  %v1919_v62 = vrot.slane %v1810_v53, 2 }
 0x344   : > { %v1872_v58 = vrot.slane %v1717_v54, 1  ;;  %v1813_v60 = vpop.f32.mrb[55].mxu1 }
 0x345   : > { %1955 = vst [vmem:[%s3067_s4 + $0x8] sm:$0xff] %v1953_v56  ;;  %v1920_v55 = vrot.slane %v1813_v60, 2 }
 0x346   : > { %v1873_v63 = vsel %vm687_vm1, %v1871_v59, %v1872_v58 }
 0x347   : > { %v1896_v1 = vadd.f32 %v1873_v63, %v1711_v50  ;;  %v1921_v2 = vsel %vm736_vm2, %v1919_v62, %v1920_v55  ;;  %v1923_v3 = vsel %vm736_vm2, %v1920_v55, %v1922_v61 }
 0x348   : > { %v1721_v4 = vpop.f32.mrb[60].mxu0 }
 0x349   : > { %v1944_v5 = vadd.f32 %v1921_v2, %v1896_v1  ;;  %v1722_v6 = vpop.f32.mrb[61].mxu0 }
 0x34a   : > { %v1874_v7 = vrot.slane %v1722_v6, 1  ;;  %v1724_v48 = vpop.f32.mrb[62].mxu0 }
 0x34b   : > { %v1956_v49 = vadd.f32 %v2942_v39, %v1944_v5  ;;  %v1725_v8 = vpop.f32.mrb[63].mxu0 }
 0x34c   : > { %v1875_v9 = vsel %vm687_vm1, %v1872_v58, %v1874_v7 }
 0x34d   : > { %v1958_v10 = vmax.f32 %v1956_v49, 0.0  ;;  %v1897_v11 = vadd.f32 %v1875_v9, %v1715_v52 }
 0x34f   : > { %2199 = vst [vmem:[%s3067_s4 + $0x10] sm:$0xff] %v1958_v10  ;;  %v1945_v12 = vadd.f32 %v1923_v3, %v1897_v11 }
 0x350   : > { %v1728_v13 = vpop.f32.mrb[64].mxu0 }
 0x351   : > { %v1957_v38 = vadd.f32 %v2942_v39, %v1945_v12  ;;  %v1730_v0 = vpop.f32.mrb[65].mxu0  ;;  %v2353_v14 = vpop.f32.mrb[56].mxu1 }
 0x352   : > { %v1732_v23 = vpop.f32.mrb[66].mxu0  ;;  %v1825_v26 = vpop.f32.mrb[57].mxu1  ;;  %v1876_v20 = vrot.slane %v1730_v0, 1  ;;  %v1927_v25 = vrot.slane %v2353_v14, 2 }
 0x353   : > { %v1959_v15 = vmax.f32 %v1957_v38, 0.0  ;;  %v1734_v16 = vpop.f32.mrb[67].mxu0  ;;  %v2354_v17 = vpop.f32.mrb[58].mxu1  ;;  %v1924_v29 = vrot.slane %v1825_v26, 2 }
 0x354   : > { %v1877_v18 = vrot.slane %v1734_v16, 1  ;;  %v1828_v24 = vpop.f32.mrb[59].mxu1 }
 0x355   : > { %2200 = vst [vmem:[%s3067_s4 + $0x18] sm:$0xff] %v1959_v15  ;;  %v1925_v30 = vrot.slane %v1828_v24, 2 }
 0x356   : > { %v1878_v31 = vsel %vm687_vm1, %v1876_v20, %v1877_v18 }
 0x357   : > { %v1898_v19 = vadd.f32 %v1878_v31, %v1728_v13  ;;  %v1926_v32 = vsel %vm736_vm2, %v1924_v29, %v1925_v30  ;;  %v1928_v33 = vsel %vm736_vm2, %v1925_v30, %v1927_v25 }
 0x358   : > { %v1738_v22 = vpop.f32.mrb[68].mxu0 }
 0x359   : > { %v1946_v35 = vadd.f32 %v1926_v32, %v1898_v19  ;;  %v1739_v21 = vpop.f32.mrb[69].mxu0 }
 0x35a   : > { %v1879_v34 = vrot.slane %v1739_v21, 1  ;;  %v1741_v36 = vpop.f32.mrb[70].mxu0 }
 0x35b   : > { %v1962_v37 = vadd.f32 %v2942_v39, %v1946_v35  ;;  %v1742_v40 = vpop.f32.mrb[71].mxu0 }
 0x35c   : > { %v1880_v41 = vsel %vm687_vm1, %v1877_v18, %v1879_v34 }
 0x35d   : > { %v1964_v42 = vmax.f32 %v1962_v37, 0.0  ;;  %v1899_v43 = vadd.f32 %v1880_v41, %v1732_v23 }
 0x35f   : > { %2201 = vst [vmem:[%s3067_s4 + $0x20] sm:$0xff] %v1964_v42  ;;  %v1947_v44 = vadd.f32 %v1928_v33, %v1899_v43 }
 0x360   : > { %v1745_v45 = vpop.f32.mrb[72].mxu0 }
 0x361   : > { %v1963_v47 = vadd.f32 %v2496_v46, %v1947_v44  ;;  %v1747_v50 = vpop.f32.mrb[73].mxu0  ;;  %v2357_v51 = vpop.f32.mrb[60].mxu1 }
 0x362   : > { %v1749_v27 = vpop.f32.mrb[74].mxu0  ;;  %v1840_v28 = vpop.f32.mrb[61].mxu1  ;;  %v1881_v56 = vrot.slane %v1747_v50, 1  ;;  %v1932_v59 = vrot.slane %v2357_v51, 2 }
 0x363   : > { %v1965_v52 = vmax.f32 %v1963_v47, 0.0  ;;  %v1751_v39 = vpop.f32.mrb[75].mxu0  ;;  %v2358_v53 = vpop.f32.mrb[62].mxu1  ;;  %v1929_v58 = vrot.slane %v1840_v28, 2 }
 0x364   : > { %v1882_v54 = vrot.slane %v1751_v39, 1  ;;  %v1843_v57 = vpop.f32.mrb[63].mxu1 }
 0x365   : > { %2202 = vst [vmem:[%s3067_s4 + $0x28] sm:$0xff] %v1965_v52  ;;  %v1930_v60 = vrot.slane %v1843_v57, 2 }
 0x366   : > { %v1883_v61 = vsel %vm687_vm1, %v1881_v56, %v1882_v54 }
 0x367   : > { %v1900_v62 = vadd.f32 %v1883_v61, %v1745_v45  ;;  %v1931_v55 = vsel %vm736_vm2, %v1929_v58, %v1930_v60  ;;  %v1933_v63 = vsel %vm736_vm2, %v1930_v60, %v1932_v59 }
 0x368   : > { %v1755_v1 = vpop.f32.mrb[76].mxu0 }
 0x369   : > { %v1948_v2 = vadd.f32 %v1931_v55, %v1900_v62  ;;  %v1756_v3 = vpop.f32.mrb[77].mxu0 }
 0x36a   : > { %v1884_v4 = vrot.slane %v1756_v3, 1  ;;  %v1758_v5 = vpop.f32.mrb[78].mxu0 }
 0x36b   : > { %v1968_v6 = vadd.f32 %v2496_v46, %v1948_v2  ;;  %v1759_v7 = vpop.f32.mrb[79].mxu0 }
 0x36c   : > { %v1885_v48 = vsel %vm687_vm1, %v1882_v54, %v1884_v4 }
 0x36d   : > { %v1970_v49 = vmax.f32 %v1968_v6, 0.0  ;;  %v1901_v8 = vadd.f32 %v1885_v48, %v1749_v27 }
 0x36f   : > { %2203 = vst [vmem:[%s3067_s4 + $0x30] sm:$0xff] %v1970_v49  ;;  %v1949_v9 = vadd.f32 %v1933_v63, %v1901_v8 }
 0x371   : > { %v1969_v10 = vadd.f32 %v2496_v46, %v1949_v9 }
 0x373   : > { %v1971_v11 = vmax.f32 %v1969_v10, 0.0 }
 0x375   : > { %2204 = vst [vmem:[%s3067_s4 + $0x38] sm:$0xff] %v1971_v11 }
 0x376   : > { %2568 = shalt.err (!%p2565_p7)
}
 0x377   : > { %s2569_s7 = scalar_lea.hbm %s3100_s28, 1024  ;;  %s2573_s18 = scalar_lea.hbm %s3150_s3, 2048 }
 0x378   : > { %p2570_p9 = scmp.ne.s32.totalorder %s3100_s28, %s2569_s7  ;;  %p2574_p5 = scmp.lt.u32.totalorder %s3100_s28, %s3150_s3 }
 0x379   : > { %p2575_p11 = scmp.lt.u32.totalorder %s2573_s18, %s2569_s7  ;;  %p2577_p4 = scmp.lt.u32.totalorder %s2569_s7, %s3100_s28 }
 0x37a   : > { %p2571_p2 = pnand %p2570_p9, %p2748_p12 }
 0x37b   : > { %p2576_p1 = por %p2575_p11, %p2574_p5 }
 0x37c   : > { %p2572_p0 = pneg %p2571_p2 }
 0x37d   : > { %p2578_p6 = por %p2577_p4, %p2576_p1 }
 0x37f   : > { %p2579_p8 = pnand %p2578_p6, %p2572_p0 }
 0x381   : > { %2582 = shalt.err (!%p2579_p8)
}
 0x382   : > { %s2635_s25 = smov 128   ;;  %s2636_s26 = smov 8  }
 0x383   : > { %2365 = dma.vmem_to_hbm [thread:$0]  (%p2748_p12), %s3102_s10, 1024, %s3100_s28, %s1975_s29, %s2635_s25, %s2635_s25, %s2636_s26  }
 0x384 PF: > { %s2004_s5 = sand.u32 1, %s2613_s12   ;;  %p3165_p10 = scmp.ne.s32.totalorder %s3155_s19, 0 }
 0x385   : > { %p3166_p13 = scmp.ge.s32.totalorder %s2625_s15, 2  ;;  %s2005_s11 = scalar_lea.sflag [#allocation5], %s2004_s5 }
 0x387   : > { %p2376_p3 = pnand %p3166_p13, %p3165_p10 }
 0x389   : > { %2608 = dma.done.wait (!%p2376_p3), %s2005_s11, 1024  }
 0x38a   : > { %2610 = vsyncadd (!%p2376_p3), %s2005_s11, 4294966272  ;;  %p17_p7 = scmp.ge.s32.totalorder %s2713_s24, 4   ;;  %s3167_s12 = smov %s2617_s13 }
 0x38b   : > { %s3168_s13 = smov %s2621_s14  ;;  %s3169_s14 = smov %s2744_s17 }
 0x38c   : > { %s3170_s15 = smov %s2713_s24  ;;  %19 = sbr.rel (!%p17_p7) target bundleno = 6 (0x6), region = 87 }
 0x393   :  { %2010 = vsyncpa [#allocation4], 1 }
 0x394   :  { %2012 = vsyncpa [#allocation4 + $0x1], 1 }
 0x395   :  { %2013 = vsyncpa [#allocation7], 1 }
 0x396   :  { %2014 = vsyncpa [#allocation5], 1 }
 0x397   :  { %2016 = vsyncpa [#allocation5 + $0x1], 1 }

// kernel: tpu_custom_call.1
= control target key start
LH: loop header
LB: loop body
LE: loop exit
PB: predicated region body
PF: predicated region fallthrough
CT: control target
= control target key end

     0   :  { %8 = vsyncpa [#allocation4], 0  ;;  %s3147_s0 = inlined_call_operand.hbm [shape: f32[8,16,128], index: 0, kind: input, shape index: {}]   ;;  %s3148_s1 = inlined_call_operand.hbm [shape: bf16[128,384], index: 1, kind: input, shape index: {}]   ;;  %s3149_s2 = inlined_call_operand.vmem [shape: f32[1,128], index: 2, kind: input, shape index: {}]   ;;  %s3150_s3 = inlined_call_operand.hbm [shape: f32[8,16,128], index: 3, kind: output, shape index: {}]  }
   0x1   :  { %10 = vsyncpa [#allocation4 + $0x1], 0 }
   0x2   :  { %11 = vsyncpa [#allocation7], 0 }
   0x3   :  { %12 = vsyncpa [#allocation5], 0 }
   0x4   :  { %14 = vsyncpa [#allocation5 + $0x1], 0  ;;  %s2657_s12 = smov 0   ;;  %s2659_s13 = smov 0  }
   0x5   :  { %s2661_s14 = smov 0   ;;  %s2663_s15 = smov 0  }
   0x6 LB: > { %s2678_s16 = sadd.s32 4294967295, %s2625_s15   ;;  %s2072_s17 = sadd.s32 4294967294, %s2625_s15   ;;  %s2625_s15 = sphi %s2663_s15, %s3170_s15   ;;  %s2621_s14 = sphi %s2661_s14, %s3169_s14   ;;  %s2617_s13 = sphi %s2659_s13, %s3168_s13   ;;  %s2613_s12 = sphi %s2657_s12, %s3167_s12  }
   0x7   : > { %p40_p0 = scmp.ne.s32.totalorder %s2617_s13, %s2613_s12  ;;  %p3151_p1 = scmp.eq.s32.totalorder %s2678_s16, 0 }
   0x8   : > { %p112_p3 = scmp.eq.s32.totalorder %s2072_s17, 1  ;;  %p2073_p5 = scmp.ge.s32.totalorder %s2625_s15, 1 }
   0x9   : > { %p2687_p4 = por %p3151_p1, %p40_p0  ;;  %p119_p7 = scmp.lt.s32.totalorder %s2625_s15, 3 }
   0xa   : > { %p2692_p6 = por %p112_p3, %p40_p0  ;;  %s2627_s21 = smov [#allocation6]  }
   0xb   : > { %s3154_s18 = scalar_select %p2687_p4, 1, 0 }
   0xc   : > { %s3155_s19 = scalar_select %p2692_p6, 1, 0 }
   0xd   : > { %p2697_p8 = pnand %p2073_p5, %p119_p7  ;;  %s131_s22 = sshll.u32 %s2627_s21, 4  ;;  %s2701_s22 = int_to_ptr.vmem [resolvable:$true] %s131_s22 }
   0xe   : > { %s2713_s24 = sadd.s32 1, %s2625_s15   ;;  %s27_s25 = sadd.s32 1, %s2621_s14 }
   0xf   : > { %s3156_s20 = scalar_select %p2697_p8, 1, 0 }
  0x10   : > { %p2367_p9 = pneg %p2697_p8  ;;  %s24_s26 = ssub.s32 %s2625_s15, %s2713_s24 }
  0x11   : > { %s2497_s29 = scalar_lea.hbm %s3148_s1, 3072 }
  0x12   : > { %p2708_p11 = pnand %p2367_p9, %p3151_p1  ;;  %p2498_p12 = scmp.ne.s32.totalorder %s3148_s1, %s2497_s29 }
  0x13   : > { %p2504_p5 = scmp.lt.u32.totalorder %s2497_s29, %s3148_s1 }
  0x14   : > { %p2499_p13 = pneg %p2708_p11 }
  0x16   : > { %p2500_p0 = pnand %p2499_p13, %p2498_p12 }
  0x18   : > { %p2501_p3 = pneg %p2500_p0 }
  0x1a   : > { %p2506_p7 = pnand %p2504_p5, %p2501_p3 }
  0x1c   : > { %2509 = shalt.err (!%p2506_p7)
}
  0x1d   : > { %s2510_s7 = scalar_lea.vmem %s2701_s22, 3072  ;;  %p2518_p2 = scmp.lt.s32.totalorder %s2701_s22, %s2701_s22 }
  0x1e   : > { %p2511_p9 = scmp.ne.s32.totalorder %s2701_s22, %s2510_s7  ;;  %p2519_p6 = scmp.lt.s32.totalorder %s2510_s7, %s2510_s7 }
  0x20   : > { %p2513_p10 = pnand %p2511_p9, %p2499_p13  ;;  %p2520_p4 = por %p2519_p6, %p2518_p2 }
  0x22   : > { %p2514_p1 = pneg %p2513_p10 }
  0x24   : > { %p2521_p8 = pnand %p2520_p4, %p2514_p1 }
  0x26   : > { %2524 = shalt.err (!%p2521_p8)
}
  0x27   : > { %s2628_s8 = smov 192   ;;  %s2629_s9 = smov 12  }
  0x28   : > { %2370 = dma.hbm_to_vmem [thread:$0]  (!%p2708_p11), %s3148_s1, 3072, %s2701_s22, [#allocation7], %s2628_s8, %s2628_s8, %s2629_s9  }
  0x29   : > { %p25_p2 = scmp.eq.s32.totalorder %s24_s26, 0  ;;  %p34_p1 = scmp.ne.s32.totalorder %s2621_s14, %s2617_s13 }
  0x2a   : > { %p35_p4 = scmp.eq.s32.totalorder %s2625_s15, 0  ;;  %p2380_p6 = scmp.lt.s32.totalorder %s2625_s15, 2 }
  0x2b   : > { %s2744_s17 = scalar_select %p25_p2, %s2621_s14, %s27_s25  }
  0x2c   : > { %p36_p8 = por %p35_p4, %p34_p1  ;;  %p3158_p10 = scmp.eq.s32.totalorder %s2678_s16, 1 }
  0x2d   : > { %s148_s27 = sand.u32 1, %s2621_s14   ;;  %s2212_s28 = sshll.u32 %s2625_s15, 10 }
  0x2e   : > { %p2748_p12 = por %p3158_p10, %p34_p1  ;;  %s2076_s29 = sshll.u32 %s148_s27, 6 }
  0x2f   : > { %s2757_s4 = scalar_lea.hbm %s3147_s0, %s2212_s28  ;;  %s152_s22 = scalar_lea.vmem [#allocation3], %s2076_s29 }
  0x30   : > { %s160_s25 = sshll.u32 %s152_s22, 4  ;;  %p2759_p11 = pnand %p2380_p6, %p36_p8  ;;  %s2763_s25 = int_to_ptr.vmem [resolvable:$true] %s160_s25 }
  0x31   : > { %s2765_s5 = scalar_lea.sflag [#allocation4], %s148_s27  ;;  %s2525_s6 = scalar_lea.hbm %s2757_s4, 1024 }
  0x32   : > { %p2526_p13 = scmp.ne.s32.totalorder %s2757_s4, %s2525_s6  ;;  %p2527_p0 = pneg %p2759_p11 }
  0x33   : > { %s2530_s9 = scalar_lea.hbm %s3147_s0, 2048  ;;  %p2531_p7 = scmp.lt.u32.totalorder %s2757_s4, %s3147_s0 }
  0x34   : > { %p2528_p3 = pnand %p2527_p0, %p2526_p13  ;;  %p2532_p9 = scmp.lt.u32.totalorder %s2530_s9, %s2525_s6 }
  0x35   : > { %p2534_p1 = scmp.lt.u32.totalorder %s2525_s6, %s2757_s4 }
  0x36   : > { %p2529_p5 = pneg %p2528_p3  ;;  %p2533_p2 = por %p2532_p9, %p2531_p7 }
  0x38   : > { %p2535_p4 = por %p2534_p1, %p2533_p2 }
  0x3a   : > { %p2536_p6 = pnand %p2535_p4, %p2529_p5 }
  0x3c   : > { %2539 = shalt.err (!%p2536_p6)
}
  0x3d   : > { %s2540_s27 = scalar_lea.vmem %s2763_s25, 1024  ;;  %s2630_s28 = smov [#allocation3]  }
  0x3e   : > { %p2541_p8 = scmp.ne.s32.totalorder %s2763_s25, %s2540_s27  ;;  %s2545_s29 = sshll.u32 %s2630_s28, 4  ;;  %s2546_s29 = int_to_ptr.vmem [resolvable:$false] %s2545_s29 }
  0x3f   : > { %s2547_s23 = scalar_lea.vmem %s2546_s29, 2048  ;;  %p2548_p3 = scmp.lt.s32.totalorder %s2763_s25, %s2546_s29 }
  0x40   : > { %p2543_p10 = pnand %p2541_p8, %p2527_p0  ;;  %p2549_p7 = scmp.lt.s32.totalorder %s2547_s23, %s2540_s27 }
  0x42   : > { %p2544_p13 = pneg %p2543_p10  ;;  %p2550_p9 = por %p2549_p7, %p2548_p3 }
  0x44   : > { %p2551_p2 = pnand %p2550_p9, %p2544_p13 }
  0x46   : > { %2554 = shalt.err (!%p2551_p2)
}
  0x47   : > { %s2631_s30 = smov 128   ;;  %s2632_s22 = smov 8  }
  0x48   : > { %2374 = dma.hbm_to_vmem [thread:$0]  (!%p2759_p11), %s2757_s4, 1024, %s2763_s25, %s2765_s5, %s2631_s30, %s2631_s30, %s2632_s22  }
  0x49   : > { %p3161_p0 = scmp.ne.s32.totalorder %s3156_s20, 0 }
  0x4a   : > { %s2796_s6 = sand.u32 (!%p3161_p0), 1, %s2617_s13   ;;  %p3162_p5 = scmp.ne.s32.totalorder (!%p3161_p0), %s3154_s18, 0 }
  0x4b   : > { %172 = sbr.rel (%p3161_p0) target bundleno = 900 (0x384), region = 32  ;;  %s2081_s7 = sshll.u32 (!%p3161_p0), %s2796_s6, 6 }
  0x4c   : > { %s175_s8 = scalar_lea.sflag (!%p3161_p0), [#allocation4], %s2796_s6  ;;  %s2802_s9 = scalar_lea.vmem (!%p3161_p0), [#allocation3], %s2081_s7 }
  0x52   : > { %2600 = dma.done.wait (%p3162_p5), %s175_s8, 1024  }
  0x53   : > { %2602 = vsyncadd (%p3162_p5), %s175_s8, 4294966272  ;;  %p3163_p11 = scmp.eq.s32.totalorder %s2678_s16, 0 }
  0x55   : > { %2604 = dma.done.wait (%p3163_p11), [#allocation7], 3072   ;;  %p3164_p1 = pmov %p3163_p11 }
  0x56   : > { %v2633_v0 = vmov 0   ;;  %v2815_v1 = vld [vmem:[#allocation6 + $0x4] ss:$12 sps:$4 sm:$0xff]   ;;  %v2817_v2 = vld [vmem:[#allocation6] ss:$12 sps:$4 sm:$0xff]   ;;  %v2864_v26 = vld [vmem:[%s2802_s9 + $0x18] sm:$0xff] }
  0x57   : > { %2606 = vsyncadd (%p3164_p1), [#allocation7], 4294964224  ;;  %513 = vmatprep.mubr.bf16.mxu0 %v2633_v0  ;;  %208 = vst [vmem:[#allocation2] sm:$0xff] %v2633_v0  ;;  %481 = vmatprep.subr.bf16.mxu0 %v2815_v1  ;;  %v2426_v3 = vld [vmem:[#allocation6 + $0x8] ss:$12 sps:$4 sm:$0xff]   ;;  %v2851_v20 = vld [vmem:[%s2802_s9] sm:$0xff] }
  0x58   : > { %212 = vst [vmem:[#allocation2 + $0x40] sm:$0xff] %v2633_v0  ;;  %482 = vmatpush1.bf16.msra.mxu0 %v2817_v2  ;;  %v2821_v4 = vld [vmem:[#allocation6 + $0x1c] ss:$12 sps:$4 sm:$0xff]   ;;  %v2823_v5 = vld [vmem:[#allocation6 + $0x18] ss:$12 sps:$4 sm:$0xff]   ;;  %2263 = vmatprep.subr.bf16.mxu1 %v2426_v3  ;;  %v2858_v23 = vld [vmem:[%s2802_s9 + $0x10] sm:$0xff] }
  0x59   : > { %v2430_v6 = vld [vmem:[#allocation6 + $0x20] ss:$12 sps:$4 sm:$0xff]   ;;  %2264 = vmatpush3.bf16.msra.mxu1 %v2426_v3  ;;  %483 = vmatprep.subr.bf16.mxu0 %v2821_v4  ;;  %v2434_v8 = vld [vmem:[#allocation6 + $0x38] ss:$12 sps:$4 sm:$0xff]   ;;  %v2829_v9 = vld [vmem:[#allocation6 + $0x30] ss:$12 sps:$4 sm:$0xff]   ;;  %v227_v30 = vpack.c.bf16 %v2864_v26, %v2858_v23 }
  0x5a   : > { %v2826_v7 = vld [vmem:[#allocation6 + $0x34] ss:$12 sps:$4 sm:$0xff]   ;;  %2265 = vmatprep.subr.bf16.mxu1 %v2430_v6  ;;  %v2832_v10 = vld [vmem:[#allocation6 + $0x4c] ss:$12 sps:$4 sm:$0xff]   ;;  %v2438_v11 = vld [vmem:[#allocation6 + $0x50] ss:$12 sps:$4 sm:$0xff]  }
  0x5b   : > { %v2835_v12 = vld [vmem:[#allocation6 + $0x48] ss:$12 sps:$4 sm:$0xff]   ;;  %v2838_v13 = vld [vmem:[#allocation6 + $0x64] ss:$12 sps:$4 sm:$0xff]   ;;  %v2841_v15 = vld [vmem:[#allocation6 + $0x60] ss:$12 sps:$4 sm:$0xff]  }
  0x5c   : > { %484 = vmatpush1.bf16.msra.mxu0 %v2823_v5  ;;  %v2442_v14 = vld [vmem:[#allocation6 + $0x68] ss:$12 sps:$4 sm:$0xff]   ;;  %v2846_v17 = vld [vmem:[#allocation6 + $0x78] ss:$12 sps:$4 sm:$0xff]   ;;  %v2446_v18 = vld [vmem:[#allocation6 + $0x80] ss:$12 sps:$4 sm:$0xff]  }
  0x5d   : > { %485 = vmatprep.subr.bf16.mxu0 %v2826_v7  ;;  %2266 = vmatpush3.bf16.msra.mxu1 %v2430_v6  ;;  %v2844_v16 = vld [vmem:[#allocation6 + $0x7c] ss:$12 sps:$4 sm:$0xff]   ;;  %v2848_v19 = vld [vmem:[#allocation6 + $0x94] ss:$12 sps:$4 sm:$0xff]   ;;  %v2450_v29 = vld [vmem:[#allocation6 + $0x98] ss:$12 sps:$4 sm:$0xff]  }
  0x5e   : > { %2267 = vmatprep.subr.bf16.mxu1 %v2434_v8  ;;  %v2855_v21 = vld [vmem:[%s2802_s9 + $0x8] sm:$0xff]  ;;  %v239_v22 = vld [vmem:[#allocation2] sm:$0x80]  ;;  %v2867_v27 = vld [vmem:[%s2802_s9 + $0x20] sm:$0xff]  ;;  %vm280_vm0 = vsmask.f32 256 }
  0x5f   : > { %v222_v24 = vpack.c.bf16 %v2855_v21, %v2851_v20  ;;  %v282_v25 = vshrl.u32 %v239_v22, 16  ;;  %v2870_v28 = vld [vmem:[%s2802_s9 + $0x28] sm:$0xff]  ;;  %v2877_v34 = vld [vmem:[#allocation6 + $0x90] ss:$12 sps:$4 sm:$0xff]   ;;  %v2880_v35 = vrot.slane %v2633_v0, 7  ;;  %v302_v36 = vshrl.u32 %v227_v30, 16 }
  0x60   : > { %486 = vmatpush1.bf16.msra.mxu0 %v2829_v9  ;;  %v232_v31 = vpack.c.bf16 %v2870_v28, %v2867_v27  ;;  %v2883_v37 = vld [vmem:[#allocation6 + $0xac] ss:$12 sps:$4 sm:$0xff]   ;;  %v2454_v38 = vld [vmem:[#allocation6 + $0xb0] ss:$12 sps:$4 sm:$0xff]   ;;  %v2885_v41 = vld [vmem:[#allocation6 + $0xa8] ss:$12 sps:$4 sm:$0xff]  }
  0x61   : > { %487 = vmatprep.subr.bf16.mxu0 %v2832_v10  ;;  %2268 = vmatpush3.bf16.msra.mxu1 %v2434_v8  ;;  %v286_v32 = vshrl.u32 %v222_v24, 16  ;;  %v289_v33 = vshll.u32 %v222_v24, 16  ;;  %v284_v39 = vrot.slane %v282_v25, 7  ;;  %v305_v42 = vshll.u32 %v227_v30, 16  ;;  %v2455_v46 = vld [vmem:[#allocation6 + $0x8] ss:$12 sps:$4 sm:$0xff]  }
  0x62   : > { %2269 = vmatprep.subr.bf16.mxu1 %v2438_v11  ;;  %v318_v43 = vshrl.u32 %v232_v31, 16  ;;  %v304_v45 = vrot.slane %v302_v36, 7  ;;  %v2891_v48 = vld [vmem:[%s2802_s9 + $0x30] sm:$0xff]  ;;  %v2894_v49 = vld [vmem:[%s2802_s9 + $0x38] sm:$0xff]  ;;  %v2456_v51 = vld [vmem:[#allocation6 + $0x20] ss:$12 sps:$4 sm:$0xff]  }
  0x63   : > { %v288_v40 = vrot.slane %v286_v32, 7  ;;  %v321_v55 = vshll.u32 %v232_v31, 16  ;;  %v237_v56 = vpack.c.bf16 %v2894_v49, %v2891_v48  ;;  %v247_v3 = vld [vmem:[#allocation2 + $0x40] sm:$0x1]  ;;  %v2459_v8 = vld [vmem:[#allocation6 + $0x68] ss:$12 sps:$4 sm:$0xff]  }
  0x64   : > { %488 = vmatpush1.bf16.msra.mxu0 %v2835_v12  ;;  %v307_v50 = vor.u32 %v305_v42, %v304_v45  ;;  %v320_v54 = vrot.slane %v318_v43, 7  ;;  %v316_v59 = vsel %vm280_vm0, %v304_v45, %v2880_v35  ;;  %v2457_v6 = vld [vmem:[#allocation6 + $0x38] ss:$12 sps:$4 sm:$0xff]   ;;  %vm687_vm1 = vcmask 1046528   ;;  %s3067_s4 = scalar_lea.vmem [#allocation8], %s2081_s7  ;;  %s2214_s5 = sshll.u32 %s2678_s16, 10 }
  0x65   : > { %489 = vmatprep.subr.bf16.mxu0 %v2838_v13  ;;  %2270 = vmatpush3.bf16.msra.mxu1 %v2438_v11  ;;  %v291_v44 = vor.u32 %v289_v33, %v288_v40  ;;  %v300_v52 = vsel %vm280_vm0, %v288_v40, %v2880_v35  ;;  %v334_v58 = vshrl.u32 %v237_v56, 16  ;;  %v337_v62 = vshll.u32 %v237_v56, 16  ;;  %v2462_v11 = vld [vmem:[#allocation6 + $0xb0] ss:$12 sps:$4 sm:$0xff]   ;;  %s1989_s10 = sshll.u32 %s3067_s4, 4  ;;  %s3100_s28 = scalar_lea.hbm %s3150_s3, %s2214_s5  ;;  %s3102_s10 = int_to_ptr.vmem [resolvable:$true] %s1989_s10 }
  0x66   : > { %2271 = vmatprep.subr.bf16.mxu1 %v2442_v14  ;;  %v308_v53 = vsel %vm280_vm0, %v2880_v35, %v307_v50  ;;  %v323_v57 = vor.u32 %v321_v55, %v320_v54  ;;  %vm736_vm2 = vcmask 1045504   ;;  %s1975_s29 = scalar_lea.sflag [#allocation5], %s2796_s6  ;;  %s2555_s23 = scalar_lea.vmem %s3102_s10, 1024 }
  0x67   : > { %v292_v47 = vsel %vm280_vm0, %v284_v39, %v291_v44  ;;  %v336_v61 = vrot.slane %v334_v58, 7  ;;  %v2942_v39 = vld [vmem:[%s3149_s2] ss:$0 sm:$0xff]  ;;  %p2556_p4 = scmp.ne.s32.totalorder %s3102_s10, %s2555_s23  ;;  %s2634_s16 = smov [#allocation8]  }
  0x68   : > { %490 = vmatpush1.bf16.msra.mxu0 %v2841_v15  ;;  %2279 = vmatprep.mubr.bf16.mxu1 %v292_v47  ;;  %v324_v60 = vsel %vm280_vm0, %v2880_v35, %v323_v57  ;;  %s2559_s30 = sshll.u32 %s2634_s16, 4  ;;  %s2560_s30 = int_to_ptr.vmem [resolvable:$false] %s2559_s30 }
  0x69   : > { %491 = vmatprep.subr.bf16.mxu0 %v2844_v16  ;;  %2272 = vmatpush3.bf16.msra.mxu1 %v2442_v14  ;;  %v339_v63 = vor.u32 %v337_v62, %v336_v61  ;;  %p2557_p6 = pnand %p2556_p4, %p2748_p12  ;;  %s2561_s22 = scalar_lea.vmem %s2560_s30, 2048 }
  0x6a   : > { %2273 = vmatprep.subr.bf16.mxu1 %v2446_v18  ;;  %p2562_p10 = scmp.lt.s32.totalorder %s3102_s10, %s2560_s30  ;;  %p2563_p13 = scmp.lt.s32.totalorder %s2561_s22, %s2555_s23 }
  0x6b   : > { %p2558_p8 = pneg %p2557_p6 }
  0x6c   : > { %492 = vmatpush1.bf16.msra.mxu0 %v2846_v17  ;;  %p2564_p3 = por %p2563_p13, %p2562_p10 }
  0x6d   : > { %493 = vmatprep.subr.bf16.mxu0 %v2848_v19  ;;  %2274 = vmatpush3.bf16.msra.mxu1 %v2446_v18 }
  0x6e   : > { %2275 = vmatprep.subr.bf16.mxu1 %v2450_v29  ;;  %p2565_p7 = pnand %p2564_p3, %p2558_p8 }
  0x70   : > { %494 = vmatpush1.bf16.msra.mxu0 %v2877_v34 }
  0x71   : > { %495 = vmatprep.subr.bf16.mxu0 %v2883_v37  ;;  %2276 = vmatpush3.bf16.msra.mxu1 %v2450_v29 }
  0x72   : > { %2277 = vmatprep.subr.bf16.mxu1 %v2454_v38 }
  0x74   : > { %496 = vmatpush1.bf16.msra.mxu0 %v2885_v41 }
  0x75   : > { %2295 = vmatprep.subr.bf16.mxu0 %v2455_v46  ;;  %2278 = vmatpush3.bf16.msra.mxu1 %v2454_v38 }
  0x76   : > { %1073 = vmatprep.subr.bf16.mxu1 %v2815_v1  ;;  %v332_v1 = vsel %vm280_vm0, %v320_v54, %v2880_v35 }
  0x77   : > { %514 = vmatmul.mubr.bf16.vlgmr.msra.gmra.mrb[0].mxu0 %v292_v47 }
  0x78   : > { %523 = vmatprep.mubr.bf16.mxu0 %v2633_v0  ;;  %2296 = vmatpush3.bf16.msra.mxu0 %v2455_v46 }
  0x79   : > { %2280 = vmatmul.mubr.bf16.vlgmr.msra.gmra.mrb[0].mxu1 %v300_v52  ;;  %2297 = vmatprep.subr.bf16.mxu0 %v2456_v51 }
  0x7a   : > { %2283 = vmatprep.mubr.bf16.mxu1 %v308_v53  ;;  %1074 = vmatpush1.bf16.msra.mxu1 %v2817_v2  ;;  %v340_v2 = vsel %vm280_vm0, %v2880_v35, %v339_v63 }
  0x7b   : > { %1075 = vmatprep.subr.bf16.mxu1 %v2821_v4  ;;  %v342_v4 = vshll.u32 %v247_v3, 16 }
  0x7c   : > { %2298 = vmatpush3.bf16.msra.mxu0 %v2456_v51 }
  0x7d   : > { %2299 = vmatprep.subr.bf16.mxu0 %v2457_v6 }
  0x7e   : > { %1076 = vmatpush1.bf16.msra.mxu1 %v2823_v5  ;;  %v344_v5 = vsel %vm280_vm0, %v336_v61, %v342_v4  ;;  %v832_v4 = vld [vmem:[#allocation2] sm:$0x80] }
  0x7f   : > { %524 = vmatmul.mubr.bf16.gmra.mrb[4].mxu0 %v300_v52  ;;  %1077 = vmatprep.subr.bf16.mxu1 %v2826_v7  ;;  %v2458_v7 = vld [vmem:[#allocation6 + $0x50] ss:$12 sps:$4 sm:$0xff]  }
  0x80   : > { %530 = vmatprep.mubr.bf16.mxu0 %v2633_v0  ;;  %2300 = vmatpush3.bf16.msra.mxu0 %v2457_v6 }
  0x81   : > { %2284 = vmatmul.mubr.bf16.gmra.mrb[4].mxu1 %v316_v59  ;;  %2301 = vmatprep.subr.bf16.mxu0 %v2458_v7 }
  0x82   : > { %2287 = vmatprep.mubr.bf16.mxu1 %v324_v60  ;;  %1078 = vmatpush1.bf16.msra.mxu1 %v2829_v9  ;;  %v2460_v9 = vld [vmem:[#allocation6 + $0x80] ss:$12 sps:$4 sm:$0xff]  }
  0x83   : > { %1079 = vmatprep.subr.bf16.mxu1 %v2832_v10  ;;  %v2461_v10 = vld [vmem:[#allocation6 + $0x98] ss:$12 sps:$4 sm:$0xff]  }
  0x84   : > { %2302 = vmatpush3.bf16.msra.mxu0 %v2458_v7 }
  0x85   : > { %2303 = vmatprep.subr.bf16.mxu0 %v2459_v8 }
  0x86   : > { %1080 = vmatpush1.bf16.msra.mxu1 %v2835_v12 }
  0x87   : > { %531 = vmatmul.mubr.bf16.gmra.mrb[8].mxu0 %v308_v53  ;;  %1081 = vmatprep.subr.bf16.mxu1 %v2838_v13 }
  0x88   : > { %540 = vmatprep.mubr.bf16.mxu0 %v2633_v0  ;;  %2304 = vmatpush3.bf16.msra.mxu0 %v2459_v8 }
  0x89   : > { %2288 = vmatmul.mubr.bf16.gmra.mrb[8].mxu1 %v332_v1  ;;  %2305 = vmatprep.subr.bf16.mxu0 %v2460_v9 }
  0x8a   : > { %2291 = vmatprep.mubr.bf16.mxu1 %v340_v2  ;;  %1082 = vmatpush1.bf16.msra.mxu1 %v2841_v15 }
  0x8b   : > { %1083 = vmatprep.subr.bf16.mxu1 %v2844_v16 }
  0x8c   : > { %2306 = vmatpush3.bf16.msra.mxu0 %v2460_v9 }
  0x8d   : > { %2307 = vmatprep.subr.bf16.mxu0 %v2461_v10 }
  0x8e   : > { %1084 = vmatpush1.bf16.msra.mxu1 %v2846_v17 }
  0x8f   : > { %541 = vmatmul.mubr.bf16.gmra.mrb[12].mxu0 %v316_v59  ;;  %1085 = vmatprep.subr.bf16.mxu1 %v2848_v19 }
  0x90   : > { %547 = vmatprep.mubr.bf16.mxu0 %v2633_v0  ;;  %2308 = vmatpush3.bf16.msra.mxu0 %v2461_v10 }
  0x91   : > { %2292 = vmatmul.mubr.bf16.gmra.mrb[12].mxu1 %v344_v5  ;;  %2309 = vmatprep.subr.bf16.mxu0 %v2462_v11 }
  0x92   : > { %1086 = vmatpush1.bf16.msra.mxu1 %v2877_v34  ;;  %1105 = vmatprep.mubr.bf16.mxu1 %v2633_v0 }
  0x93   : > { %1087 = vmatprep.subr.bf16.mxu1 %v2883_v37 }
  0x94   : > { %2310 = vmatpush3.bf16.msra.mxu0 %v2462_v11 }
  0x96   : > { %1088 = vmatpush1.bf16.msra.mxu1 %v2885_v41 }
  0x97   : > { %548 = vmatmul.mubr.bf16.gmra.mrb[16].mxu0 %v324_v60 }
  0x98   : > { %557 = vmatprep.mubr.bf16.mxu0 %v2633_v0 }
  0x9f   : > { %558 = vmatmul.mubr.bf16.gmra.mrb[20].mxu0 %v332_v1 }
  0xa0   : > { %564 = vmatprep.mubr.bf16.mxu0 %v2633_v0 }
  0xa7   : > { %565 = vmatmul.mubr.bf16.gmra.mrb[24].mxu0 %v340_v2 }
  0xa8   : > { %574 = vmatprep.mubr.bf16.mxu0 %v2633_v0 }
  0xaf   : > { %575 = vmatmul.mubr.bf16.gmra.mrb[28].mxu0 %v344_v5 }
 0x14a   : > { %v515_v12 = vpop.f32.mrb[0].mxu0 }
 0x14b   : > { %v517_v13 = vpop.f32.mrb[1].mxu0 }
 0x14c   : > { %v519_v14 = vpop.f32.mrb[2].mxu0  ;;  %v2281_v15 = vpop.f32.mrb[0].mxu1  ;;  %v688_v18 = vrot.slane %v517_v13, 1 }
 0x14d   : > { %v521_v16 = vpop.f32.mrb[3].mxu0  ;;  %v616_v17 = vpop.f32.mrb[1].mxu1  ;;  %v740_v19 = vrot.slane %v2281_v15, 2 }
 0x14e   : > { %v689_v22 = vrot.slane %v521_v16, 1  ;;  %v737_v24 = vrot.slane %v616_v17, 2  ;;  %v2282_v25 = vpop.f32.mrb[2].mxu1  ;;  %v874_v17 = vshrl.u32 %v832_v4, 16 }
 0x14f   : > { %v619_v29 = vpop.f32.mrb[3].mxu1 }
 0x150   : > { %v690_v30 = vsel %vm687_vm1, %v688_v18, %v689_v22  ;;  %v738_v31 = vrot.slane %v619_v29, 2 }
 0x151   : > { %v716_v32 = vadd.f32 %v690_v30, %v515_v12 }
 0x152   : > { %v739_v33 = vsel %vm736_vm2, %v737_v24, %v738_v31  ;;  %v741_v34 = vsel %vm736_vm2, %v738_v31, %v740_v19  ;;  %v525_v36 = vpop.f32.mrb[4].mxu0 }
 0x153   : > { %v765_v37 = vadd.f32 %v739_v33, %v716_v32  ;;  %v526_v38 = vpop.f32.mrb[5].mxu0 }
 0x154   : > { %v691_v40 = vrot.slane %v526_v38, 1  ;;  %v528_v41 = vpop.f32.mrb[6].mxu0  ;;  %v2285_v42 = vpop.f32.mrb[4].mxu1 }
 0x155   : > { %v529_v43 = vpop.f32.mrb[7].mxu0  ;;  %v631_v44 = vpop.f32.mrb[5].mxu1  ;;  %v745_v46 = vrot.slane %v2285_v42, 2  ;;  %v773_v51 = vadd.f32 %v2942_v39, %v765_v37 }
 0x156   : > { %v692_v45 = vsel %vm687_vm1, %v689_v22, %v691_v40  ;;  %v742_v47 = vrot.slane %v631_v44, 2  ;;  %v2286_v50 = vpop.f32.mrb[6].mxu1 }
 0x157   : > { %v717_v52 = vadd.f32 %v692_v45, %v519_v14  ;;  %v634_v53 = vpop.f32.mrb[7].mxu1  ;;  %v775_v59 = vmax.f32 %v773_v51, 0.0 }
 0x158   : > { %v743_v54 = vrot.slane %v634_v53, 2 }
 0x159   : > { %v766_v55 = vadd.f32 %v741_v34, %v717_v52  ;;  %v804_v10 = vadd.f32 %v775_v59, %v2851_v20 }
 0x15a   : > { %v532_v56 = vpop.f32.mrb[8].mxu0  ;;  %v744_v57 = vsel %vm736_vm2, %v742_v47, %v743_v54  ;;  %v746_v58 = vsel %vm736_vm2, %v743_v54, %v745_v46 }
 0x15b   : > { %v774_v60 = vadd.f32 %v2942_v39, %v766_v55  ;;  %v534_v61 = vpop.f32.mrb[9].mxu0 }
 0x15c   : > { %v536_v62 = vpop.f32.mrb[10].mxu0  ;;  %v2289_v63 = vpop.f32.mrb[8].mxu1  ;;  %v693_v5 = vrot.slane %v534_v61, 1 }
 0x15d   : > { %v776_v1 = vmax.f32 %v774_v60, 0.0  ;;  %v538_v2 = vpop.f32.mrb[11].mxu0  ;;  %v646_v3 = vpop.f32.mrb[9].mxu1  ;;  %v750_v7 = vrot.slane %v2289_v63, 2 }
 0x15e   : > { %v694_v6 = vrot.slane %v538_v2, 1  ;;  %v747_v8 = vrot.slane %v646_v3, 2  ;;  %v2290_v9 = vpop.f32.mrb[10].mxu1 }
 0x15f   : > { %v805_v11 = vadd.f32 %v776_v1, %v2855_v21  ;;  %v649_v12 = vpop.f32.mrb[11].mxu1  ;;  %v876_v21 = vrot.slane %v874_v17, 7 }
 0x160   : > { %v695_v13 = vsel %vm687_vm1, %v693_v5, %v694_v6  ;;  %v748_v14 = vrot.slane %v649_v12, 2 }
 0x161   : > { %v806_v15 = vpack.c.bf16 %v805_v11, %v804_v10  ;;  %v718_v16 = vadd.f32 %v695_v13, %v532_v56 }
 0x162   : > { %v542_v18 = vpop.f32.mrb[12].mxu0  ;;  %v749_v19 = vsel %vm736_vm2, %v747_v8, %v748_v14  ;;  %v751_v22 = vsel %vm736_vm2, %v748_v14, %v750_v7 }
 0x163   : > { %v767_v24 = vadd.f32 %v744_v57, %v718_v16  ;;  %v543_v25 = vpop.f32.mrb[13].mxu0  ;;  %v878_v29 = vshrl.u32 %v806_v15, 16  ;;  %v881_v36 = vshll.u32 %v806_v15, 16 }
 0x164   : > { %v696_v30 = vrot.slane %v543_v25, 1  ;;  %v545_v31 = vpop.f32.mrb[14].mxu0  ;;  %v2293_v32 = vpop.f32.mrb[12].mxu1 }
 0x165   : > { %v546_v33 = vpop.f32.mrb[15].mxu0  ;;  %v880_v34 = vrot.slane %v878_v29, 7  ;;  %v661_v37 = vpop.f32.mrb[13].mxu1  ;;  %v755_v40 = vrot.slane %v2293_v32, 2  ;;  %v779_v43 = vadd.f32 %v2942_v39, %v767_v24 }
 0x166   : > { %v697_v38 = vsel %vm687_vm1, %v694_v6, %v696_v30  ;;  %v752_v41 = vrot.slane %v661_v37, 2  ;;  %v2294_v42 = vpop.f32.mrb[14].mxu1 }
 0x167   : > { %v719_v44 = vadd.f32 %v697_v38, %v536_v62  ;;  %v883_v45 = vor.u32 %v881_v36, %v880_v34  ;;  %v664_v46 = vpop.f32.mrb[15].mxu1  ;;  %v892_v53 = vsel %vm280_vm0, %v880_v34, %v2880_v35  ;;  %v781_v56 = vmax.f32 %v779_v43, 0.0 }
 0x168   : > { %v753_v47 = vrot.slane %v664_v46, 2 }
 0x169   : > { %v768_v50 = vadd.f32 %v746_v58, %v719_v44  ;;  %v884_v51 = vsel %vm280_vm0, %v876_v21, %v883_v45  ;;  %v812_v1 = vadd.f32 %v2858_v23, %v781_v56 }
 0x16a   : > { %v549_v52 = vpop.f32.mrb[16].mxu0  ;;  %1106 = vmatmul.mubr.bf16.vlgmr.msra.gmra.mrb[16].mxu1 %v884_v51  ;;  %2311 = vmatprep.mubr.bf16.mxu0 %v884_v51  ;;  %v754_v54 = vsel %vm736_vm2, %v752_v41, %v753_v47  ;;  %v2961_v55 = vsel %vm736_vm2, %v753_v47, %v755_v40 }
 0x16b   : > { %v780_v57 = vadd.f32 %v2942_v39, %v768_v50  ;;  %v551_v59 = vpop.f32.mrb[17].mxu0  ;;  %2312 = vmatmul.mubr.bf16.vlgmr.msra.gmra.mrb[32].mxu0 %v892_v53  ;;  %1115 = vmatprep.mubr.bf16.mxu1 %v2633_v0 }
 0x16c   : > { %v553_v58 = vpop.f32.mrb[18].mxu0  ;;  %v698_v62 = vrot.slane %v551_v59, 1 }
 0x16d   : > { %v782_v60 = vmax.f32 %v780_v57, 0.0  ;;  %v555_v61 = vpop.f32.mrb[19].mxu0 }
 0x16e   : > { %v699_v63 = vrot.slane %v555_v61, 1 }
 0x16f   : > { %v813_v2 = vadd.f32 %v2864_v26, %v782_v60 }
 0x170   : > { %v700_v3 = vsel %vm687_vm1, %v698_v62, %v699_v63 }
 0x171   : > { %v814_v4 = vpack.c.bf16 %v813_v2, %v812_v1  ;;  %v720_v5 = vadd.f32 %v700_v3, %v549_v52  ;;  %v840_v1 = vld [vmem:[#allocation2 + $0x40] sm:$0x1] }
 0x172   : > { %v559_v6 = vpop.f32.mrb[20].mxu0  ;;  %1116 = vmatmul.mubr.bf16.gmra.mrb[20].mxu1 %v892_v53 }
 0x173   : > { %v769_v7 = vadd.f32 %v749_v19, %v720_v5  ;;  %v560_v8 = vpop.f32.mrb[21].mxu0  ;;  %1122 = vmatprep.mubr.bf16.mxu1 %v2633_v0  ;;  %v894_v9 = vshrl.u32 %v814_v4, 16  ;;  %v897_v14 = vshll.u32 %v814_v4, 16  ;;  %v934_v4 = vshll.u32 %v840_v1, 16 }
 0x174   : > { %v701_v10 = vrot.slane %v560_v8, 1  ;;  %v562_v11 = vpop.f32.mrb[22].mxu0  ;;  %v2466_v8 = vld [vmem:[#allocation6 + $0x8] ss:$12 sps:$4 sm:$0xff]  }
 0x175   : > { %v563_v12 = vpop.f32.mrb[23].mxu0  ;;  %v896_v13 = vrot.slane %v894_v9, 7  ;;  %v786_v26 = vadd.f32 %v2942_v39, %v769_v7  ;;  %2327 = vmatprep.subr.bf16.mxu1 %v2466_v8  ;;  %v2469_v9 = vld [vmem:[#allocation6 + $0x1c] ss:$12 sps:$4 sm:$0xff]   ;;  %v2473_v11 = vld [vmem:[#allocation6 + $0x34] ss:$12 sps:$4 sm:$0xff]  }
 0x176   : > { %v702_v23 = vsel %vm687_vm1, %v699_v63, %v701_v10  ;;  %2328 = vmatpush3.bf16.msra.mxu1 %v2466_v8  ;;  %v2467_v10 = vld [vmem:[#allocation6 + $0x18] ss:$12 sps:$4 sm:$0xff]   ;;  %v2471_v12 = vld [vmem:[#allocation6 + $0x30] ss:$12 sps:$4 sm:$0xff]  }
 0x177   : > { %v721_v15 = vadd.f32 %v702_v23, %v553_v58  ;;  %v899_v16 = vor.u32 %v897_v14, %v896_v13  ;;  %v908_v24 = vsel %vm280_vm0, %v896_v13, %v2880_v35  ;;  %v788_v25 = vmax.f32 %v786_v26, 0.0  ;;  %v2474_v13 = vld [vmem:[#allocation6 + $0x38] ss:$12 sps:$4 sm:$0xff]   ;;  %v2475_v14 = vld [vmem:[#allocation6 + $0x48] ss:$12 sps:$4 sm:$0xff]  }
 0x178   : > { %v2478_v23 = vld [vmem:[#allocation6 + $0x50] ss:$12 sps:$4 sm:$0xff]  }
 0x179   : > { %v770_v17 = vadd.f32 %v751_v22, %v721_v15  ;;  %v900_v18 = vsel %vm280_vm0, %v2880_v35, %v899_v16  ;;  %v820_v34 = vadd.f32 %v2867_v27, %v788_v25  ;;  %v2481_v26 = vld [vmem:[#allocation6 + $0x64] ss:$12 sps:$4 sm:$0xff]   ;;  %v2479_v15 = vld [vmem:[#allocation6 + $0x60] ss:$12 sps:$4 sm:$0xff]   ;;  %v2482_v16 = vld [vmem:[#allocation6 + $0x68] ss:$12 sps:$4 sm:$0xff]  }
 0x17a   : > { %v566_v19 = vpop.f32.mrb[24].mxu0  ;;  %1123 = vmatmul.mubr.bf16.gmra.mrb[24].mxu1 %v900_v18  ;;  %2315 = vmatprep.mubr.bf16.mxu0 %v900_v18  ;;  %v2483_v18 = vld [vmem:[#allocation6 + $0x78] ss:$12 sps:$4 sm:$0xff]   ;;  %v2487_v25 = vld [vmem:[#allocation6 + $0x90] ss:$12 sps:$4 sm:$0xff]  }
 0x17b   : > { %v787_v29 = vadd.f32 %v2942_v39, %v770_v17  ;;  %v568_v30 = vpop.f32.mrb[25].mxu0  ;;  %2316 = vmatmul.mubr.bf16.gmra.mrb[36].mxu0 %v908_v24  ;;  %1132 = vmatprep.mubr.bf16.mxu1 %v2633_v0  ;;  %v2485_v17 = vld [vmem:[#allocation6 + $0x7c] ss:$12 sps:$4 sm:$0xff]  }
 0x17c   : > { %v570_v31 = vpop.f32.mrb[26].mxu0  ;;  %v703_v22 = vrot.slane %v568_v30, 1  ;;  %v2493_v30 = vld [vmem:[#allocation6 + $0xac] ss:$12 sps:$4 sm:$0xff]  }
 0x17d   : > { %v789_v32 = vmax.f32 %v787_v29, 0.0  ;;  %v572_v33 = vpop.f32.mrb[27].mxu0  ;;  %v2490_v29 = vld [vmem:[#allocation6 + $0x98] ss:$12 sps:$4 sm:$0xff]  }
 0x17e   : > { %v704_v21 = vrot.slane %v572_v33, 1 }
 0x17f   : > { %v821_v36 = vadd.f32 %v2870_v28, %v789_v32  ;;  %v2494_v32 = vld [vmem:[#allocation6 + $0xb0] ss:$12 sps:$4 sm:$0xff]  }
 0x180   : > { %v705_v37 = vsel %vm687_vm1, %v703_v22, %v704_v21 }
 0x181   : > { %v822_v38 = vpack.c.bf16 %v821_v36, %v820_v34  ;;  %v722_v40 = vadd.f32 %v705_v37, %v566_v19  ;;  %v2486_v19 = vld [vmem:[#allocation6 + $0x80] ss:$12 sps:$4 sm:$0xff]  }
 0x182   : > { %v576_v41 = vpop.f32.mrb[28].mxu0  ;;  %1133 = vmatmul.mubr.bf16.gmra.mrb[28].mxu1 %v908_v24  ;;  %v2489_v24 = vld [vmem:[#allocation6 + $0x94] ss:$12 sps:$4 sm:$0xff]  }
 0x183   : > { %v771_v42 = vadd.f32 %v754_v54, %v722_v40  ;;  %v577_v43 = vpop.f32.mrb[29].mxu0  ;;  %1139 = vmatprep.mubr.bf16.mxu1 %v2633_v0  ;;  %v910_v44 = vshrl.u32 %v822_v38, 16  ;;  %v913_v51 = vshll.u32 %v822_v38, 16 }
 0x184   : > { %v706_v45 = vrot.slane %v577_v43, 1  ;;  %v579_v46 = vpop.f32.mrb[30].mxu0 }
 0x185   : > { %v580_v47 = vpop.f32.mrb[31].mxu0  ;;  %v912_v50 = vrot.slane %v910_v44, 7  ;;  %v793_v28 = vadd.f32 %v2942_v39, %v771_v42 }
 0x186   : > { %v707_v27 = vsel %vm687_vm1, %v704_v21, %v706_v45 }
 0x187   : > { %v723_v52 = vadd.f32 %v707_v27, %v570_v31  ;;  %v915_v53 = vor.u32 %v913_v51, %v912_v50  ;;  %v924_v57 = vsel %vm280_vm0, %v912_v50, %v2880_v35  ;;  %v795_v59 = vmax.f32 %v793_v28, 0.0  ;;  %v2491_v31 = vld [vmem:[#allocation6 + $0xa8] ss:$12 sps:$4 sm:$0xff]  }
 0x189   : > { %v772_v56 = vadd.f32 %v2961_v55, %v723_v52  ;;  %v916_v54 = vsel %vm280_vm0, %v2880_v35, %v915_v53  ;;  %v828_v61 = vadd.f32 %v2891_v48, %v795_v59  ;;  %v2465_v48 = vld [vmem:[#allocation6 + $0x4] ss:$12 sps:$4 sm:$0xff]  }
 0x18a   : > { %1140 = vmatmul.mubr.bf16.gmra.mrb[32].mxu1 %v916_v54  ;;  %2319 = vmatprep.mubr.bf16.mxu0 %v916_v54 }
 0x18b   : > { %v794_v58 = vadd.f32 %v2942_v39, %v772_v56  ;;  %2320 = vmatmul.mubr.bf16.gmra.mrb[40].mxu0 %v924_v57  ;;  %1149 = vmatprep.mubr.bf16.mxu1 %v2633_v0 }
 0x18c   : > { %1660 = vmatprep.subr.bf16.mxu0 %v2465_v48  ;;  %v1419_v48 = vld [vmem:[#allocation2] sm:$0x80] }
 0x18d   : > { %v796_v60 = vmax.f32 %v794_v58, 0.0 }
 0x18f   : > { %v829_v62 = vadd.f32 %v2894_v49, %v796_v60  ;;  %v2463_v49 = vld [vmem:[#allocation6] ss:$12 sps:$4 sm:$0xff]  }
 0x190   : > { %1661 = vmatpush1.bf16.msra.mxu0 %v2463_v49 }
 0x191   : > { %v830_v55 = vpack.c.bf16 %v829_v62, %v828_v61  ;;  %1662 = vmatprep.subr.bf16.mxu0 %v2469_v9 }
 0x192   : > { %1150 = vmatmul.mubr.bf16.gmra.mrb[36].mxu1 %v924_v57 }
 0x193   : > { %1156 = vmatprep.mubr.bf16.mxu1 %v2633_v0  ;;  %v926_v63 = vshrl.u32 %v830_v55, 16  ;;  %v929_v3 = vshll.u32 %v830_v55, 16 }
 0x194   : > { %1663 = vmatpush1.bf16.msra.mxu0 %v2467_v10 }
 0x195   : > { %v928_v2 = vrot.slane %v926_v63, 7  ;;  %1664 = vmatprep.subr.bf16.mxu0 %v2473_v11 }
 0x197   : > { %v931_v5 = vor.u32 %v929_v3, %v928_v2  ;;  %v936_v7 = vsel %vm280_vm0, %v928_v2, %v934_v4  ;;  %v1388_v4 = vld [vmem:[%s2802_s9 + $0x8] sm:$0xff] }
 0x198   : > { %1665 = vmatpush1.bf16.msra.mxu0 %v2471_v12 }
 0x199   : > { %v932_v6 = vsel %vm280_vm0, %v2880_v35, %v931_v5  ;;  %v2470_v35 = vld [vmem:[#allocation6 + $0x20] ss:$12 sps:$4 sm:$0xff]  }
 0x19a   : > { %1157 = vmatmul.mubr.bf16.gmra.mrb[40].mxu1 %v932_v6  ;;  %2323 = vmatprep.mubr.bf16.mxu0 %v932_v6 }
 0x19b   : > { %2324 = vmatmul.mubr.bf16.gmra.mrb[44].mxu0 %v936_v7  ;;  %1166 = vmatprep.mubr.bf16.mxu1 %v2633_v0 }
 0x19c   : > { %1692 = vmatprep.mubr.bf16.mxu0 %v2633_v0  ;;  %2329 = vmatprep.subr.bf16.mxu1 %v2470_v35  ;;  %v2477_v0 = vld [vmem:[#allocation6 + $0x4c] ss:$12 sps:$4 sm:$0xff]  }
 0x19d   : > { %2330 = vmatpush3.bf16.msra.mxu1 %v2470_v35  ;;  %1666 = vmatprep.subr.bf16.mxu0 %v2477_v0  ;;  %v3006_v35 = vld [vmem:[#allocation2] sm:$0xff] }
 0x19e   : > { %2331 = vmatprep.subr.bf16.mxu1 %v2474_v13  ;;  %1667 = vmatpush1.bf16.msra.mxu0 %v2475_v14  ;;  %v1473_v11 = vshrl.u32 %v3006_v35, 16 }
 0x19f   : > { %1668 = vmatprep.subr.bf16.mxu0 %v2481_v26  ;;  %v1461_v26 = vshrl.u32 %v1419_v48, 16 }
 0x1a1   : > { %2332 = vmatpush3.bf16.msra.mxu1 %v2474_v13 }
 0x1a2   : > { %1167 = vmatmul.mubr.bf16.gmra.mrb[44].mxu1 %v936_v7  ;;  %2333 = vmatprep.subr.bf16.mxu1 %v2478_v23 }
 0x1a3   : > { %1669 = vmatpush1.bf16.msra.mxu0 %v2479_v15 }
 0x1a4   : > { %1670 = vmatprep.subr.bf16.mxu0 %v2485_v17 }
 0x1a5   : > { %2334 = vmatpush3.bf16.msra.mxu1 %v2478_v23 }
 0x1a6   : > { %2335 = vmatprep.subr.bf16.mxu1 %v2482_v16 }
 0x1a7   : > { %1671 = vmatpush1.bf16.msra.mxu0 %v2483_v18 }
 0x1a8   : > { %1672 = vmatprep.subr.bf16.mxu0 %v2489_v24  ;;  %v1476_v24 = vshll.u32 %v3006_v35, 16 }
 0x1a9   : > { %2336 = vmatpush3.bf16.msra.mxu1 %v2482_v16 }
 0x1aa   : > { %2337 = vmatprep.subr.bf16.mxu1 %v2486_v19 }
 0x1ab   : > { %1673 = vmatpush1.bf16.msra.mxu0 %v2487_v25 }
 0x1ac   : > { %1674 = vmatprep.subr.bf16.mxu0 %v2493_v30 }
 0x1ad   : > { %2338 = vmatpush3.bf16.msra.mxu1 %v2486_v19  ;;  %v3012_v19 = vrot.slane %v1473_v11, 7 }
 0x1ae   : > { %2339 = vmatprep.subr.bf16.mxu1 %v2490_v29 }
 0x1af   : > { %1675 = vmatpush1.bf16.msra.mxu0 %v2491_v31 }
 0x1b1   : > { %2340 = vmatpush3.bf16.msra.mxu1 %v2490_v29 }
 0x1b2   : > { %2341 = vmatprep.subr.bf16.mxu1 %v2494_v32 }
 0x1b5   : > { %2342 = vmatpush3.bf16.msra.mxu1 %v2494_v32 }
 0x23d   : > { %v1107_v33 = vpop.f32.mrb[16].mxu1 }
 0x23e   : > { %v1109_v22 = vpop.f32.mrb[17].mxu1  ;;  %v2313_v21 = vpop.f32.mrb[32].mxu0 }
 0x23f   : > { %v1111_v34 = vpop.f32.mrb[18].mxu1  ;;  %v1208_v36 = vpop.f32.mrb[33].mxu0  ;;  %v1279_v40 = vrot.slane %v1109_v22, 1  ;;  %v1330_v43 = vrot.slane %v2313_v21, 2  ;;  %v1463_v22 = vrot.slane %v1461_v26, 7 }
 0x240   : > { %v1113_v37 = vpop.f32.mrb[19].mxu1  ;;  %v2314_v38 = vpop.f32.mrb[34].mxu0  ;;  %v1327_v44 = vrot.slane %v1208_v36, 2 }
 0x241   : > { %v1280_v41 = vrot.slane %v1113_v37, 1  ;;  %v1211_v42 = vpop.f32.mrb[35].mxu0  ;;  %v3018_v38 = vor.u32 %v1476_v24, %v3012_v19 }
 0x242   : > { %v1328_v45 = vrot.slane %v1211_v42, 2 }
 0x243   : > { %v1281_v46 = vsel %vm687_vm1, %v1279_v40, %v1280_v41 }
 0x244   : > { %v1307_v47 = vadd.f32 %v1281_v46, %v1107_v33  ;;  %v1329_v50 = vsel %vm736_vm2, %v1327_v44, %v1328_v45  ;;  %v1331_v51 = vsel %vm736_vm2, %v1328_v45, %v1330_v43 }
 0x245   : > { %v1117_v27 = vpop.f32.mrb[20].mxu1 }
 0x246   : > { %v1355_v28 = vadd.f32 %v1329_v50, %v1307_v47  ;;  %v1118_v52 = vpop.f32.mrb[21].mxu1  ;;  %v2163_v27 = vld [vmem:[%s2802_s9 + $0x10] sm:$0xff] }
 0x247   : > { %v1282_v53 = vrot.slane %v1118_v52, 1  ;;  %v1120_v56 = vpop.f32.mrb[22].mxu1 }
 0x248   : > { %v1121_v54 = vpop.f32.mrb[23].mxu1  ;;  %v1363_v57 = vadd.f32 %v2942_v39, %v1355_v28 }
 0x249   : > { %v1283_v59 = vsel %vm687_vm1, %v1280_v41, %v1282_v53  ;;  %v2164_v53 = vld [vmem:[%s2802_s9 + $0x18] sm:$0xff] }
 0x24a   : > { %v1308_v58 = vadd.f32 %v1283_v59, %v1111_v34  ;;  %v1365_v61 = vmax.f32 %v1363_v57, 0.0 }
 0x24c   : > { %v1356_v60 = vadd.f32 %v1331_v51, %v1308_v58  ;;  %v1391_v49 = vadd.f32 %v1365_v61, %v2851_v20 }
 0x24d   : > { %v1124_v62 = vpop.f32.mrb[24].mxu1 }
 0x24e   : > { %v1364_v55 = vadd.f32 %v2942_v39, %v1356_v60  ;;  %v1126_v63 = vpop.f32.mrb[25].mxu1  ;;  %v2317_v1 = vpop.f32.mrb[36].mxu0 }
 0x24f   : > { %v1128_v2 = vpop.f32.mrb[26].mxu1  ;;  %v1223_v3 = vpop.f32.mrb[37].mxu0  ;;  %v1284_v8 = vrot.slane %v1126_v63, 1  ;;  %v1335_v12 = vrot.slane %v2317_v1, 2 }
 0x250   : > { %v1366_v5 = vmax.f32 %v1364_v55, 0.0  ;;  %v1130_v6 = vpop.f32.mrb[27].mxu1  ;;  %v2318_v7 = vpop.f32.mrb[38].mxu0  ;;  %v1332_v13 = vrot.slane %v1223_v3, 2 }
 0x251   : > { %v1285_v9 = vrot.slane %v1130_v6, 1  ;;  %v1226_v10 = vpop.f32.mrb[39].mxu0 }
 0x252   : > { %v1333_v0 = vrot.slane %v1226_v10, 2  ;;  %v1392_v14 = vadd.f32 %v1388_v4, %v1366_v5 }
 0x253   : > { %v1286_v23 = vsel %vm687_vm1, %v1284_v8, %v1285_v9 }
 0x254   : > { %v1309_v15 = vadd.f32 %v1286_v23, %v1124_v62  ;;  %v1334_v16 = vsel %vm736_vm2, %v1332_v13, %v1333_v0  ;;  %v1336_v17 = vsel %vm736_vm2, %v1333_v0, %v1335_v12  ;;  %v1393_v20 = vpack.c.bf16 %v1392_v14, %v1391_v49 }
 0x255   : > { %v1134_v18 = vpop.f32.mrb[28].mxu1 }
 0x256   : > { %v1357_v25 = vadd.f32 %v1334_v16, %v1309_v15  ;;  %v1135_v29 = vpop.f32.mrb[29].mxu1  ;;  %v1465_v30 = vshrl.u32 %v1393_v20, 16  ;;  %v1468_v34 = vshll.u32 %v1393_v20, 16 }
 0x257   : > { %v1287_v31 = vrot.slane %v1135_v29, 1  ;;  %v1137_v32 = vpop.f32.mrb[30].mxu1 }
 0x258   : > { %v1138_v33 = vpop.f32.mrb[31].mxu1  ;;  %v1467_v21 = vrot.slane %v1465_v30, 7  ;;  %v1369_v36 = vadd.f32 %v2942_v39, %v1357_v25  ;;  %v2167_v30 = vld [vmem:[%s2802_s9 + $0x20] sm:$0xff] }
 0x259   : > { %v1288_v37 = vsel %vm687_vm1, %v1285_v9, %v1287_v31  ;;  %v2168_v33 = vld [vmem:[%s2802_s9 + $0x28] sm:$0xff] }
 0x25a   : > { %v1310_v40 = vadd.f32 %v1288_v37, %v1128_v2  ;;  %v1470_v41 = vor.u32 %v1468_v34, %v1467_v21  ;;  %v1371_v44 = vmax.f32 %v1369_v36, 0.0  ;;  %v1479_v46 = vsel %vm280_vm0, %v1467_v21, %v3018_v38 }
 0x25c   : > { %v1358_v42 = vadd.f32 %v1336_v17, %v1310_v40  ;;  %v1471_v43 = vsel %vm280_vm0, %v1463_v22, %v1470_v41  ;;  %v1399_v61 = vadd.f32 %v2163_v27, %v1371_v44 }
 0x25d   : > { %v1141_v45 = vpop.f32.mrb[32].mxu1  ;;  %1693 = vmatmul.mubr.bf16.vlgmr.msra.gmra.mrb[48].mxu0 %v1471_v43  ;;  %2343 = vmatprep.mubr.bf16.mxu1 %v1471_v43 }
 0x25e   : > { %v1370_v47 = vadd.f32 %v2942_v39, %v1358_v42  ;;  %v1143_v50 = vpop.f32.mrb[33].mxu1  ;;  %v2321_v51 = vpop.f32.mrb[40].mxu0  ;;  %2344 = vmatmul.mubr.bf16.vlgmr.msra.gmra.mrb[48].mxu1 %v1479_v46  ;;  %1702 = vmatprep.mubr.bf16.mxu0 %v3006_v35 }
 0x25f   : > { %v1145_v28 = vpop.f32.mrb[34].mxu1  ;;  %v1238_v52 = vpop.f32.mrb[41].mxu0  ;;  %v1289_v59 = vrot.slane %v1143_v50, 1  ;;  %v1340_v62 = vrot.slane %v2321_v51, 2 }
 0x260   : > { %v1372_v56 = vmax.f32 %v1370_v47, 0.0  ;;  %v1147_v54 = vpop.f32.mrb[35].mxu1  ;;  %v2322_v57 = vpop.f32.mrb[42].mxu0  ;;  %v1337_v55 = vrot.slane %v1238_v52, 2 }
 0x261   : > { %v1290_v58 = vrot.slane %v1147_v54, 1  ;;  %v1241_v60 = vpop.f32.mrb[43].mxu0 }
 0x262   : > { %v1338_v63 = vrot.slane %v1241_v60, 2  ;;  %v1400_v1 = vadd.f32 %v2164_v53, %v1372_v56 }
 0x263   : > { %v1291_v2 = vsel %vm687_vm1, %v1289_v59, %v1290_v58 }
 0x264   : > { %v1311_v3 = vadd.f32 %v1291_v2, %v1141_v45  ;;  %v1339_v4 = vsel %vm736_vm2, %v1337_v55, %v1338_v63  ;;  %v1341_v5 = vsel %vm736_vm2, %v1338_v63, %v1340_v62  ;;  %v1401_v6 = vpack.c.bf16 %v1400_v1, %v1399_v61 }
 0x265   : > { %v1151_v7 = vpop.f32.mrb[36].mxu1  ;;  %1703 = vmatmul.mubr.bf16.gmra.mrb[52].mxu0 %v1479_v46 }
 0x266   : > { %v1359_v48 = vadd.f32 %v1339_v4, %v1311_v3  ;;  %v1152_v49 = vpop.f32.mrb[37].mxu1  ;;  %1709 = vmatprep.mubr.bf16.mxu0 %v3006_v35  ;;  %v1481_v8 = vshrl.u32 %v1401_v6, 16  ;;  %v1484_v13 = vshll.u32 %v1401_v6, 16  ;;  %v2171_v6 = vld [vmem:[%s2802_s9 + $0x30] sm:$0xff]  ;;  %v2172_v7 = vld [vmem:[%s2802_s9 + $0x38] sm:$0xff] }
 0x267   : > { %v1292_v9 = vrot.slane %v1152_v49, 1  ;;  %v1154_v10 = vpop.f32.mrb[38].mxu1 }
 0x268   : > { %v1155_v11 = vpop.f32.mrb[39].mxu1  ;;  %v1483_v12 = vrot.slane %v1481_v8, 7  ;;  %v1375_v0 = vadd.f32 %v2942_v39, %v1359_v48 }
 0x269   : > { %v1293_v14 = vsel %vm687_vm1, %v1290_v58, %v1292_v9  ;;  %v1427_v11 = vld [vmem:[#allocation2 + $0x40] sm:$0x1] }
 0x26a   : > { %v1312_v23 = vadd.f32 %v1293_v14, %v1145_v28  ;;  %v1486_v26 = vor.u32 %v1484_v13, %v1483_v12  ;;  %v1377_v17 = vmax.f32 %v1375_v0, 0.0  ;;  %v1495_v18 = vsel %vm280_vm0, %v1483_v12, %v3018_v38 }
 0x26c   : > { %v1360_v15 = vadd.f32 %v1341_v5, %v1312_v23  ;;  %v1487_v16 = vsel %vm280_vm0, %v3012_v19, %v1486_v26  ;;  %v1407_v41 = vadd.f32 %v2167_v30, %v1377_v17 }
 0x26d   : > { %v1158_v20 = vpop.f32.mrb[40].mxu1  ;;  %1710 = vmatmul.mubr.bf16.gmra.mrb[56].mxu0 %v1487_v16  ;;  %2347 = vmatprep.mubr.bf16.mxu1 %v1487_v16 }
 0x26e   : > { %v1376_v24 = vadd.f32 %v2942_v39, %v1360_v15  ;;  %v1160_v25 = vpop.f32.mrb[41].mxu1  ;;  %v2325_v29 = vpop.f32.mrb[44].mxu0  ;;  %2348 = vmatmul.mubr.bf16.gmra.mrb[52].mxu1 %v1495_v18  ;;  %1719 = vmatprep.mubr.bf16.mxu0 %v3006_v35 }
 0x26f   : > { %v1162_v31 = vpop.f32.mrb[42].mxu1  ;;  %v1253_v32 = vpop.f32.mrb[45].mxu0  ;;  %v1294_v36 = vrot.slane %v1160_v25, 1  ;;  %v1345_v42 = vrot.slane %v2325_v29, 2 }
 0x270   : > { %v1378_v22 = vmax.f32 %v1376_v24, 0.0  ;;  %v1164_v21 = vpop.f32.mrb[43].mxu1  ;;  %v2326_v34 = vpop.f32.mrb[46].mxu0  ;;  %v1342_v43 = vrot.slane %v1253_v32, 2 }
 0x271   : > { %v1295_v37 = vrot.slane %v1164_v21, 1  ;;  %v1256_v40 = vpop.f32.mrb[47].mxu0 }
 0x272   : > { %v1343_v44 = vrot.slane %v1256_v40, 2  ;;  %v1408_v45 = vadd.f32 %v2168_v33, %v1378_v22 }
 0x273   : > { %v1296_v46 = vsel %vm687_vm1, %v1294_v36, %v1295_v37 }
 0x274   : > { %v1313_v47 = vadd.f32 %v1296_v46, %v1158_v20  ;;  %v1344_v50 = vsel %vm736_vm2, %v1342_v43, %v1343_v44  ;;  %v1346_v51 = vsel %vm736_vm2, %v1343_v44, %v1345_v42  ;;  %v1409_v27 = vpack.c.bf16 %v1408_v45, %v1407_v41 }
 0x275   : > { %v1168_v28 = vpop.f32.mrb[44].mxu1  ;;  %1720 = vmatmul.mubr.bf16.gmra.mrb[60].mxu0 %v1495_v18 }
 0x276   : > { %v1361_v52 = vadd.f32 %v1344_v50, %v1313_v47  ;;  %v1169_v53 = vpop.f32.mrb[45].mxu1  ;;  %1726 = vmatprep.mubr.bf16.mxu0 %v3006_v35  ;;  %v1497_v56 = vshrl.u32 %v1409_v27, 16  ;;  %v1500_v60 = vshll.u32 %v1409_v27, 16 }
 0x277   : > { %v1297_v54 = vrot.slane %v1169_v53, 1  ;;  %v1171_v57 = vpop.f32.mrb[46].mxu1 }
 0x278   : > { %v1172_v59 = vpop.f32.mrb[47].mxu1  ;;  %v1499_v58 = vrot.slane %v1497_v56, 7  ;;  %v1381_v62 = vadd.f32 %v2942_v39, %v1361_v52 }
 0x279   : > { %v1298_v61 = vsel %vm687_vm1, %v1295_v37, %v1297_v54 }
 0x27a   : > { %v1314_v55 = vadd.f32 %v1298_v61, %v1162_v31  ;;  %v1502_v63 = vor.u32 %v1500_v60, %v1499_v58  ;;  %v1511_v3 = vsel %vm280_vm0, %v1499_v58, %v3018_v38  ;;  %v1383_v4 = vmax.f32 %v1381_v62, 0.0 }
 0x27b   : > { %v1521_v38 = vshll.u32 %v1427_v11, 16 }
 0x27c   : > { %v1362_v1 = vadd.f32 %v1346_v51, %v1314_v55  ;;  %v1503_v2 = vsel %vm280_vm0, %v3012_v19, %v1502_v63  ;;  %v1415_v49 = vadd.f32 %v2171_v6, %v1383_v4 }
 0x27d   : > { %1727 = vmatmul.mubr.bf16.gmra.mrb[64].mxu0 %v1503_v2  ;;  %2351 = vmatprep.mubr.bf16.mxu1 %v1503_v2 }
 0x27e   : > { %v1382_v5 = vadd.f32 %v2942_v39, %v1362_v1  ;;  %2352 = vmatmul.mubr.bf16.gmra.mrb[56].mxu1 %v1511_v3  ;;  %1736 = vmatprep.mubr.bf16.mxu0 %v3006_v35 }
 0x280   : > { %v1384_v48 = vmax.f32 %v1382_v5, 0.0 }
 0x282   : > { %v1416_v8 = vadd.f32 %v2172_v7, %v1384_v48 }
 0x284   : > { %v1417_v9 = vpack.c.bf16 %v1416_v8, %v1415_v49 }
 0x285   : > { %1737 = vmatmul.mubr.bf16.gmra.mrb[68].mxu0 %v1511_v3 }
 0x286   : > { %1743 = vmatprep.mubr.bf16.mxu0 %v3006_v35  ;;  %v1513_v10 = vshrl.u32 %v1417_v9, 16  ;;  %v1516_v13 = vshll.u32 %v1417_v9, 16 }
 0x288   : > { %v1515_v12 = vrot.slane %v1513_v10, 7 }
 0x28a   : > { %v1518_v0 = vor.u32 %v1516_v13, %v1515_v12  ;;  %v1523_v23 = vsel %vm280_vm0, %v1515_v12, %v1521_v38 }
 0x28c   : > { %v1519_v14 = vsel %vm280_vm0, %v3012_v19, %v1518_v0 }
 0x28d   : > { %1744 = vmatmul.mubr.bf16.gmra.mrb[72].mxu0 %v1519_v14  ;;  %2355 = vmatprep.mubr.bf16.mxu1 %v1519_v14 }
 0x28e   : > { %2356 = vmatmul.mubr.bf16.gmra.mrb[60].mxu1 %v1523_v23  ;;  %1753 = vmatprep.mubr.bf16.mxu0 %v3006_v35 }
 0x295   : > { %1754 = vmatmul.mubr.bf16.gmra.mrb[76].mxu0 %v1523_v23 }
 0x330   : > { %v1694_v26 = vpop.f32.mrb[48].mxu0 }
 0x331   : > { %v1696_v15 = vpop.f32.mrb[49].mxu0  ;;  %v2345_v16 = vpop.f32.mrb[48].mxu1 }
 0x332   : > { %v1698_v17 = vpop.f32.mrb[50].mxu0  ;;  %v1795_v20 = vpop.f32.mrb[49].mxu1  ;;  %v1866_v25 = vrot.slane %v1696_v15, 1  ;;  %v1917_v31 = vrot.slane %v2345_v16, 2 }
 0x333   : > { %v1700_v18 = vpop.f32.mrb[51].mxu0  ;;  %v2346_v24 = vpop.f32.mrb[50].mxu1  ;;  %v1914_v19 = vrot.slane %v1795_v20, 2 }
 0x334   : > { %v1867_v29 = vrot.slane %v1700_v18, 1  ;;  %v1798_v30 = vpop.f32.mrb[51].mxu1 }
 0x335   : > { %v1915_v32 = vrot.slane %v1798_v30, 2 }
 0x336   : > { %v1868_v33 = vsel %vm687_vm1, %v1866_v25, %v1867_v29 }
 0x337   : > { %v1894_v22 = vadd.f32 %v1868_v33, %v1694_v26  ;;  %v1916_v35 = vsel %vm736_vm2, %v1914_v19, %v1915_v32  ;;  %v1918_v21 = vsel %vm736_vm2, %v1915_v32, %v1917_v31 }
 0x338   : > { %v1704_v34 = vpop.f32.mrb[52].mxu0 }
 0x339   : > { %v1942_v36 = vadd.f32 %v1916_v35, %v1894_v22  ;;  %v1705_v37 = vpop.f32.mrb[53].mxu0 }
 0x33a   : > { %v1869_v40 = vrot.slane %v1705_v37, 1  ;;  %v1707_v41 = vpop.f32.mrb[54].mxu0 }
 0x33b   : > { %v1950_v42 = vadd.f32 %v2942_v39, %v1942_v36  ;;  %v1708_v43 = vpop.f32.mrb[55].mxu0 }
 0x33c   : > { %v1870_v44 = vsel %vm687_vm1, %v1867_v29, %v1869_v40 }
 0x33d   : > { %v1952_v45 = vmax.f32 %v1950_v42, 0.0  ;;  %v1895_v46 = vadd.f32 %v1870_v44, %v1698_v17 }
 0x33f   : > { %1954 = vst [vmem:[%s3067_s4] sm:$0xff] %v1952_v45  ;;  %v1943_v47 = vadd.f32 %v1918_v21, %v1895_v46  ;;  %v2496_v46 = vld [vmem:[%s3149_s2] ss:$0 sm:$0xff] }
 0x340   : > { %v1711_v50 = vpop.f32.mrb[56].mxu0 }
 0x341   : > { %v1951_v51 = vadd.f32 %v2942_v39, %v1943_v47  ;;  %v1713_v27 = vpop.f32.mrb[57].mxu0  ;;  %v2349_v28 = vpop.f32.mrb[52].mxu1 }
 0x342   : > { %v1715_v52 = vpop.f32.mrb[58].mxu0  ;;  %v1810_v53 = vpop.f32.mrb[53].mxu1  ;;  %v1871_v59 = vrot.slane %v1713_v27, 1  ;;  %v1922_v61 = vrot.slane %v2349_v28, 2 }
 0x343   : > { %v1953_v56 = vmax.f32 %v1951_v51, 0.0  ;;  %v1717_v54 = vpop.f32.mrb[59].mxu0  ;;  %v2350_v57 = vpop.f32.mrb[54].mxu1  ;;  %v1919_v62 = vrot.slane %v1810_v53, 2 }
 0x344   : > { %v1872_v58 = vrot.slane %v1717_v54, 1  ;;  %v1813_v60 = vpop.f32.mrb[55].mxu1 }
 0x345   : > { %1955 = vst [vmem:[%s3067_s4 + $0x8] sm:$0xff] %v1953_v56  ;;  %v1920_v55 = vrot.slane %v1813_v60, 2 }
 0x346   : > { %v1873_v63 = vsel %vm687_vm1, %v1871_v59, %v1872_v58 }
 0x347   : > { %v1896_v1 = vadd.f32 %v1873_v63, %v1711_v50  ;;  %v1921_v2 = vsel %vm736_vm2, %v1919_v62, %v1920_v55  ;;  %v1923_v3 = vsel %vm736_vm2, %v1920_v55, %v1922_v61 }
 0x348   : > { %v1721_v4 = vpop.f32.mrb[60].mxu0 }
 0x349   : > { %v1944_v5 = vadd.f32 %v1921_v2, %v1896_v1  ;;  %v1722_v6 = vpop.f32.mrb[61].mxu0 }
 0x34a   : > { %v1874_v7 = vrot.slane %v1722_v6, 1  ;;  %v1724_v48 = vpop.f32.mrb[62].mxu0 }
 0x34b   : > { %v1956_v49 = vadd.f32 %v2942_v39, %v1944_v5  ;;  %v1725_v8 = vpop.f32.mrb[63].mxu0 }
 0x34c   : > { %v1875_v9 = vsel %vm687_vm1, %v1872_v58, %v1874_v7 }
 0x34d   : > { %v1958_v10 = vmax.f32 %v1956_v49, 0.0  ;;  %v1897_v11 = vadd.f32 %v1875_v9, %v1715_v52 }
 0x34f   : > { %2199 = vst [vmem:[%s3067_s4 + $0x10] sm:$0xff] %v1958_v10  ;;  %v1945_v12 = vadd.f32 %v1923_v3, %v1897_v11 }
 0x350   : > { %v1728_v13 = vpop.f32.mrb[64].mxu0 }
 0x351   : > { %v1957_v38 = vadd.f32 %v2942_v39, %v1945_v12  ;;  %v1730_v0 = vpop.f32.mrb[65].mxu0  ;;  %v2353_v14 = vpop.f32.mrb[56].mxu1 }
 0x352   : > { %v1732_v23 = vpop.f32.mrb[66].mxu0  ;;  %v1825_v26 = vpop.f32.mrb[57].mxu1  ;;  %v1876_v20 = vrot.slane %v1730_v0, 1  ;;  %v1927_v25 = vrot.slane %v2353_v14, 2 }
 0x353   : > { %v1959_v15 = vmax.f32 %v1957_v38, 0.0  ;;  %v1734_v16 = vpop.f32.mrb[67].mxu0  ;;  %v2354_v17 = vpop.f32.mrb[58].mxu1  ;;  %v1924_v29 = vrot.slane %v1825_v26, 2 }
 0x354   : > { %v1877_v18 = vrot.slane %v1734_v16, 1  ;;  %v1828_v24 = vpop.f32.mrb[59].mxu1 }
 0x355   : > { %2200 = vst [vmem:[%s3067_s4 + $0x18] sm:$0xff] %v1959_v15  ;;  %v1925_v30 = vrot.slane %v1828_v24, 2 }
 0x356   : > { %v1878_v31 = vsel %vm687_vm1, %v1876_v20, %v1877_v18 }
 0x357   : > { %v1898_v19 = vadd.f32 %v1878_v31, %v1728_v13  ;;  %v1926_v32 = vsel %vm736_vm2, %v1924_v29, %v1925_v30  ;;  %v1928_v33 = vsel %vm736_vm2, %v1925_v30, %v1927_v25 }
 0x358   : > { %v1738_v22 = vpop.f32.mrb[68].mxu0 }
 0x359   : > { %v1946_v35 = vadd.f32 %v1926_v32, %v1898_v19  ;;  %v1739_v21 = vpop.f32.mrb[69].mxu0 }
 0x35a   : > { %v1879_v34 = vrot.slane %v1739_v21, 1  ;;  %v1741_v36 = vpop.f32.mrb[70].mxu0 }
 0x35b   : > { %v1962_v37 = vadd.f32 %v2942_v39, %v1946_v35  ;;  %v1742_v40 = vpop.f32.mrb[71].mxu0 }
 0x35c   : > { %v1880_v41 = vsel %vm687_vm1, %v1877_v18, %v1879_v34 }
 0x35d   : > { %v1964_v42 = vmax.f32 %v1962_v37, 0.0  ;;  %v1899_v43 = vadd.f32 %v1880_v41, %v1732_v23 }
 0x35f   : > { %2201 = vst [vmem:[%s3067_s4 + $0x20] sm:$0xff] %v1964_v42  ;;  %v1947_v44 = vadd.f32 %v1928_v33, %v1899_v43 }
 0x360   : > { %v1745_v45 = vpop.f32.mrb[72].mxu0 }
 0x361   : > { %v1963_v47 = vadd.f32 %v2496_v46, %v1947_v44  ;;  %v1747_v50 = vpop.f32.mrb[73].mxu0  ;;  %v2357_v51 = vpop.f32.mrb[60].mxu1 }
 0x362   : > { %v1749_v27 = vpop.f32.mrb[74].mxu0  ;;  %v1840_v28 = vpop.f32.mrb[61].mxu1  ;;  %v1881_v56 = vrot.slane %v1747_v50, 1  ;;  %v1932_v59 = vrot.slane %v2357_v51, 2 }
 0x363   : > { %v1965_v52 = vmax.f32 %v1963_v47, 0.0  ;;  %v1751_v39 = vpop.f32.mrb[75].mxu0  ;;  %v2358_v53 = vpop.f32.mrb[62].mxu1  ;;  %v1929_v58 = vrot.slane %v1840_v28, 2 }
 0x364   : > { %v1882_v54 = vrot.slane %v1751_v39, 1  ;;  %v1843_v57 = vpop.f32.mrb[63].mxu1 }
 0x365   : > { %2202 = vst [vmem:[%s3067_s4 + $0x28] sm:$0xff] %v1965_v52  ;;  %v1930_v60 = vrot.slane %v1843_v57, 2 }
 0x366   : > { %v1883_v61 = vsel %vm687_vm1, %v1881_v56, %v1882_v54 }
 0x367   : > { %v1900_v62 = vadd.f32 %v1883_v61, %v1745_v45  ;;  %v1931_v55 = vsel %vm736_vm2, %v1929_v58, %v1930_v60  ;;  %v1933_v63 = vsel %vm736_vm2, %v1930_v60, %v1932_v59 }
 0x368   : > { %v1755_v1 = vpop.f32.mrb[76].mxu0 }
 0x369   : > { %v1948_v2 = vadd.f32 %v1931_v55, %v1900_v62  ;;  %v1756_v3 = vpop.f32.mrb[77].mxu0 }
 0x36a   : > { %v1884_v4 = vrot.slane %v1756_v3, 1  ;;  %v1758_v5 = vpop.f32.mrb[78].mxu0 }
 0x36b   : > { %v1968_v6 = vadd.f32 %v2496_v46, %v1948_v2  ;;  %v1759_v7 = vpop.f32.mrb[79].mxu0 }
 0x36c   : > { %v1885_v48 = vsel %vm687_vm1, %v1882_v54, %v1884_v4 }
 0x36d   : > { %v1970_v49 = vmax.f32 %v1968_v6, 0.0  ;;  %v1901_v8 = vadd.f32 %v1885_v48, %v1749_v27 }
 0x36f   : > { %2203 = vst [vmem:[%s3067_s4 + $0x30] sm:$0xff] %v1970_v49  ;;  %v1949_v9 = vadd.f32 %v1933_v63, %v1901_v8 }
 0x371   : > { %v1969_v10 = vadd.f32 %v2496_v46, %v1949_v9 }
 0x373   : > { %v1971_v11 = vmax.f32 %v1969_v10, 0.0 }
 0x375   : > { %2204 = vst [vmem:[%s3067_s4 + $0x38] sm:$0xff] %v1971_v11 }
 0x376   : > { %2568 = shalt.err (!%p2565_p7)
}
 0x377   : > { %s2569_s7 = scalar_lea.hbm %s3100_s28, 1024  ;;  %s2573_s18 = scalar_lea.hbm %s3150_s3, 2048 }
 0x378   : > { %p2570_p9 = scmp.ne.s32.totalorder %s3100_s28, %s2569_s7  ;;  %p2574_p5 = scmp.lt.u32.totalorder %s3100_s28, %s3150_s3 }
 0x379   : > { %p2575_p11 = scmp.lt.u32.totalorder %s2573_s18, %s2569_s7  ;;  %p2577_p4 = scmp.lt.u32.totalorder %s2569_s7, %s3100_s28 }
 0x37a   : > { %p2571_p2 = pnand %p2570_p9, %p2748_p12 }
 0x37b   : > { %p2576_p1 = por %p2575_p11, %p2574_p5 }
 0x37c   : > { %p2572_p0 = pneg %p2571_p2 }
 0x37d   : > { %p2578_p6 = por %p2577_p4, %p2576_p1 }
 0x37f   : > { %p2579_p8 = pnand %p2578_p6, %p2572_p0 }
 0x381   : > { %2582 = shalt.err (!%p2579_p8)
}
 0x382   : > { %s2635_s25 = smov 128   ;;  %s2636_s26 = smov 8  }
 0x383   : > { %2365 = dma.vmem_to_hbm [thread:$0]  (%p2748_p12), %s3102_s10, 1024, %s3100_s28, %s1975_s29, %s2635_s25, %s2635_s25, %s2636_s26  }
 0x384 PF: > { %s2004_s5 = sand.u32 1, %s2613_s12   ;;  %p3165_p10 = scmp.ne.s32.totalorder %s3155_s19, 0 }
 0x385   : > { %p3166_p13 = scmp.ge.s32.totalorder %s2625_s15, 2  ;;  %s2005_s11 = scalar_lea.sflag [#allocation5], %s2004_s5 }
 0x387   : > { %p2376_p3 = pnand %p3166_p13, %p3165_p10 }
 0x389   : > { %2608 = dma.done.wait (!%p2376_p3), %s2005_s11, 1024  }
 0x38a   : > { %2610 = vsyncadd (!%p2376_p3), %s2005_s11, 4294966272  ;;  %p17_p7 = scmp.ge.s32.totalorder %s2713_s24, 4   ;;  %s3167_s12 = smov %s2617_s13 }
 0x38b   : > { %s3168_s13 = smov %s2621_s14  ;;  %s3169_s14 = smov %s2744_s17 }
 0x38c   : > { %s3170_s15 = smov %s2713_s24  ;;  %19 = sbr.rel (!%p17_p7) target bundleno = 6 (0x6), region = 87 }
 0x393   :  { %2010 = vsyncpa [#allocation4], 1 }
 0x394   :  { %2012 = vsyncpa [#allocation4 + $0x1], 1 }
 0x395   :  { %2013 = vsyncpa [#allocation7], 1 }
 0x396   :  { %2014 = vsyncpa [#allocation5], 1 }
 0x397   :  { %2016 = vsyncpa [#allocation5 + $0x1], 1 }

</bundles_post_ra>
